<compile_context>
chip_gen: v6e
topology: v6e:2x2x1
jax: 0.10.0
libtpu: 0.0.40
codegen_flags: <defaults>
</compile_context>

<pallas_src>
import functools
import math

import jax
import jax.numpy as jnp
from jax.experimental import pallas as pl
from jax.experimental.pallas import tpu as pltpu


# --------------------------------------------------------------------------
# helpers
# --------------------------------------------------------------------------
def _full_spec(shape):
    nd = len(shape)
    return pl.BlockSpec(shape, lambda *_: (0,) * nd)


# --------------------------------------------------------------------------
# fused DICE forward kernel
# --------------------------------------------------------------------------
def _dice_kernel(xx_ref, w_ref, logits_ref, fc_ref, wflat_ref,
                 *, layout, T, B, C, H, n_heads, E):
    N = B * C            # number of LSTM sequences
    D = 2 * H            # bidirectional LSTM output size
    TB = T * B
    C2 = C * C
    dh = E // n_heads

    def wload(name):
        off, r, c = layout[name]            # static python ints
        return w_ref[off:off + r, 0:c]

    # ---------------- 1) bidirectional LSTM, fwd+bwd fused in one recurrence
    wih = wload("wih")                      # (2, 8H)
    whh = wload("whh")                      # (2H, 8H) block-diag recurrent weight
    bg = wload("bg")                        # (1, 8H)
    # Input projection hoisted out of the serial loop.
    gx = jnp.dot(xx_ref[...], wih, preferred_element_type=jnp.float32) + bg

    h = jnp.zeros((N, D), jnp.float32)      # [h_fwd | h_bwd]
    c = jnp.zeros((N, D), jnp.float32)
    h_fwd = [None] * T
    h_bwd = [None] * T
    for t in range(T):                      # static unroll (T small, known)
        gates = gx[t * N:(t + 1) * N, :] + jnp.dot(
            h, whh, preferred_element_type=jnp.float32)          # (N, 8H)
        # packed gate layout [i_f i_b | f_f f_b | o_f o_b | g_f g_b]
        sig = jax.nn.sigmoid(gates[:, :3 * D])
        g_g = jnp.tanh(gates[:, 3 * D:])
        i_g = sig[:, 0:D]
        f_g = sig[:, D:2 * D]
        o_g = sig[:, 2 * D:3 * D]
        c = f_g * c + i_g * g_g
        h = o_g * jnp.tanh(c)
        h_fwd[t] = h[:, 0:H]                # forward output belongs to time t
        h_bwd[T - 1 - t] = h[:, H:D]        # backward output to time T-1-t
    lo_f = jnp.concatenate(h_fwd, axis=0)   # (T*N, H), in-register
    lo_b = jnp.concatenate(h_bwd, axis=0)   # (T*N, H), in-register

    # ---------------- 2) multi-head attention weights
    # key/value layers folded into the MHA in-projection offline; q and k
    # projections fused into one matmul; 1/sqrt(dh) folded into the q half.
    wqk = wload("wqk")                      # (D, 2E)
    bqk = wload("bqk")                      # (1, 2E)
    qk = (jnp.dot(lo_f, wqk[0:H, :], preferred_element_type=jnp.float32)
          + jnp.dot(lo_b, wqk[H:D, :], preferred_element_type=jnp.float32)
          + bqk)                            # (T*N, 2E)
    q3 = qk[:, 0:E].reshape(TB, C, E)
    k3 = qk[:, E:2 * E].reshape(TB, C, E)

    acc = jnp.zeros((TB, C, C), jnp.float32)
    for hh in range(n_heads):               # tiny, static
        qh = q3[:, :, hh * dh:(hh + 1) * dh]
        kh = k3[:, :, hh * dh:(hh + 1) * dh]
        s = jnp.einsum('bqd,bkd->bqk', qh, kh,
                       preferred_element_type=jnp.float32)
        s = s - jnp.max(s, axis=-1, keepdims=True)
        e = jnp.exp(s)
        acc = acc + e / jnp.sum(e, axis=-1, keepdims=True)   # exact softmax
    attn = acc * (1.0 / n_heads)            # (TB, C, C), head-averaged

    # single full-width store; attention weights stay in register for GTA.
    aw = attn.reshape(TB, C2)               # (TB, C*C)
    wflat_ref[...] = aw

    # ---------------- 3) global temporal attention (BN folded) + classifier
    inv_t = 1.0 / T
    mean = aw[0:B, :]                       # per-batch time mean, O(T*B*C2)
    for t in range(1, T):
        mean = mean + aw[t * B:(t + 1) * B, :]
    mean = mean * inv_t                     # (B, C2)
    x_ro = aw * jnp.concatenate([mean] * T, axis=0)

    emb = jnp.maximum(
        jnp.dot(x_ro, wload("we"), preferred_element_type=jnp.float32)
        + wload("be"), 0.0)
    a1 = jnp.maximum(
        jnp.dot(emb, wload("wa1"), preferred_element_type=jnp.float32)
        + wload("ba1"), 0.0)
    a2 = (jnp.dot(a1, wload("wa2"), preferred_element_type=jnp.float32)
          + wload("ba2"))                   # (TB, 1)
    att = a2 * jnp.clip(a2 + 3.0, 0.0, 6.0) * (1.0 / 6.0)     # Hardswish

    weighted = aw * att                     # (TB, C2)
    fc = weighted[0:B, :]
    for t in range(1, T):
        fc = fc + weighted[t * B:(t + 1) * B, :]
    fc = fc * inv_t                         # (B, C2)
    fc_ref[...] = fc

    h0 = jnp.maximum(
        jnp.dot(fc, wload("wc0"), preferred_element_type=jnp.float32)
        + wload("bc0"), 0.0)
    h1 = jnp.maximum(
        jnp.dot(h0, wload("wc1"), preferred_element_type=jnp.float32)
        + wload("bc1"), 0.0)
    logits_ref[...] = (jnp.dot(h1, wload("wc2"),
                               preferred_element_type=jnp.float32)
                       + wload("bc2"))


# --------------------------------------------------------------------------
# parameter folding / packing (done once at trace time, outside the kernel)
# --------------------------------------------------------------------------
def prepare_params(params, cfg):
    H = cfg["lstm_hidden"]
    dh = cfg["head_hidden"]

    # ---- LSTM: fuse fwd/bwd into one block recurrence, permute gate columns
    def scatter_gates(w, backward):
        # torch gate order [i, f, g, o] -> combined [i_f i_b | f_f f_b | o_f o_b | g_f g_b]
        i, f, g, o = (w[:, 0:H], w[:, H:2 * H], w[:, 2 * H:3 * H], w[:, 3 * H:4 * H])
        z = jnp.zeros_like(i)
        blocks = [z, i, z, f, z, o, z, g] if backward else [i, z, f, z, o, z, g, z]
        return jnp.concatenate(blocks, axis=1)

    l = params["lstm"]
    wih_blk = jnp.concatenate([scatter_gates(l["wih_f"], False),
                               scatter_gates(l["wih_b"], True)], axis=0)    # (2, 8H)
    whh_blk = jnp.concatenate([scatter_gates(l["whh_f"], False),
                               scatter_gates(l["whh_b"], True)], axis=0)    # (2H, 8H)
    # TODO(synk): torch LSTM has b_ih + b_hh; a checkpoint loader must sum them here.
    b_blk = scatter_gates(l["b_f"], False) + scatter_gates(l["b_b"], True)  # (1, 8H)

    # ---- attention: fold key/value layers + 1/sqrt(dh) into one fused q|k proj
    a = params["attn"]
    scale = 1.0 / math.sqrt(dh)
    wq_eff = (a["wk"] @ a["wq_in"]) * scale
    bq_eff = (a["bk"] @ a["wq_in"] + a["bq_in"]) * scale
    wk_eff = a["wv"] @ a["wk_in"]
    bk_eff = a["bv"] @ a["wk_in"] + a["bk_in"]
    wqk = jnp.concatenate([wq_eff, wk_eff], axis=1)     # (D, 2E)
    bqk = jnp.concatenate([bq_eff, bk_eff], axis=1)     # (1, 2E)

    # ---- GTA: fold inference BatchNorm (mean=0, var=1, eps=1e-5); pad e1 -> 8k
    # TODO(synk): real checkpoints need the actual running statistics folded here.
    g = params["gta"]
    bn_scale = g["gamma"] / jnp.sqrt(1.0 + 1e-5)
    we_f = g["we"] * bn_scale
    be_f = g["be"] * bn_scale + g["beta"]
    e1 = we_f.shape[1]
    e1p = ((max(e1, 8) + 7) // 8) * 8
    pad = e1p - e1
    we_p = jnp.pad(we_f, ((0, 0), (0, pad)))       # zero cols: exact
    be_p = jnp.pad(be_f, ((0, 0), (0, pad)))
    wa1_p = jnp.pad(g["wa1"], ((0, pad), (0, 0)))  # zero rows: exact

    clf = params["clf"]
    named = [
        ("wih", wih_blk), ("whh", whh_blk), ("bg", b_blk),
        ("wqk", wqk), ("bqk", bqk),
        ("we", we_p), ("be", be_p),
        ("wa1", wa1_p), ("ba1", g["ba1"]), ("wa2", g["wa2"]), ("ba2", g["ba2"]),
        ("wc0", clf["wc0"]), ("bc0", clf["bc0"]),
        ("wc1", clf["wc1"]), ("bc1", clf["bc1"]),
        ("wc2", clf["wc2"]), ("bc2", clf["bc2"]),
    ]

    # ---- pack everything into ONE lane-dense slab (cuts ~20 DMAs down to 1)
    width = max(int(arr.shape[1]) for _, arr in named)
    width = ((width + 127) // 128) * 128
    layout = {}
    blocks = []
    off = 0
    for name, arr in named:
        r, c = int(arr.shape[0]), int(arr.shape[1])
        rpad = ((r + 7) // 8) * 8            # 8-sublane aligned block starts
        layout[name] = (off, r, c)
        blocks.append(jnp.pad(arr.astype(jnp.float32),
                              ((0, rpad - r), (0, width - c))))
        off += rpad
    slab = jnp.concatenate(blocks, axis=0)   # (rows, width)
    return slab, layout


# --------------------------------------------------------------------------
# full DICE forward
# --------------------------------------------------------------------------
def dice_forward(x, params, cfg):
    B, T, C = x.shape
    H = cfg["lstm_hidden"]
    O = cfg["output_size"]
    n_heads = cfg["n_heads"]
    C2 = C * C
    N = B * C
    D = 2 * H
    TB = T * B

    # torch: x.permute(0,2,1).reshape(B*C, T, 1) -> time-major rows t*N + (b*C+c);
    # channel 0 = x(t), channel 1 = x(T-1-t) (backward direction input).
    x_tm = jnp.transpose(x, (1, 0, 2)).reshape(T, N)
    xx = jnp.stack([x_tm, x_tm[::-1]], axis=-1).reshape(T * N, 2)

    slab, layout = prepare_params(params, cfg)
    E = layout["wqk"][2] // 2
    e1p = layout["we"][2]
    e2 = layout["wa1"][2]
    Hc = layout["wc0"][2]
    dh = E // n_heads

    out_shapes = (jax.ShapeDtypeStruct((B, O), jnp.float32),
                  jax.ShapeDtypeStruct((B, C2), jnp.float32),
                  jax.ShapeDtypeStruct((TB, C2), jnp.float32))

    flops = (2 * (T * N) * 2 * (8 * H)               # input projection
             + T * 2 * N * D * (8 * H)               # recurrence
             + 2 * 2 * (T * N) * H * (2 * E)         # fused q|k projection
             + n_heads * 2 * TB * C * C * dh         # attention scores
             + 2 * TB * C2 * e1p + 2 * TB * e1p * e2 + 2 * TB * e2
             + 2 * B * C2 * Hc + 2 * B * Hc * Hc + 2 * B * Hc * O)
    transcendentals = T * N * 5 * D + n_heads * TB * C * C
    bytes_accessed = 4 * (xx.size + slab.size + B * O + B * C2 + TB * C2)
    cost = pl.CostEstimate(flops=int(flops),
                           transcendentals=int(transcendentals),
                           bytes_accessed=int(bytes_accessed))

    logits, fc, wflat = pl.pallas_call(
        functools.partial(_dice_kernel, layout=layout, T=T, B=B, C=C, H=H,
                          n_heads=n_heads, E=E),
        out_shape=out_shapes,
        grid=(1,),
        in_specs=[_full_spec(xx.shape), _full_spec(slab.shape)],
        out_specs=tuple(_full_spec(s.shape) for s in out_shapes),
        compiler_params=pltpu.CompilerParams(
            dimension_semantics=("arbitrary",),
            vmem_limit_bytes=32 * 1024 * 1024),
        cost_estimate=cost,
    )(xx, slab)

    # TODO(synk): the MHA value path / attn_output is omitted - the reference
    # model discards attn_output and only consumes the attention weights.
    weights = jnp.transpose(wflat.reshape(T, B, C, C), (1, 0, 2, 3))  # (B,T,C,C)
    return logits, fc.reshape(B, C, C), weights


# --------------------------------------------------------------------------
# deterministic parameter construction (kaiming-style normal init, torch layout)
# --------------------------------------------------------------------------
def _kaiming(key, shape, fan_in):
    return jax.random.normal(key, shape, jnp.float32) * math.sqrt(2.0 / fan_in)


def make_params(key, cfg):
    C = cfg["input_size"]
    H = cfg["lstm_hidden"]
    D = 2 * H
    E = cfg["n_heads"] * cfg["head_hidden"]
    C2 = C * C
    e1 = round(0.05 * C2)
    e2 = round(0.5 * C2)
    Hc = cfg["clf_hidden"]
    O = cfg["output_size"]

    ks = iter(jax.random.split(key, 32))
    params = {
        "lstm": {   # gate order [i, f, g, o] as in torch; weights stored (in, out)
            "wih_f": _kaiming(next(ks), (1, 4 * H), 1),
            "whh_f": _kaiming(next(ks), (H, 4 * H), H),
            "b_f": jax.random.normal(next(ks), (1, 4 * H), jnp.float32) * 0.01,
            "wih_b": _kaiming(next(ks), (1, 4 * H), 1),
            "whh_b": _kaiming(next(ks), (H, 4 * H), H),
            "b_b": jax.random.normal(next(ks), (1, 4 * H), jnp.float32) * 0.01,
        },
        "attn": {
            "wk": _kaiming(next(ks), (D, E), D),
            "bk": jax.random.normal(next(ks), (1, E), jnp.float32) * 0.01,
            "wv": _kaiming(next(ks), (D, E), D),
            "bv": jax.random.normal(next(ks), (1, E), jnp.float32) * 0.01,
            "wq_in": _kaiming(next(ks), (E, E), E),
            "bq_in": jax.random.normal(next(ks), (1, E), jnp.float32) * 0.01,
            "wk_in": _kaiming(next(ks), (E, E), E),
            "bk_in": jax.random.normal(next(ks), (1, E), jnp.float32) * 0.01,
        },
        "gta": {
            "we": _kaiming(next(ks), (C2, e1), C2),
            "be": jax.random.normal(next(ks), (1, e1), jnp.float32) * 0.01,
            "gamma": jnp.ones((1, e1), jnp.float32),
            "beta": jnp.zeros((1, e1), jnp.float32),
            "wa1": _kaiming(next(ks), (e1, e2), e1),
            "ba1": jax.random.normal(next(ks), (1, e2), jnp.float32) * 0.01,
            "wa2": _kaiming(next(ks), (e2, 1), e2),
            "ba2": jax.random.normal(next(ks), (1, 1), jnp.float32) * 0.01,
        },
        "clf": {
            "wc0": _kaiming(next(ks), (C2, Hc), C2),
            "bc0": jax.random.normal(next(ks), (1, Hc), jnp.float32) * 0.01,
            "wc1": _kaiming(next(ks), (Hc, Hc), Hc),
            "bc1": jax.random.normal(next(ks), (1, Hc), jnp.float32) * 0.01,
            "wc2": _kaiming(next(ks), (Hc, O), Hc),
            "bc2": jax.random.normal(next(ks), (1, O), jnp.float32) * 0.01,
        },
    }
    return params


if __name__ == "__main__":
    cfg = {
        "input_size": 8,        # C (number of ROIs / features)
        "output_size": 4,       # n_classes
        "lstm_hidden": 16,      # bidirectional, num_layers=1 -> lstm_output_size=32
        "n_heads": 2,
        "head_hidden": 16,      # MHAtt_hidden_size = 32
        "clf_hidden": 32,       # clf_num_layers = 1
    }
    # TODO(synk): lstm_num_layers is fixed to 1 in this synthetic config.

    key = jax.random.PRNGKey(0)
    pkey, xkey = jax.random.split(key)
    params = make_params(pkey, cfg)

    B, T, C = 2, 8, cfg["input_size"]
    x = jax.random.normal(xkey, (B, T, C), jnp.float32)

    @jax.jit
    def fwd(x_, p_):
        return dice_forward(x_, p_, cfg)

    logits, fc, weights = fwd(x, params)
    jax.block_until_ready((logits, fc, weights))

    assert logits.shape == (B, cfg["output_size"])
    assert fc.shape == (B, C, C)
    assert weights.shape == (B, T, C, C)
    assert bool(jnp.isfinite(logits).all())
    assert bool(jnp.isfinite(fc).all())
    assert bool(jnp.isfinite(weights).all())
    # attention weights are softmax rows -> should sum to 1
    assert bool(jnp.allclose(weights.sum(-1), 1.0, atol=1e-3))
    print("KERNEL_OK")
</pallas_src>

<mosaic_0001>
module attributes {stable_mosaic.version = 11 : i64} {
  func.func @_dice_kernel(%arg0: i32, %arg1: memref<128x2xf32, #tpu.memory_space<vmem>>, %arg2: memref<368x128xf32, #tpu.memory_space<vmem>>, %arg3: memref<2x4xf32, #tpu.memory_space<vmem>>, %arg4: memref<2x64xf32, #tpu.memory_space<vmem>>, %arg5: memref<16x64xf32, #tpu.memory_space<vmem>>) attributes {dimension_semantics = [#tpu.dimension_semantics<arbitrary>], iteration_bounds = array<i64: 1>, scalar_prefetch = 0 : i64, scratch_operands = 0 : i64, tpu.core_type = #tpu.core_type<tc>, window_params = [{pipeline_mode = #tpu.pipeline_mode<synchronous>, transform_indices = @transform_0, window_bounds = array<i64: 128, 2>}, {pipeline_mode = #tpu.pipeline_mode<synchronous>, transform_indices = @transform_1, window_bounds = array<i64: 368, 128>}, {pipeline_mode = #tpu.pipeline_mode<synchronous>, transform_indices = @transform_2, window_bounds = array<i64: 2, 4>}, {pipeline_mode = #tpu.pipeline_mode<synchronous>, transform_indices = @transform_3, window_bounds = array<i64: 2, 64>}, {pipeline_mode = #tpu.pipeline_mode<synchronous>, transform_indices = @transform_4, window_bounds = array<i64: 16, 64>}]} {
    %c0 = arith.constant 0 : index
    %c0_0 = arith.constant 0 : index
    %0 = vector.load %arg2[%c0, %c0_0] : memref<368x128xf32, #tpu.memory_space<vmem>>, vector<2x128xf32>
    %c8 = arith.constant 8 : index
    %c0_1 = arith.constant 0 : index
    %1 = vector.load %arg2[%c8, %c0_1] : memref<368x128xf32, #tpu.memory_space<vmem>>, vector<32x128xf32>
    %c40 = arith.constant 40 : index
    %c0_2 = arith.constant 0 : index
    %2 = vector.load %arg2[%c40, %c0_2] : memref<368x128xf32, #tpu.memory_space<vmem>>, vector<1x128xf32>
    %c0_3 = arith.constant 0 : index
    %c0_4 = arith.constant 0 : index
    %3 = vector.load %arg1[%c0_3, %c0_4] : memref<128x2xf32, #tpu.memory_space<vmem>>, vector<128x2xf32>
    %cst = arith.constant dense<0.000000e+00> : vector<128x128xf32>
    %4 = tpu.matmul %3, %0, %cst {dimension_numbers = #tpu.dot_dimension_numbers<[1], [0], [0], [1], [0, 0, 1, 1], [], []>} : vector<128x2xf32>, vector<2x128xf32>, vector<128x128xf32> -> vector<128x128xf32>
    %5 = vector.broadcast %2 : vector<1x128xf32> to vector<128x128xf32>
    %6 = arith.addf %4, %5 : vector<128x128xf32>
    %cst_5 = arith.constant 0.000000e+00 : f32
    %7 = vector.broadcast %cst_5 : f32 to vector<16x32xf32>
    %cst_6 = arith.constant 0.000000e+00 : f32
    %8 = vector.broadcast %cst_6 : f32 to vector<16x32xf32>
    %9 = vector.extract_strided_slice %6 {offsets = [0, 0], sizes = [16, 128], strides = [1, 1]} : vector<128x128xf32> to vector<16x128xf32>
    %cst_7 = arith.constant dense<0.000000e+00> : vector<16x128xf32>
    %10 = tpu.matmul %7, %1, %cst_7 {dimension_numbers = #tpu.dot_dimension_numbers<[1], [0], [0], [1], [0, 0, 1, 1], [], []>} : vector<16x32xf32>, vector<32x128xf32>, vector<16x128xf32> -> vector<16x128xf32>
    %11 = arith.addf %9, %10 : vector<16x128xf32>
    %12 = vector.extract_strided_slice %11 {offsets = [0, 0], sizes = [16, 96], strides = [1, 1]} : vector<16x128xf32> to vector<16x96xf32>
    %13 = arith.negf %12 : vector<16x96xf32>
    %14 = math.exp %13 : vector<16x96xf32>
    %cst_8 = arith.constant 1.000000e+00 : f32
    %15 = vector.broadcast %cst_8 : f32 to vector<16x96xf32>
    %16 = arith.addf %15, %14 : vector<16x96xf32>
    %17 = arith.divf %15, %16 : vector<16x96xf32>
    %18 = vector.extract_strided_slice %11 {offsets = [0, 96], sizes = [16, 32], strides = [1, 1]} : vector<16x128xf32> to vector<16x32xf32>
    %19 = math.tanh %18 : vector<16x32xf32>
    %20 = vector.extract_strided_slice %17 {offsets = [0, 0], sizes = [16, 32], strides = [1, 1]} : vector<16x96xf32> to vector<16x32xf32>
    %21 = vector.extract_strided_slice %17 {offsets = [0, 32], sizes = [16, 32], strides = [1, 1]} : vector<16x96xf32> to vector<16x32xf32>
    %22 = vector.extract_strided_slice %17 {offsets = [0, 64], sizes = [16, 32], strides = [1, 1]} : vector<16x96xf32> to vector<16x32xf32>
    %23 = arith.mulf %21, %8 : vector<16x32xf32>
    %24 = arith.mulf %20, %19 : vector<16x32xf32>
    %25 = arith.addf %23, %24 : vector<16x32xf32>
    %26 = math.tanh %25 : vector<16x32xf32>
    %27 = arith.mulf %22, %26 : vector<16x32xf32>
    %28 = vector.extract_strided_slice %27 {offsets = [0, 0], sizes = [16, 16], strides = [1, 1]} : vector<16x32xf32> to vector<16x16xf32>
    %29 = vector.extract_strided_slice %27 {offsets = [0, 16], sizes = [16, 16], strides = [1, 1]} : vector<16x32xf32> to vector<16x16xf32>
    %30 = vector.extract_strided_slice %6 {offsets = [16, 0], sizes = [16, 128], strides = [1, 1]} : vector<128x128xf32> to vector<16x128xf32>
    %cst_9 = arith.constant dense<0.000000e+00> : vector<16x128xf32>
    %31 = tpu.matmul %27, %1, %cst_9 {dimension_numbers = #tpu.dot_dimension_numbers<[1], [0], [0], [1], [0, 0, 1, 1], [], []>} : vector<16x32xf32>, vector<32x128xf32>, vector<16x128xf32> -> vector<16x128xf32>
    %32 = arith.addf %30, %31 : vector<16x128xf32>
    %33 = vector.extract_strided_slice %32 {offsets = [0, 0], sizes = [16, 96], strides = [1, 1]} : vector<16x128xf32> to vector<16x96xf32>
    %34 = arith.negf %33 : vector<16x96xf32>
    %35 = math.exp %34 : vector<16x96xf32>
    %cst_10 = arith.constant 1.000000e+00 : f32
    %36 = vector.broadcast %cst_10 : f32 to vector<16x96xf32>
    %37 = arith.addf %36, %35 : vector<16x96xf32>
    %38 = arith.divf %36, %37 : vector<16x96xf32>
    %39 = vector.extract_strided_slice %32 {offsets = [0, 96], sizes = [16, 32], strides = [1, 1]} : vector<16x128xf32> to vector<16x32xf32>
    %40 = math.tanh %39 : vector<16x32xf32>
    %41 = vector.extract_strided_slice %38 {offsets = [0, 0], sizes = [16, 32], strides = [1, 1]} : vector<16x96xf32> to vector<16x32xf32>
    %42 = vector.extract_strided_slice %38 {offsets = [0, 32], sizes = [16, 32], strides = [1, 1]} : vector<16x96xf32> to vector<16x32xf32>
    %43 = vector.extract_strided_slice %38 {offsets = [0, 64], sizes = [16, 32], strides = [1, 1]} : vector<16x96xf32> to vector<16x32xf32>
    %44 = arith.mulf %42, %25 : vector<16x32xf32>
    %45 = arith.mulf %41, %40 : vector<16x32xf32>
    %46 = arith.addf %44, %45 : vector<16x32xf32>
    %47 = math.tanh %46 : vector<16x32xf32>
    %48 = arith.mulf %43, %47 : vector<16x32xf32>
    %49 = vector.extract_strided_slice %48 {offsets = [0, 0], sizes = [16, 16], strides = [1, 1]} : vector<16x32xf32> to vector<16x16xf32>
    %50 = vector.extract_strided_slice %48 {offsets = [0, 16], sizes = [16, 16], strides = [1, 1]} : vector<16x32xf32> to vector<16x16xf32>
    %51 = vector.extract_strided_slice %6 {offsets = [32, 0], sizes = [16, 128], strides = [1, 1]} : vector<128x128xf32> to vector<16x128xf32>
    %cst_11 = arith.constant dense<0.000000e+00> : vector<16x128xf32>
    %52 = tpu.matmul %48, %1, %cst_11 {dimension_numbers = #tpu.dot_dimension_numbers<[1], [0], [0], [1], [0, 0, 1, 1], [], []>} : vector<16x32xf32>, vector<32x128xf32>, vector<16x128xf32> -> vector<16x128xf32>
    %53 = arith.addf %51, %52 : vector<16x128xf32>
    %54 = vector.extract_strided_slice %53 {offsets = [0, 0], sizes = [16, 96], strides = [1, 1]} : vector<16x128xf32> to vector<16x96xf32>
    %55 = arith.negf %54 : vector<16x96xf32>
    %56 = math.exp %55 : vector<16x96xf32>
    %cst_12 = arith.constant 1.000000e+00 : f32
    %57 = vector.broadcast %cst_12 : f32 to vector<16x96xf32>
    %58 = arith.addf %57, %56 : vector<16x96xf32>
    %59 = arith.divf %57, %58 : vector<16x96xf32>
    %60 = vector.extract_strided_slice %53 {offsets = [0, 96], sizes = [16, 32], strides = [1, 1]} : vector<16x128xf32> to vector<16x32xf32>
    %61 = math.tanh %60 : vector<16x32xf32>
    %62 = vector.extract_strided_slice %59 {offsets = [0, 0], sizes = [16, 32], strides = [1, 1]} : vector<16x96xf32> to vector<16x32xf32>
    %63 = vector.extract_strided_slice %59 {offsets = [0, 32], sizes = [16, 32], strides = [1, 1]} : vector<16x96xf32> to vector<16x32xf32>
    %64 = vector.extract_strided_slice %59 {offsets = [0, 64], sizes = [16, 32], strides = [1, 1]} : vector<16x96xf32> to vector<16x32xf32>
    %65 = arith.mulf %63, %46 : vector<16x32xf32>
    %66 = arith.mulf %62, %61 : vector<16x32xf32>
    %67 = arith.addf %65, %66 : vector<16x32xf32>
    %68 = math.tanh %67 : vector<16x32xf32>
    %69 = arith.mulf %64, %68 : vector<16x32xf32>
    %70 = vector.extract_strided_slice %69 {offsets = [0, 0], sizes = [16, 16], strides = [1, 1]} : vector<16x32xf32> to vector<16x16xf32>
    %71 = vector.extract_strided_slice %69 {offsets = [0, 16], sizes = [16, 16], strides = [1, 1]} : vector<16x32xf32> to vector<16x16xf32>
    %72 = vector.extract_strided_slice %6 {offsets = [48, 0], sizes = [16, 128], strides = [1, 1]} : vector<128x128xf32> to vector<16x128xf32>
    %cst_13 = arith.constant dense<0.000000e+00> : vector<16x128xf32>
    %73 = tpu.matmul %69, %1, %cst_13 {dimension_numbers = #tpu.dot_dimension_numbers<[1], [0], [0], [1], [0, 0, 1, 1], [], []>} : vector<16x32xf32>, vector<32x128xf32>, vector<16x128xf32> -> vector<16x128xf32>
    %74 = arith.addf %72, %73 : vector<16x128xf32>
    %75 = vector.extract_strided_slice %74 {offsets = [0, 0], sizes = [16, 96], strides = [1, 1]} : vector<16x128xf32> to vector<16x96xf32>
    %76 = arith.negf %75 : vector<16x96xf32>
    %77 = math.exp %76 : vector<16x96xf32>
    %cst_14 = arith.constant 1.000000e+00 : f32
    %78 = vector.broadcast %cst_14 : f32 to vector<16x96xf32>
    %79 = arith.addf %78, %77 : vector<16x96xf32>
    %80 = arith.divf %78, %79 : vector<16x96xf32>
    %81 = vector.extract_strided_slice %74 {offsets = [0, 96], sizes = [16, 32], strides = [1, 1]} : vector<16x128xf32> to vector<16x32xf32>
    %82 = math.tanh %81 : vector<16x32xf32>
    %83 = vector.extract_strided_slice %80 {offsets = [0, 0], sizes = [16, 32], strides = [1, 1]} : vector<16x96xf32> to vector<16x32xf32>
    %84 = vector.extract_strided_slice %80 {offsets = [0, 32], sizes = [16, 32], strides = [1, 1]} : vector<16x96xf32> to vector<16x32xf32>
    %85 = vector.extract_strided_slice %80 {offsets = [0, 64], sizes = [16, 32], strides = [1, 1]} : vector<16x96xf32> to vector<16x32xf32>
    %86 = arith.mulf %84, %67 : vector<16x32xf32>
    %87 = arith.mulf %83, %82 : vector<16x32xf32>
    %88 = arith.addf %86, %87 : vector<16x32xf32>
    %89 = math.tanh %88 : vector<16x32xf32>
    %90 = arith.mulf %85, %89 : vector<16x32xf32>
    %91 = vector.extract_strided_slice %90 {offsets = [0, 0], sizes = [16, 16], strides = [1, 1]} : vector<16x32xf32> to vector<16x16xf32>
    %92 = vector.extract_strided_slice %90 {offsets = [0, 16], sizes = [16, 16], strides = [1, 1]} : vector<16x32xf32> to vector<16x16xf32>
    %93 = vector.extract_strided_slice %6 {offsets = [64, 0], sizes = [16, 128], strides = [1, 1]} : vector<128x128xf32> to vector<16x128xf32>
    %cst_15 = arith.constant dense<0.000000e+00> : vector<16x128xf32>
    %94 = tpu.matmul %90, %1, %cst_15 {dimension_numbers = #tpu.dot_dimension_numbers<[1], [0], [0], [1], [0, 0, 1, 1], [], []>} : vector<16x32xf32>, vector<32x128xf32>, vector<16x128xf32> -> vector<16x128xf32>
    %95 = arith.addf %93, %94 : vector<16x128xf32>
    %96 = vector.extract_strided_slice %95 {offsets = [0, 0], sizes = [16, 96], strides = [1, 1]} : vector<16x128xf32> to vector<16x96xf32>
    %97 = arith.negf %96 : vector<16x96xf32>
    %98 = math.exp %97 : vector<16x96xf32>
    %cst_16 = arith.constant 1.000000e+00 : f32
    %99 = vector.broadcast %cst_16 : f32 to vector<16x96xf32>
    %100 = arith.addf %99, %98 : vector<16x96xf32>
    %101 = arith.divf %99, %100 : vector<16x96xf32>
    %102 = vector.extract_strided_slice %95 {offsets = [0, 96], sizes = [16, 32], strides = [1, 1]} : vector<16x128xf32> to vector<16x32xf32>
    %103 = math.tanh %102 : vector<16x32xf32>
    %104 = vector.extract_strided_slice %101 {offsets = [0, 0], sizes = [16, 32], strides = [1, 1]} : vector<16x96xf32> to vector<16x32xf32>
    %105 = vector.extract_strided_slice %101 {offsets = [0, 32], sizes = [16, 32], strides = [1, 1]} : vector<16x96xf32> to vector<16x32xf32>
    %106 = vector.extract_strided_slice %101 {offsets = [0, 64], sizes = [16, 32], strides = [1, 1]} : vector<16x96xf32> to vector<16x32xf32>
    %107 = arith.mulf %105, %88 : vector<16x32xf32>
    %108 = arith.mulf %104, %103 : vector<16x32xf32>
    %109 = arith.addf %107, %108 : vector<16x32xf32>
    %110 = math.tanh %109 : vector<16x32xf32>
    %111 = arith.mulf %106, %110 : vector<16x32xf32>
    %112 = vector.extract_strided_slice %111 {offsets = [0, 0], sizes = [16, 16], strides = [1, 1]} : vector<16x32xf32> to vector<16x16xf32>
    %113 = vector.extract_strided_slice %111 {offsets = [0, 16], sizes = [16, 16], strides = [1, 1]} : vector<16x32xf32> to vector<16x16xf32>
    %114 = vector.extract_strided_slice %6 {offsets = [80, 0], sizes = [16, 128], strides = [1, 1]} : vector<128x128xf32> to vector<16x128xf32>
    %cst_17 = arith.constant dense<0.000000e+00> : vector<16x128xf32>
    %115 = tpu.matmul %111, %1, %cst_17 {dimension_numbers = #tpu.dot_dimension_numbers<[1], [0], [0], [1], [0, 0, 1, 1], [], []>} : vector<16x32xf32>, vector<32x128xf32>, vector<16x128xf32> -> vector<16x128xf32>
    %116 = arith.addf %114, %115 : vector<16x128xf32>
    %117 = vector.extract_strided_slice %116 {offsets = [0, 0], sizes = [16, 96], strides = [1, 1]} : vector<16x128xf32> to vector<16x96xf32>
    %118 = arith.negf %117 : vector<16x96xf32>
    %119 = math.exp %118 : vector<16x96xf32>
    %cst_18 = arith.constant 1.000000e+00 : f32
    %120 = vector.broadcast %cst_18 : f32 to vector<16x96xf32>
    %121 = arith.addf %120, %119 : vector<16x96xf32>
    %122 = arith.divf %120, %121 : vector<16x96xf32>
    %123 = vector.extract_strided_slice %116 {offsets = [0, 96], sizes = [16, 32], strides = [1, 1]} : vector<16x128xf32> to vector<16x32xf32>
    %124 = math.tanh %123 : vector<16x32xf32>
    %125 = vector.extract_strided_slice %122 {offsets = [0, 0], sizes = [16, 32], strides = [1, 1]} : vector<16x96xf32> to vector<16x32xf32>
    %126 = vector.extract_strided_slice %122 {offsets = [0, 32], sizes = [16, 32], strides = [1, 1]} : vector<16x96xf32> to vector<16x32xf32>
    %127 = vector.extract_strided_slice %122 {offsets = [0, 64], sizes = [16, 32], strides = [1, 1]} : vector<16x96xf32> to vector<16x32xf32>
    %128 = arith.mulf %126, %109 : vector<16x32xf32>
    %129 = arith.mulf %125, %124 : vector<16x32xf32>
    %130 = arith.addf %128, %129 : vector<16x32xf32>
    %131 = math.tanh %130 : vector<16x32xf32>
    %132 = arith.mulf %127, %131 : vector<16x32xf32>
    %133 = vector.extract_strided_slice %132 {offsets = [0, 0], sizes = [16, 16], strides = [1, 1]} : vector<16x32xf32> to vector<16x16xf32>
    %134 = vector.extract_strided_slice %132 {offsets = [0, 16], sizes = [16, 16], strides = [1, 1]} : vector<16x32xf32> to vector<16x16xf32>
    %135 = vector.extract_strided_slice %6 {offsets = [96, 0], sizes = [16, 128], strides = [1, 1]} : vector<128x128xf32> to vector<16x128xf32>
    %cst_19 = arith.constant dense<0.000000e+00> : vector<16x128xf32>
    %136 = tpu.matmul %132, %1, %cst_19 {dimension_numbers = #tpu.dot_dimension_numbers<[1], [0], [0], [1], [0, 0, 1, 1], [], []>} : vector<16x32xf32>, vector<32x128xf32>, vector<16x128xf32> -> vector<16x128xf32>
    %137 = arith.addf %135, %136 : vector<16x128xf32>
    %138 = vector.extract_strided_slice %137 {offsets = [0, 0], sizes = [16, 96], strides = [1, 1]} : vector<16x128xf32> to vector<16x96xf32>
    %139 = arith.negf %138 : vector<16x96xf32>
    %140 = math.exp %139 : vector<16x96xf32>
    %cst_20 = arith.constant 1.000000e+00 : f32
    %141 = vector.broadcast %cst_20 : f32 to vector<16x96xf32>
    %142 = arith.addf %141, %140 : vector<16x96xf32>
    %143 = arith.divf %141, %142 : vector<16x96xf32>
    %144 = vector.extract_strided_slice %137 {offsets = [0, 96], sizes = [16, 32], strides = [1, 1]} : vector<16x128xf32> to vector<16x32xf32>
    %145 = math.tanh %144 : vector<16x32xf32>
    %146 = vector.extract_strided_slice %143 {offsets = [0, 0], sizes = [16, 32], strides = [1, 1]} : vector<16x96xf32> to vector<16x32xf32>
    %147 = vector.extract_strided_slice %143 {offsets = [0, 32], sizes = [16, 32], strides = [1, 1]} : vector<16x96xf32> to vector<16x32xf32>
    %148 = vector.extract_strided_slice %143 {offsets = [0, 64], sizes = [16, 32], strides = [1, 1]} : vector<16x96xf32> to vector<16x32xf32>
    %149 = arith.mulf %147, %130 : vector<16x32xf32>
    %150 = arith.mulf %146, %145 : vector<16x32xf32>
    %151 = arith.addf %149, %150 : vector<16x32xf32>
    %152 = math.tanh %151 : vector<16x32xf32>
    %153 = arith.mulf %148, %152 : vector<16x32xf32>
    %154 = vector.extract_strided_slice %153 {offsets = [0, 0], sizes = [16, 16], strides = [1, 1]} : vector<16x32xf32> to vector<16x16xf32>
    %155 = vector.extract_strided_slice %153 {offsets = [0, 16], sizes = [16, 16], strides = [1, 1]} : vector<16x32xf32> to vector<16x16xf32>
    %156 = vector.extract_strided_slice %6 {offsets = [112, 0], sizes = [16, 128], strides = [1, 1]} : vector<128x128xf32> to vector<16x128xf32>
    %cst_21 = arith.constant dense<0.000000e+00> : vector<16x128xf32>
    %157 = tpu.matmul %153, %1, %cst_21 {dimension_numbers = #tpu.dot_dimension_numbers<[1], [0], [0], [1], [0, 0, 1, 1], [], []>} : vector<16x32xf32>, vector<32x128xf32>, vector<16x128xf32> -> vector<16x128xf32>
    %158 = arith.addf %156, %157 : vector<16x128xf32>
    %159 = vector.extract_strided_slice %158 {offsets = [0, 0], sizes = [16, 96], strides = [1, 1]} : vector<16x128xf32> to vector<16x96xf32>
    %160 = arith.negf %159 : vector<16x96xf32>
    %161 = math.exp %160 : vector<16x96xf32>
    %cst_22 = arith.constant 1.000000e+00 : f32
    %162 = vector.broadcast %cst_22 : f32 to vector<16x96xf32>
    %163 = arith.addf %162, %161 : vector<16x96xf32>
    %164 = arith.divf %162, %163 : vector<16x96xf32>
    %165 = vector.extract_strided_slice %158 {offsets = [0, 96], sizes = [16, 32], strides = [1, 1]} : vector<16x128xf32> to vector<16x32xf32>
    %166 = math.tanh %165 : vector<16x32xf32>
    %167 = vector.extract_strided_slice %164 {offsets = [0, 0], sizes = [16, 32], strides = [1, 1]} : vector<16x96xf32> to vector<16x32xf32>
    %168 = vector.extract_strided_slice %164 {offsets = [0, 32], sizes = [16, 32], strides = [1, 1]} : vector<16x96xf32> to vector<16x32xf32>
    %169 = vector.extract_strided_slice %164 {offsets = [0, 64], sizes = [16, 32], strides = [1, 1]} : vector<16x96xf32> to vector<16x32xf32>
    %170 = arith.mulf %168, %151 : vector<16x32xf32>
    %171 = arith.mulf %167, %166 : vector<16x32xf32>
    %172 = arith.addf %170, %171 : vector<16x32xf32>
    %173 = math.tanh %172 : vector<16x32xf32>
    %174 = arith.mulf %169, %173 : vector<16x32xf32>
    %175 = vector.extract_strided_slice %174 {offsets = [0, 0], sizes = [16, 16], strides = [1, 1]} : vector<16x32xf32> to vector<16x16xf32>
    %176 = vector.extract_strided_slice %174 {offsets = [0, 16], sizes = [16, 16], strides = [1, 1]} : vector<16x32xf32> to vector<16x16xf32>
    %177 = tpu.concatenate %28, %49, %70, %91, %112, %133, %154, %175 in 0 : vector<16x16xf32>, vector<16x16xf32>, vector<16x16xf32>, vector<16x16xf32>, vector<16x16xf32>, vector<16x16xf32>, vector<16x16xf32>, vector<16x16xf32> -> vector<128x16xf32>
    %178 = tpu.concatenate %176, %155, %134, %113, %92, %71, %50, %29 in 0 : vector<16x16xf32>, vector<16x16xf32>, vector<16x16xf32>, vector<16x16xf32>, vector<16x16xf32>, vector<16x16xf32>, vector<16x16xf32>, vector<16x16xf32> -> vector<128x16xf32>
    %c48 = arith.constant 48 : index
    %c0_23 = arith.constant 0 : index
    %179 = vector.load %arg2[%c48, %c0_23] : memref<368x128xf32, #tpu.memory_space<vmem>>, vector<32x64xf32>
    %c80 = arith.constant 80 : index
    %c0_24 = arith.constant 0 : index
    %180 = vector.load %arg2[%c80, %c0_24] : memref<368x128xf32, #tpu.memory_space<vmem>>, vector<1x64xf32>
    %181 = vector.extract_strided_slice %179 {offsets = [0, 0], sizes = [16, 64], strides = [1, 1]} : vector<32x64xf32> to vector<16x64xf32>
    %cst_25 = arith.constant dense<0.000000e+00> : vector<128x64xf32>
    %182 = tpu.matmul %177, %181, %cst_25 {dimension_numbers = #tpu.dot_dimension_numbers<[1], [0], [0], [1], [0, 0, 1, 1], [], []>} : vector<128x16xf32>, vector<16x64xf32>, vector<128x64xf32> -> vector<128x64xf32>
    %183 = vector.extract_strided_slice %179 {offsets = [16, 0], sizes = [16, 64], strides = [1, 1]} : vector<32x64xf32> to vector<16x64xf32>
    %cst_26 = arith.constant dense<0.000000e+00> : vector<128x64xf32>
    %184 = tpu.matmul %178, %183, %cst_26 {dimension_numbers = #tpu.dot_dimension_numbers<[1], [0], [0], [1], [0, 0, 1, 1], [], []>} : vector<128x16xf32>, vector<16x64xf32>, vector<128x64xf32> -> vector<128x64xf32>
    %185 = arith.addf %182, %184 : vector<128x64xf32>
    %186 = vector.broadcast %180 : vector<1x64xf32> to vector<128x64xf32>
    %187 = arith.addf %185, %186 : vector<128x64xf32>
    %188 = vector.extract_strided_slice %187 {offsets = [0, 0], sizes = [128, 32], strides = [1, 1]} : vector<128x64xf32> to vector<128x32xf32>
    %189 = vector.shape_cast %188 : vector<128x32xf32> to vector<16x8x32xf32>
    %190 = vector.extract_strided_slice %187 {offsets = [0, 32], sizes = [128, 32], strides = [1, 1]} : vector<128x64xf32> to vector<128x32xf32>
    %191 = vector.shape_cast %190 : vector<128x32xf32> to vector<16x8x32xf32>
    %cst_27 = arith.constant 0.000000e+00 : f32
    %192 = vector.broadcast %cst_27 : f32 to vector<16x8x8xf32>
    %193 = vector.extract_strided_slice %189 {offsets = [0, 0, 0], sizes = [16, 8, 16], strides = [1, 1, 1]} : vector<16x8x32xf32> to vector<16x8x16xf32>
    %194 = vector.extract_strided_slice %191 {offsets = [0, 0, 0], sizes = [16, 8, 16], strides = [1, 1, 1]} : vector<16x8x32xf32> to vector<16x8x16xf32>
    "tpu.trace_start"() <{level = 10 : i32, message = "bqd,bkd->bqk"}> : () -> ()
    %cst_28 = arith.constant dense<0.000000e+00> : vector<16x8x8xf32>
    %195 = tpu.matmul %193, %194, %cst_28 {dimension_numbers = #tpu.dot_dimension_numbers<[2], [2], [1], [1], [0, 0, 0, 1, 1, 1], [0], [0]>} : vector<16x8x16xf32>, vector<16x8x16xf32>, vector<16x8x8xf32> -> vector<16x8x8xf32>
    "tpu.trace_stop"() : () -> ()
    %cst_29 = arith.constant dense<0xFF800000> : vector<16x8xf32>
    %196 = vector.multi_reduction <maximumf>, %195, %cst_29 [2] : vector<16x8x8xf32> to vector<16x8xf32>
    %197 = vector.shape_cast %196 : vector<16x8xf32> to vector<16x8x1xf32>
    %198 = vector.broadcast %197 : vector<16x8x1xf32> to vector<16x8x8xf32>
    %199 = arith.subf %195, %198 : vector<16x8x8xf32>
    %200 = math.exp %199 : vector<16x8x8xf32>
    %cst_30 = arith.constant dense<0.000000e+00> : vector<16x8xf32>
    %201 = vector.multi_reduction <add>, %200, %cst_30 [2] : vector<16x8x8xf32> to vector<16x8xf32>
    %202 = vector.shape_cast %201 : vector<16x8xf32> to vector<16x8x1xf32>
    %203 = vector.broadcast %202 : vector<16x8x1xf32> to vector<16x8x8xf32>
    %204 = arith.divf %200, %203 : vector<16x8x8xf32>
    %205 = arith.addf %192, %204 : vector<16x8x8xf32>
    %206 = vector.extract_strided_slice %189 {offsets = [0, 0, 16], sizes = [16, 8, 16], strides = [1, 1, 1]} : vector<16x8x32xf32> to vector<16x8x16xf32>
    %207 = vector.extract_strided_slice %191 {offsets = [0, 0, 16], sizes = [16, 8, 16], strides = [1, 1, 1]} : vector<16x8x32xf32> to vector<16x8x16xf32>
    "tpu.trace_start"() <{level = 10 : i32, message = "bqd,bkd->bqk"}> : () -> ()
    %cst_31 = arith.constant dense<0.000000e+00> : vector<16x8x8xf32>
    %208 = tpu.matmul %206, %207, %cst_31 {dimension_numbers = #tpu.dot_dimension_numbers<[2], [2], [1], [1], [0, 0, 0, 1, 1, 1], [0], [0]>} : vector<16x8x16xf32>, vector<16x8x16xf32>, vector<16x8x8xf32> -> vector<16x8x8xf32>
    "tpu.trace_stop"() : () -> ()
    %cst_32 = arith.constant dense<0xFF800000> : vector<16x8xf32>
    %209 = vector.multi_reduction <maximumf>, %208, %cst_32 [2] : vector<16x8x8xf32> to vector<16x8xf32>
    %210 = vector.shape_cast %209 : vector<16x8xf32> to vector<16x8x1xf32>
    %211 = vector.broadcast %210 : vector<16x8x1xf32> to vector<16x8x8xf32>
    %212 = arith.subf %208, %211 : vector<16x8x8xf32>
    %213 = math.exp %212 : vector<16x8x8xf32>
    %cst_33 = arith.constant dense<0.000000e+00> : vector<16x8xf32>
    %214 = vector.multi_reduction <add>, %213, %cst_33 [2] : vector<16x8x8xf32> to vector<16x8xf32>
    %215 = vector.shape_cast %214 : vector<16x8xf32> to vector<16x8x1xf32>
    %216 = vector.broadcast %215 : vector<16x8x1xf32> to vector<16x8x8xf32>
    %217 = arith.divf %213, %216 : vector<16x8x8xf32>
    %218 = arith.addf %205, %217 : vector<16x8x8xf32>
    %cst_34 = arith.constant 5.000000e-01 : f32
    %219 = vector.broadcast %cst_34 : f32 to vector<16x8x8xf32>
    %220 = arith.mulf %218, %219 : vector<16x8x8xf32>
    %221 = vector.shape_cast %220 : vector<16x8x8xf32> to vector<16x64xf32>
    %c0_35 = arith.constant 0 : index
    %c0_36 = arith.constant 0 : index
    %222 = vector.load %arg5[%c0_35, %c0_36] : memref<16x64xf32, #tpu.memory_space<vmem>>, vector<16x64xf32>
    tpu.vector_store %arg5[%c0_35, %c0_36], %221 {strides = array<i32>} : memref<16x64xf32, #tpu.memory_space<vmem>>, vector<16x64xf32>,
    %223 = vector.extract_strided_slice %221 {offsets = [0, 0], sizes = [2, 64], strides = [1, 1]} : vector<16x64xf32> to vector<2x64xf32>
    %224 = vector.extract_strided_slice %221 {offsets = [2, 0], sizes = [2, 64], strides = [1, 1]} : vector<16x64xf32> to vector<2x64xf32>
    %225 = arith.addf %223, %224 : vector<2x64xf32>
    %226 = vector.extract_strided_slice %221 {offsets = [4, 0], sizes = [2, 64], strides = [1, 1]} : vector<16x64xf32> to vector<2x64xf32>
    %227 = arith.addf %225, %226 : vector<2x64xf32>
    %228 = vector.extract_strided_slice %221 {offsets = [6, 0], sizes = [2, 64], strides = [1, 1]} : vector<16x64xf32> to vector<2x64xf32>
    %229 = arith.addf %227, %228 : vector<2x64xf32>
    %230 = vector.extract_strided_slice %221 {offsets = [8, 0], sizes = [2, 64], strides = [1, 1]} : vector<16x64xf32> to vector<2x64xf32>
    %231 = arith.addf %229, %230 : vector<2x64xf32>
    %232 = vector.extract_strided_slice %221 {offsets = [10, 0], sizes = [2, 64], strides = [1, 1]} : vector<16x64xf32> to vector<2x64xf32>
    %233 = arith.addf %231, %232 : vector<2x64xf32>
    %234 = vector.extract_strided_slice %221 {offsets = [12, 0], sizes = [2, 64], strides = [1, 1]} : vector<16x64xf32> to vector<2x64xf32>
    %235 = arith.addf %233, %234 : vector<2x64xf32>
    %236 = vector.extract_strided_slice %221 {offsets = [14, 0], sizes = [2, 64], strides = [1, 1]} : vector<16x64xf32> to vector<2x64xf32>
    %237 = arith.addf %235, %236 : vector<2x64xf32>
    %cst_37 = arith.constant 1.250000e-01 : f32
    %238 = vector.broadcast %cst_37 : f32 to vector<2x64xf32>
    %239 = arith.mulf %237, %238 : vector<2x64xf32>
    %240 = tpu.concatenate %239, %239, %239, %239, %239, %239, %239, %239 in 0 : vector<2x64xf32>, vector<2x64xf32>, vector<2x64xf32>, vector<2x64xf32>, vector<2x64xf32>, vector<2x64xf32>, vector<2x64xf32>, vector<2x64xf32> -> vector<16x64xf32>
    %241 = arith.mulf %221, %240 : vector<16x64xf32>
    %c88 = arith.constant 88 : index
    %c0_38 = arith.constant 0 : index
    %242 = vector.load %arg2[%c88, %c0_38] : memref<368x128xf32, #tpu.memory_space<vmem>>, vector<64x8xf32>
    %cst_39 = arith.constant dense<0.000000e+00> : vector<16x8xf32>
    %243 = tpu.matmul %241, %242, %cst_39 {dimension_numbers = #tpu.dot_dimension_numbers<[1], [0], [0], [1], [0, 0, 1, 1], [], []>} : vector<16x64xf32>, vector<64x8xf32>, vector<16x8xf32> -> vector<16x8xf32>
    %c152 = arith.constant 152 : index
    %c0_40 = arith.constant 0 : index
    %244 = vector.load %arg2[%c152, %c0_40] : memref<368x128xf32, #tpu.memory_space<vmem>>, vector<1x8xf32>
    %245 = vector.broadcast %244 : vector<1x8xf32> to vector<16x8xf32>
    %246 = arith.addf %243, %245 : vector<16x8xf32>
    %cst_41 = arith.constant 0.000000e+00 : f32
    %247 = vector.broadcast %cst_41 : f32 to vector<16x8xf32>
    %248 = arith.maximumf %246, %247 : vector<16x8xf32>
    %c160 = arith.constant 160 : index
    %c0_42 = arith.constant 0 : index
    %249 = vector.load %arg2[%c160, %c0_42] : memref<368x128xf32, #tpu.memory_space<vmem>>, vector<8x32xf32>
    %cst_43 = arith.constant dense<0.000000e+00> : vector<16x32xf32>
    %250 = tpu.matmul %248, %249, %cst_43 {dimension_numbers = #tpu.dot_dimension_numbers<[1], [0], [0], [1], [0, 0, 1, 1], [], []>} : vector<16x8xf32>, vector<8x32xf32>, vector<16x32xf32> -> vector<16x32xf32>
    %c168 = arith.constant 168 : index
    %c0_44 = arith.constant 0 : index
    %251 = vector.load %arg2[%c168, %c0_44] : memref<368x128xf32, #tpu.memory_space<vmem>>, vector<1x32xf32>
    %252 = vector.broadcast %251 : vector<1x32xf32> to vector<16x32xf32>
    %253 = arith.addf %250, %252 : vector<16x32xf32>
    %cst_45 = arith.constant 0.000000e+00 : f32
    %254 = vector.broadcast %cst_45 : f32 to vector<16x32xf32>
    %255 = arith.maximumf %253, %254 : vector<16x32xf32>
    %c176 = arith.constant 176 : index
    %c0_46 = arith.constant 0 : index
    %256 = vector.load %arg2[%c176, %c0_46] : memref<368x128xf32, #tpu.memory_space<vmem>>, vector<32x1xf32>
    %cst_47 = arith.constant dense<0.000000e+00> : vector<16x1xf32>
    %257 = tpu.matmul %255, %256, %cst_47 {dimension_numbers = #tpu.dot_dimension_numbers<[1], [0], [0], [1], [0, 0, 1, 1], [], []>} : vector<16x32xf32>, vector<32x1xf32>, vector<16x1xf32> -> vector<16x1xf32>
    %c208 = arith.constant 208 : index
    %c0_48 = arith.constant 0 : index
    %258 = vector.load %arg2[%c208, %c0_48] : memref<368x128xf32, #tpu.memory_space<vmem>>, vector<1x1xf32>
    %259 = vector.broadcast %258 : vector<1x1xf32> to vector<16x1xf32>
    %260 = arith.addf %257, %259 : vector<16x1xf32>
    %cst_49 = arith.constant 3.000000e+00 : f32
    %261 = vector.broadcast %cst_49 : f32 to vector<16x1xf32>
    %262 = arith.addf %260, %261 : vector<16x1xf32>
    %cst_50 = arith.constant 0.000000e+00 : f32
    %cst_51 = arith.constant 6.000000e+00 : f32
    %263 = vector.broadcast %cst_50 : f32 to vector<16x1xf32>
    %264 = arith.maximumf %263, %262 : vector<16x1xf32>
    %265 = vector.broadcast %cst_51 : f32 to vector<16x1xf32>
    %266 = arith.minimumf %265, %264 : vector<16x1xf32>
    %267 = arith.mulf %260, %266 : vector<16x1xf32>
    %cst_52 = arith.constant 0.166666672 : f32
    %268 = vector.broadcast %cst_52 : f32 to vector<16x1xf32>
    %269 = arith.mulf %267, %268 : vector<16x1xf32>
    %270 = vector.broadcast %269 : vector<16x1xf32> to vector<16x64xf32>
    %271 = arith.mulf %221, %270 : vector<16x64xf32>
    %272 = vector.extract_strided_slice %271 {offsets = [0, 0], sizes = [2, 64], strides = [1, 1]} : vector<16x64xf32> to vector<2x64xf32>
    %273 = vector.extract_strided_slice %271 {offsets = [2, 0], sizes = [2, 64], strides = [1, 1]} : vector<16x64xf32> to vector<2x64xf32>
    %274 = arith.addf %272, %273 : vector<2x64xf32>
    %275 = vector.extract_strided_slice %271 {offsets = [4, 0], sizes = [2, 64], strides = [1, 1]} : vector<16x64xf32> to vector<2x64xf32>
    %276 = arith.addf %274, %275 : vector<2x64xf32>
    %277 = vector.extract_strided_slice %271 {offsets = [6, 0], sizes = [2, 64], strides = [1, 1]} : vector<16x64xf32> to vector<2x64xf32>
    %278 = arith.addf %276, %277 : vector<2x64xf32>
    %279 = vector.extract_strided_slice %271 {offsets = [8, 0], sizes = [2, 64], strides = [1, 1]} : vector<16x64xf32> to vector<2x64xf32>
    %280 = arith.addf %278, %279 : vector<2x64xf32>
    %281 = vector.extract_strided_slice %271 {offsets = [10, 0], sizes = [2, 64], strides = [1, 1]} : vector<16x64xf32> to vector<2x64xf32>
    %282 = arith.addf %280, %281 : vector<2x64xf32>
    %283 = vector.extract_strided_slice %271 {offsets = [12, 0], sizes = [2, 64], strides = [1, 1]} : vector<16x64xf32> to vector<2x64xf32>
    %284 = arith.addf %282, %283 : vector<2x64xf32>
    %285 = vector.extract_strided_slice %271 {offsets = [14, 0], sizes = [2, 64], strides = [1, 1]} : vector<16x64xf32> to vector<2x64xf32>
    %286 = arith.addf %284, %285 : vector<2x64xf32>
    %cst_53 = arith.constant 1.250000e-01 : f32
    %287 = vector.broadcast %cst_53 : f32 to vector<2x64xf32>
    %288 = arith.mulf %286, %287 : vector<2x64xf32>
    %c0_54 = arith.constant 0 : index
    %c0_55 = arith.constant 0 : index
    %289 = vector.load %arg4[%c0_54, %c0_55] : memref<2x64xf32, #tpu.memory_space<vmem>>, vector<2x64xf32>
    tpu.vector_store %arg4[%c0_54, %c0_55], %288 {strides = array<i32>} : memref<2x64xf32, #tpu.memory_space<vmem>>, vector<2x64xf32>,
    %c216 = arith.constant 216 : index
    %c0_56 = arith.constant 0 : index
    %290 = vector.load %arg2[%c216, %c0_56] : memref<368x128xf32, #tpu.memory_space<vmem>>, vector<64x32xf32>
    %cst_57 = arith.constant dense<0.000000e+00> : vector<2x32xf32>
    %291 = tpu.matmul %288, %290, %cst_57 {dimension_numbers = #tpu.dot_dimension_numbers<[1], [0], [0], [1], [0, 0, 1, 1], [], []>} : vector<2x64xf32>, vector<64x32xf32>, vector<2x32xf32> -> vector<2x32xf32>
    %c280 = arith.constant 280 : index
    %c0_58 = arith.constant 0 : index
    %292 = vector.load %arg2[%c280, %c0_58] : memref<368x128xf32, #tpu.memory_space<vmem>>, vector<1x32xf32>
    %293 = vector.broadcast %292 : vector<1x32xf32> to vector<2x32xf32>
    %294 = arith.addf %291, %293 : vector<2x32xf32>
    %cst_59 = arith.constant 0.000000e+00 : f32
    %295 = vector.broadcast %cst_59 : f32 to vector<2x32xf32>
    %296 = arith.maximumf %294, %295 : vector<2x32xf32>
    %c288 = arith.constant 288 : index
    %c0_60 = arith.constant 0 : index
    %297 = vector.load %arg2[%c288, %c0_60] : memref<368x128xf32, #tpu.memory_space<vmem>>, vector<32x32xf32>
    %cst_61 = arith.constant dense<0.000000e+00> : vector<2x32xf32>
    %298 = tpu.matmul %296, %297, %cst_61 {dimension_numbers = #tpu.dot_dimension_numbers<[1], [0], [0], [1], [0, 0, 1, 1], [], []>} : vector<2x32xf32>, vector<32x32xf32>, vector<2x32xf32> -> vector<2x32xf32>
    %c320 = arith.constant 320 : index
    %c0_62 = arith.constant 0 : index
    %299 = vector.load %arg2[%c320, %c0_62] : memref<368x128xf32, #tpu.memory_space<vmem>>, vector<1x32xf32>
    %300 = vector.broadcast %299 : vector<1x32xf32> to vector<2x32xf32>
    %301 = arith.addf %298, %300 : vector<2x32xf32>
    %cst_63 = arith.constant 0.000000e+00 : f32
    %302 = vector.broadcast %cst_63 : f32 to vector<2x32xf32>
    %303 = arith.maximumf %301, %302 : vector<2x32xf32>
    %c328 = arith.constant 328 : index
    %c0_64 = arith.constant 0 : index
    %304 = vector.load %arg2[%c328, %c0_64] : memref<368x128xf32, #tpu.memory_space<vmem>>, vector<32x4xf32>
    %cst_65 = arith.constant dense<0.000000e+00> : vector<2x4xf32>
    %305 = tpu.matmul %303, %304, %cst_65 {dimension_numbers = #tpu.dot_dimension_numbers<[1], [0], [0], [1], [0, 0, 1, 1], [], []>} : vector<2x32xf32>, vector<32x4xf32>, vector<2x4xf32> -> vector<2x4xf32>
    %c360 = arith.constant 360 : index
    %c0_66 = arith.constant 0 : index
    %306 = vector.load %arg2[%c360, %c0_66] : memref<368x128xf32, #tpu.memory_space<vmem>>, vector<1x4xf32>
    %307 = vector.broadcast %306 : vector<1x4xf32> to vector<2x4xf32>
    %308 = arith.addf %305, %307 : vector<2x4xf32>
    %c0_67 = arith.constant 0 : index
    %c0_68 = arith.constant 0 : index
    %309 = vector.load %arg3[%c0_67, %c0_68] : memref<2x4xf32, #tpu.memory_space<vmem>>, vector<2x4xf32>
    tpu.vector_store %arg3[%c0_67, %c0_68], %308 {strides = array<i32>} : memref<2x4xf32, #tpu.memory_space<vmem>>, vector<2x4xf32>,
    return
  }
  func.func @transform_0(%arg0: i32) -> (i32, i32) {
    %c0_i32 = arith.constant 0 : i32
    %c0_i32_0 = arith.constant 0 : i32
    %c0_i32_1 = arith.constant 0 : i32
    return %c0_i32, %c0_i32_0 : i32, i32
  }
  func.func @transform_1(%arg0: i32) -> (i32, i32) {
    %c0_i32 = arith.constant 0 : i32
    %c0_i32_0 = arith.constant 0 : i32
    %c0_i32_1 = arith.constant 0 : i32
    return %c0_i32, %c0_i32_0 : i32, i32
  }
  func.func @transform_2(%arg0: i32) -> (i32, i32) {
    %c0_i32 = arith.constant 0 : i32
    %c0_i32_0 = arith.constant 0 : i32
    %c0_i32_1 = arith.constant 0 : i32
    return %c0_i32, %c0_i32_0 : i32, i32
  }
  func.func @transform_3(%arg0: i32) -> (i32, i32) {
    %c0_i32 = arith.constant 0 : i32
    %c0_i32_0 = arith.constant 0 : i32
    %c0_i32_1 = arith.constant 0 : i32
    return %c0_i32, %c0_i32_0 : i32, i32
  }
  func.func @transform_4(%arg0: i32) -> (i32, i32) {
    %c0_i32 = arith.constant 0 : i32
    %c0_i32_0 = arith.constant 0 : i32
    %c0_i32_1 = arith.constant 0 : i32
    return %c0_i32, %c0_i32_0 : i32, i32
  }
}

</mosaic_0001>

<bundles_post_ra>
// kernel: fwd.1
= control target key start
LH: loop header
LB: loop body
LE: loop exit
PB: predicated region body
PF: predicated region fallthrough
CT: control target
= control target key end

     0   :  { %vm90_vm0 = vcmask 1041408   ;;  %vm41_vm1 = vcmask 15360   ;;  %s8133_s0 = inlined_call_operand.vmem [shape: f32[128,2], index: 0, kind: input, shape index: {}]   ;;  %s8134_s1 = inlined_call_operand.vmem [shape: f32[368,128], index: 1, kind: input, shape index: {}]   ;;  %s8135_s2 = inlined_call_operand.hbm [shape: f32[2,4], index: 2, kind: output, shape index: {0}]   ;;  %s8136_s3 = inlined_call_operand.vmem [shape: f32[2,64], index: 3, kind: output, shape index: {1}]   ;;  %s8137_s4 = inlined_call_operand.vmem [shape: f32[16,64], index: 4, kind: output, shape index: {2}]  }
   0x1   :  { %v6705_v0 = vld [vmem:[%s8134_s1 + $0x20] sm:$0xff]  ;;  %v6713_v2 = vld [vmem:[%s8134_s1 + $0x18] sm:$0xff]  ;;  %v22_v4 = vld [vmem:[%s8133_s0 + $0x8] sm:$0xff] }
   0x2   :  { %v15_v1 = vld [vmem:[%s8134_s1] sm:$0x3]  ;;  %5983 = vmatprep.subr.mxu1 %v6705_v0  ;;  %v6728_v5 = vld [vmem:[%s8134_s1 + $0x10] sm:$0xff] }
   0x3   :  { %5957 = vmatprep.subr.msk.mxu0 %vm90_vm0, %v15_v1  ;;  %v21_v3 = vld [vmem:[%s8133_s0] sm:$0xff]  ;;  %5984 = vmatpush3.msra.mxu1 %v6705_v0 }
   0x4   :  { %5958 = vmatpush3.msk.msra.mxu0 %vm90_vm0, %v15_v1 }
   0x5   :  { %10 = vsyncpa [#allocation3], 0  ;;  %5985 = vmatprep.subr.mxu1 %v6713_v2  ;;  %5959 = vmatprep.mubr.msk.f32.mxu0 %vm41_vm1, %v21_v3  ;;  %v6737_v6 = vld [vmem:[%s8134_s1 + $0x8] sm:$0xff]  ;;  %v6660_v7 = vmov 0.0   ;;  %s6661_s5 = smov 32   ;;  %v23_v37 = vld [vmem:[%s8133_s0 + $0x10] sm:$0xff] }
   0x6   :  { %5986 = vmatpush3.msra.mxu1 %v6713_v2  ;;  %5960 = vmatmul.mubr.msk.f32.vlgmr.msra.gmra.mxu0 %vm41_vm1, %v22_v4  ;;  %v6766_v9 = vld [vmem:[%s8134_s1 + $0x28] ss:$0 sm:$0xff]  ;;  %v24_v40 = vld [vmem:[%s8133_s0 + $0x18] sm:$0xff]  ;;  %s6662_s10 = smov 64   ;;  %vm239_vm2 = vcmask 261120   ;;  %vm1352_vm3 = vcmask 130048  }
   0x7   :  { %5987 = vmatprep.subr.mxu1 %v6728_v5  ;;  %5991 = vmatprep.mubr.f32.mxu1 %v6660_v7  ;;  %s6663_s18 = smov 48   ;;  %vm6664_vm4 = vmmov 0   ;;  %s6665_s20 = smov 96   ;;  %vm2963_vm5 = vcmask 64512   ;;  %vm4944_vm6 = vcmask 195584   ;;  %vm4949_vm7 = vcmask 326656  }
   0x8   :  { %5988 = vmatpush3.msra.mxu1 %v6728_v5  ;;  %6027 = vmatprep.subr.mxu0 %v6705_v0  ;;  %s6666_s21 = smov 80   ;;  %s6667_s22 = smov 112   ;;  %vm4952_vm8 = vcmask 392192   ;;  %vm4955_vm9 = vcmask 457728   ;;  %vm4958_vm10 = vcmask 523264   ;;  %vm4991_vm11 = vcmask 1043456  }
   0x9   :  { %5989 = vmatprep.subr.mxu1 %v6737_v6  ;;  %6028 = vmatpush3.msra.mxu0 %v6705_v0  ;;  %s6670_s23 = smov 16   ;;  %s6671_s24 = smov 8   ;;  %vm4993_vm12 = vcmask 1045504   ;;  %vm5316_vm13 = vcmask 517120   ;;  %vm5570_vm14 = vcmask 25600  }
   0xa   :  { %5990 = vmatpush3.msra.mxu1 %v6737_v6  ;;  %6029 = vmatprep.subr.mxu0 %v6713_v2  ;;  %s6672_s25 = smov 40   ;;  %s6673_s26 = smov 24  }
   0xb   :  { %5992 = vmatmul.mubr.f32.vlgmr.msra.gmra.mxu1 %v6660_v7  ;;  %5994 = vmatprep.subr.mxu1 %v6705_v0  ;;  %s6674_s27 = smov 56  }
   0xc   :  { %5995 = vmatpush3.msra.mxu1 %v6705_v0  ;;  %6030 = vmatpush3.msra.mxu0 %v6713_v2 }
   0xd   :  { %5996 = vmatprep.subr.mxu1 %v6713_v2  ;;  %6031 = vmatprep.subr.mxu0 %v6728_v5 }
   0xe   :  { %5997 = vmatpush3.msra.mxu1 %v6713_v2  ;;  %6032 = vmatpush3.msra.mxu0 %v6728_v5 }
   0xf   :  { %5998 = vmatprep.subr.mxu1 %v6728_v5  ;;  %6033 = vmatprep.subr.mxu0 %v6737_v6 }
  0x10   :  { %5999 = vmatpush3.msra.mxu1 %v6728_v5  ;;  %6034 = vmatpush3.msra.mxu0 %v6737_v6 }
  0x11   :  { %6000 = vmatprep.subr.mxu1 %v6737_v6  ;;  %6049 = vmatprep.subr.mxu0 %v6705_v0 }
  0x12   :  { %6001 = vmatpush3.msra.mxu1 %v6737_v6  ;;  %5962 = vmatprep.mubr.msk.f32.mxu0 %vm41_vm1, %v23_v37 }
  0x13   :  { %6005 = vmatprep.subr.mxu1 %v6705_v0  ;;  %5963 = vmatmul.mubr.msk.f32.gmra.mxu0 %vm41_vm1, %v24_v40 }
  0xc6   :  { %v5961_v8 = vpop.f32.mrf.mxu0 }
  0xc7   :  { %v166_v13 = vadd.f32 %v5961_v8, %v6766_v9 }
  0xc8   :  { %v160_v10 = vpop.f32.mrf.mxu0 }
  0xc9   :  { %v161_v12 = vadd.f32 %v6766_v9, %v160_v10 }
  0xcb   :  { %v5993_v11 = vpop.f32.mrf.mxu1 }
  0xcc   :  { %v319_v16 = vadd.f32 %v5993_v11, %v166_v13 }
  0xcd   :  { %v309_v14 = vpop.f32.mrf.mxu1 }
  0xce   :  { %v318_v15 = vadd.f32 %v309_v14, %v161_v12  ;;  %v5613_v20 = vmul.f32 -1.442695, %v319_v16 }
  0xd0   :  { %6382 = vtanh.f32 %v318_v15  ;;  %v5612_v19 = vmul.f32 -1.442695, %v318_v15 }
  0xd1   :  { %6384 = vtanh.f32 %v319_v16 }
  0xd2   :  { %6386 = vpow2.f32 %v5612_v19 }
  0xd3   :  { %6388 = vpow2.f32 %v5613_v20  ;;  %v5964_v47 = vpop.f32.mrf.mxu0 }
  0xd4   :  { %v176_v48 = vadd.f32 %v5964_v47, %v6766_v9 }
  0xd5   :  { %v170_v49 = vpop.f32.mrf.mxu0 }
  0xd6   :  { %v171_v51 = vadd.f32 %v6766_v9, %v170_v49 }
  0xdd   :  { %v6383_v17 = vpop.eup %6382 }
  0xde   :  { %338 = vrot.lane.b32.xlu0 %v6383_v17, %s6661_s5  ;;  %v6385_v18 = vpop.eup %6384  ;;  %v25_v17 = vld [vmem:[%s8133_s0 + $0x20] sm:$0xff] }
  0xdf   :  { %v6387_v21 = vpop.eup %6386  ;;  %5965 = vmatprep.mubr.msk.f32.mxu0 %vm41_vm1, %v25_v17 }
  0xe0   :  { %v326_v22 = vadd.f32 1.0, %v6387_v21  ;;  %v6389_v23 = vpop.eup %6388 }
  0xe1   :  { %v327_v24 = vadd.f32 1.0, %v6389_v23 }
  0xe2   :  { %340 = vrot.lane.b32.xlu0 %v6385_v18, %s6661_s5  ;;  %6390 = vrcp.f32 %v326_v22  ;;  %v26_v18 = vld [vmem:[%s8133_s0 + $0x28] sm:$0xff] }
  0xe3   :  { %6392 = vrcp.f32 %v327_v24  ;;  %5966 = vmatmul.mubr.msk.f32.gmra.mxu0 %vm41_vm1, %v26_v18 }
  0xef   :  { %v6391_v25 = vpop.eup %6390 }
  0xf0   :  { %v6393_v28 = vpop.eup %6392  ;;  %v334_v31 = vmul.f32 0.0, %v6391_v25 }
  0xf1   :  { %v335_v34 = vmul.f32 0.0, %v6393_v28 }
 0x150   :  { %v339_v26 = vpop.permute.xlu0 %338 }
 0x151   :  { %v344_v27 = vmul.f32 %v6391_v25, %v339_v26 }
 0x153   :  { %348 = vrot.lane.b32.xlu1 %v344_v27, %s6661_s5 }
 0x154   :  { %v341_v29 = vpop.permute.xlu0 %340 }
 0x155   :  { %v345_v30 = vmul.f32 %v6393_v28, %v341_v29 }
 0x157   :  { %350 = vrot.lane.b32.xlu1 %v345_v30, %s6661_s5 }
 0x1a3   :  { %v5967_v27 = vpop.f32.mrf.mxu0 }
 0x1a5   :  { %v180_v29 = vpop.f32.mrf.mxu0 }
 0x1c5   :  { %v349_v32 = vpop.permute.xlu1 %348 }
 0x1c6   :  { %v6774_v33 = vadd.f32 %v349_v32, %v334_v31  ;;  %v181_v31 = vadd.f32 %v6766_v9, %v180_v29 }
 0x1c8   :  { %6394 = vtanh.f32 %v6774_v33 }
 0x1c9   :  { %v351_v35 = vpop.permute.xlu1 %350 }
 0x1ca   :  { %v355_v36 = vadd.f32 %v351_v35, %v335_v34 }
 0x1cc   :  { %6396 = vtanh.f32 %v355_v36 }
 0x1d5   :  { %v6395_v38 = vpop.eup %6394 }
 0x1d6   :  { %360 = vrot.lane.b32.xlu0 %v6395_v38, %s6661_s5 }
 0x1d9   :  { %v6397_v39 = vpop.eup %6396 }
 0x1da   :  { %362 = vrot.lane.b32.xlu1 %v6397_v39, %s6661_s5 }
 0x248   :  { %v361_v41 = vpop.permute.xlu0 %360 }
 0x249   :  { %v6787_v42 = vmul.f32 %v6391_v25, %v361_v41 }
 0x24b   :  { %370 = vrot.lane.b32.xlu0 %v6787_v42, %s6662_s10 }
 0x24c   :  { %v363_v43 = vpop.permute.xlu1 %362 }
 0x24d   :  { %v6791_v44 = vmul.f32 %v6393_v28, %v363_v43  ;;  %v186_v28 = vadd.f32 %v5967_v27, %v6766_v9 }
 0x24f   :  { %372 = vrot.lane.b32.xlu1 %v6791_v44, %s6662_s10 }
 0x2bd   :  { %v6795_v45 = vpop.permute.xlu0 %370 }
 0x2be   :  { %6002 = vmatprep.mubr.msk.f32.mxu1 %vm239_vm2, %v6795_v45 }
 0x2c1   :  { %v6799_v46 = vpop.permute.xlu1 %372 }
 0x2c2   :  { %6003 = vmatmul.mubr.msk.f32.vlgmr.msra.gmra.mxu1 %vm239_vm2, %v6799_v46 }
 0x2c3   :  { %6006 = vmatpush3.msra.mxu1 %v6705_v0 }
 0x2c4   :  { %6007 = vmatprep.subr.mxu1 %v6713_v2 }
 0x2c5   :  { %6008 = vmatpush3.msra.mxu1 %v6713_v2 }
 0x2c6   :  { %6009 = vmatprep.subr.mxu1 %v6728_v5 }
 0x2c7   :  { %6010 = vmatpush3.msra.mxu1 %v6728_v5 }
 0x2c8   :  { %6011 = vmatprep.subr.mxu1 %v6737_v6 }
 0x2c9   :  { %6012 = vmatpush3.msra.mxu1 %v6737_v6 }
 0x2ca   :  { %6016 = vmatprep.subr.mxu1 %v6705_v0 }
 0x382   :  { %v6004_v50 = vpop.f32.mrf.mxu1 }
 0x383   :  { %v454_v52 = vadd.f32 %v6004_v50, %v176_v48 }
 0x384   :  { %v444_v53 = vpop.f32.mrf.mxu1 }
 0x385   :  { %6398 = vtanh.f32 %v454_v52  ;;  %v453_v54 = vadd.f32 %v444_v53, %v171_v51  ;;  %v5617_v57 = vmul.f32 -1.442695, %v454_v52 }
 0x387   :  { %6400 = vtanh.f32 %v453_v54  ;;  %v5616_v58 = vmul.f32 -1.442695, %v453_v54 }
 0x388   :  { %6402 = vpow2.f32 %v5617_v57 }
 0x389   :  { %6404 = vpow2.f32 %v5616_v58 }
 0x392   :  { %v6399_v55 = vpop.eup %6398 }
 0x393   :  { %475 = vrot.lane.b32.xlu1 %v6399_v55, %s6661_s5 }
 0x394   :  { %v6401_v56 = vpop.eup %6400 }
 0x395   :  { %473 = vrot.lane.b32.xlu0 %v6401_v56, %s6661_s5  ;;  %v6403_v59 = vpop.eup %6402 }
 0x396   :  { %v6405_v60 = vpop.eup %6404  ;;  %v462_v61 = vadd.f32 1.0, %v6403_v59  ;;  %v27_v59 = vld [vmem:[%s8133_s0 + $0x30] sm:$0xff] }
 0x397   :  { %v461_v62 = vadd.f32 1.0, %v6405_v60  ;;  %v28_v60 = vld [vmem:[%s8133_s0 + $0x38] sm:$0xff]  ;;  %5968 = vmatprep.mubr.msk.f32.mxu0 %vm41_vm1, %v27_v59 }
 0x398   :  { %6406 = vrcp.f32 %v462_v61  ;;  %5969 = vmatmul.mubr.msk.f32.gmra.mxu0 %vm41_vm1, %v28_v60 }
 0x399   :  { %6408 = vrcp.f32 %v461_v62 }
 0x3a5   :  { %v6407_v63 = vpop.eup %6406 }
 0x3a6   :  { %v6409_v4 = vpop.eup %6408  ;;  %v470_v11 = vmul.f32 %v6407_v63, %v355_v36 }
 0x3a7   :  { %v469_v14 = vmul.f32 %v6409_v4, %v6774_v33 }
 0x405   :  { %v476_v1 = vpop.permute.xlu1 %475 }
 0x406   :  { %v480_v3 = vmul.f32 %v6407_v63, %v476_v1 }
 0x407   :  { %v474_v8 = vpop.permute.xlu0 %473 }
 0x408   :  { %485 = vrot.lane.b32.xlu1 %v480_v3, %s6661_s5  ;;  %v479_v10 = vmul.f32 %v6409_v4, %v474_v8 }
 0x40a   :  { %483 = vrot.lane.b32.xlu0 %v479_v10, %s6661_s5 }
 0x47a   :  { %v486_v12 = vpop.permute.xlu1 %485 }
 0x47b   :  { %v6817_v13 = vadd.f32 %v486_v12, %v470_v11  ;;  %v5970_v11 = vpop.f32.mrf.mxu0 }
 0x47c   :  { %v484_v15 = vpop.permute.xlu0 %483  ;;  %v196_v12 = vadd.f32 %v5970_v11, %v6766_v9 }
 0x47d   :  { %6410 = vtanh.f32 %v6817_v13  ;;  %v6821_v16 = vadd.f32 %v484_v15, %v469_v14 }
 0x47f   :  { %6412 = vtanh.f32 %v6821_v16 }
 0x48a   :  { %v6411_v19 = vpop.eup %6410 }
 0x48b   :  { %497 = vrot.lane.b32.xlu1 %v6411_v19, %s6661_s5 }
 0x48c   :  { %v6413_v20 = vpop.eup %6412 }
 0x48d   :  { %495 = vrot.lane.b32.xlu0 %v6413_v20, %s6661_s5 }
 0x4fd   :  { %v498_v21 = vpop.permute.xlu1 %497 }
 0x4fe   :  { %v6834_v22 = vmul.f32 %v6407_v63, %v498_v21 }
 0x4ff   :  { %v496_v23 = vpop.permute.xlu0 %495 }
 0x500   :  { %507 = vrot.lane.b32.xlu1 %v6834_v22, %s6662_s10  ;;  %v6838_v24 = vmul.f32 %v6409_v4, %v496_v23 }
 0x502   :  { %505 = vrot.lane.b32.xlu0 %v6838_v24, %s6662_s10 }
 0x572   :  { %v6844_v26 = vpop.permute.xlu1 %507 }
 0x574   :  { %v6842_v25 = vpop.permute.xlu0 %505 }
 0x575   :  { %6013 = vmatprep.mubr.msk.f32.mxu1 %vm239_vm2, %v6842_v25 }
 0x576   :  { %6014 = vmatmul.mubr.msk.f32.vlgmr.msra.gmra.mxu1 %vm239_vm2, %v6844_v26 }
 0x577   :  { %6017 = vmatpush3.msra.mxu1 %v6705_v0 }
 0x578   :  { %6018 = vmatprep.subr.mxu1 %v6713_v2 }
 0x579   :  { %6019 = vmatpush3.msra.mxu1 %v6713_v2 }
 0x57a   :  { %6020 = vmatprep.subr.mxu1 %v6728_v5 }
 0x57b   :  { %6021 = vmatpush3.msra.mxu1 %v6728_v5 }
 0x57c   :  { %6022 = vmatprep.subr.mxu1 %v6737_v6 }
 0x57d   :  { %6023 = vmatpush3.msra.mxu1 %v6737_v6 }
 0x57e   :  { %6038 = vmatprep.subr.mxu1 %v6705_v0 }
 0x636   :  { %v6015_v30 = vpop.f32.mrf.mxu1 }
 0x637   :  { %v589_v32 = vadd.f32 %v6015_v30, %v186_v28 }
 0x638   :  { %v579_v33 = vpop.f32.mrf.mxu1 }
 0x639   :  { %6414 = vtanh.f32 %v589_v32  ;;  %v588_v34 = vadd.f32 %v579_v33, %v181_v31  ;;  %v5621_v37 = vmul.f32 -1.442695, %v589_v32 }
 0x63b   :  { %6416 = vtanh.f32 %v588_v34  ;;  %v5620_v38 = vmul.f32 -1.442695, %v588_v34 }
 0x63c   :  { %6418 = vpow2.f32 %v5621_v37 }
 0x63d   :  { %6420 = vpow2.f32 %v5620_v38 }
 0x646   :  { %v6415_v35 = vpop.eup %6414 }
 0x647   :  { %610 = vrot.lane.b32.xlu1 %v6415_v35, %s6661_s5 }
 0x648   :  { %v6417_v36 = vpop.eup %6416 }
 0x649   :  { %608 = vrot.lane.b32.xlu0 %v6417_v36, %s6661_s5  ;;  %v6419_v39 = vpop.eup %6418 }
 0x64a   :  { %v6421_v40 = vpop.eup %6420  ;;  %v597_v41 = vadd.f32 1.0, %v6419_v39 }
 0x64b   :  { %v596_v43 = vadd.f32 1.0, %v6421_v40 }
 0x64c   :  { %6422 = vrcp.f32 %v597_v41 }
 0x64d   :  { %6424 = vrcp.f32 %v596_v43 }
 0x659   :  { %v6423_v47 = vpop.eup %6422 }
 0x65a   :  { %v6425_v50 = vpop.eup %6424  ;;  %v605_v53 = vmul.f32 %v6423_v47, %v6817_v13  ;;  %v190_v13 = vpop.f32.mrf.mxu0 }
 0x65b   :  { %v604_v56 = vmul.f32 %v6425_v50, %v6821_v16  ;;  %v191_v15 = vadd.f32 %v6766_v9, %v190_v13 }
 0x6b9   :  { %v611_v48 = vpop.permute.xlu1 %610 }
 0x6ba   :  { %v615_v49 = vmul.f32 %v6423_v47, %v611_v48  ;;  %v30_v48 = vld [vmem:[%s8133_s0 + $0x48] sm:$0xff] }
 0x6bb   :  { %v609_v51 = vpop.permute.xlu0 %608 }
 0x6bc   :  { %620 = vrot.lane.b32.xlu1 %v615_v49, %s6661_s5  ;;  %v614_v52 = vmul.f32 %v6425_v50, %v609_v51  ;;  %v31_v49 = vld [vmem:[%s8133_s0 + $0x50] sm:$0xff]  ;;  %v33_v51 = vld [vmem:[%s8133_s0 + $0x60] sm:$0xff] }
 0x6be   :  { %618 = vrot.lane.b32.xlu0 %v614_v52, %s6661_s5 }
 0x72e   :  { %v621_v54 = vpop.permute.xlu1 %620 }
 0x72f   :  { %v6865_v55 = vadd.f32 %v621_v54, %v605_v53  ;;  %v34_v53 = vld [vmem:[%s8133_s0 + $0x68] sm:$0xff]  ;;  %v35_v54 = vld [vmem:[%s8133_s0 + $0x70] sm:$0xff] }
 0x730   :  { %v619_v57 = vpop.permute.xlu0 %618 }
 0x731   :  { %6426 = vtanh.f32 %v6865_v55  ;;  %v6869_v58 = vadd.f32 %v619_v57, %v604_v56  ;;  %v36_v56 = vld [vmem:[%s8133_s0 + $0x78] sm:$0xff] }
 0x733   :  { %6428 = vtanh.f32 %v6869_v58 }
 0x73e   :  { %v6427_v61 = vpop.eup %6426 }
 0x73f   :  { %632 = vrot.lane.b32.xlu1 %v6427_v61, %s6661_s5 }
 0x740   :  { %v6429_v62 = vpop.eup %6428 }
 0x741   :  { %630 = vrot.lane.b32.xlu0 %v6429_v62, %s6661_s5 }
 0x7b1   :  { %v633_v63 = vpop.permute.xlu1 %632 }
 0x7b2   :  { %v6882_v1 = vmul.f32 %v6423_v47, %v633_v63  ;;  %v29_v47 = vld [vmem:[%s8133_s0 + $0x40] sm:$0xff] }
 0x7b3   :  { %v631_v3 = vpop.permute.xlu0 %630  ;;  %5971 = vmatprep.mubr.msk.f32.mxu0 %vm41_vm1, %v29_v47 }
 0x7b4   :  { %642 = vrot.lane.b32.xlu1 %v6882_v1, %s6662_s10  ;;  %v6886_v4 = vmul.f32 %v6425_v50, %v631_v3  ;;  %5972 = vmatmul.mubr.msk.f32.gmra.mxu0 %vm41_vm1, %v30_v48  ;;  %v32_v50 = vld [vmem:[%s8133_s0 + $0x58] sm:$0xff] }
 0x7b5   :  { %5974 = vmatprep.mubr.msk.f32.mxu0 %vm41_vm1, %v31_v49 }
 0x7b6   :  { %640 = vrot.lane.b32.xlu0 %v6886_v4, %s6662_s10 }
 0x7b8   :  { %5975 = vmatmul.mubr.msk.f32.gmra.mxu0 %vm41_vm1, %v32_v50 }
 0x7b9   :  { %5977 = vmatprep.mubr.msk.f32.mxu0 %vm41_vm1, %v33_v51 }
 0x7bc   :  { %5978 = vmatmul.mubr.msk.f32.gmra.mxu0 %vm41_vm1, %v34_v53 }
 0x7bd   :  { %5980 = vmatprep.mubr.msk.f32.mxu0 %vm41_vm1, %v35_v54 }
 0x7c0   :  { %5981 = vmatmul.mubr.msk.f32.gmra.mxu0 %vm41_vm1, %v36_v56 }
 0x826   :  { %v6892_v10 = vpop.permute.xlu1 %642 }
 0x828   :  { %v6890_v8 = vpop.permute.xlu0 %640 }
 0x829   :  { %6024 = vmatprep.mubr.msk.f32.mxu1 %vm239_vm2, %v6890_v8 }
 0x82a   :  { %6025 = vmatmul.mubr.msk.f32.vlgmr.msra.gmra.mxu1 %vm239_vm2, %v6892_v10 }
 0x82b   :  { %6039 = vmatpush3.msra.mxu1 %v6705_v0 }
 0x82c   :  { %6040 = vmatprep.subr.mxu1 %v6713_v2 }
 0x82d   :  { %6041 = vmatpush3.msra.mxu1 %v6713_v2 }
 0x82e   :  { %6042 = vmatprep.subr.mxu1 %v6728_v5 }
 0x82f   :  { %6043 = vmatpush3.msra.mxu1 %v6728_v5 }
 0x830   :  { %6044 = vmatprep.subr.mxu1 %v6737_v6 }
 0x831   :  { %6045 = vmatpush3.msra.mxu1 %v6737_v6 }
 0x832   :  { %6060 = vmatprep.subr.mxu1 %v6705_v0 }
 0x874   :  { %v5973_v63 = vpop.f32.mrf.mxu0 }
 0x876   :  { %v200_v3 = vpop.f32.mrf.mxu0 }
 0x878   :  { %v6977_v11 = vpop.f32.mrf.mxu0 }
 0x8ea   :  { %v6026_v14 = vpop.f32.mrf.mxu1 }
 0x8eb   :  { %v724_v16 = vadd.f32 %v6026_v14, %v196_v12  ;;  %v6979_v12 = vpop.f32.mrf.mxu0 }
 0x8ec   :  { %v714_v17 = vpop.f32.mrf.mxu1 }
 0x8ed   :  { %6430 = vtanh.f32 %v724_v16  ;;  %v723_v18 = vadd.f32 %v714_v17, %v191_v15  ;;  %v5625_v21 = vmul.f32 -1.442695, %v724_v16  ;;  %v6981_v13 = vpop.f32.mrf.mxu0  ;;  %v206_v17 = vadd.f32 %v5973_v63, %v6766_v9 }
 0x8ee   :  { %v216_v63 = vadd.f32 %v6977_v11, %v6766_v9 }
 0x8ef   :  { %6432 = vtanh.f32 %v723_v18  ;;  %v5624_v23 = vmul.f32 -1.442695, %v723_v18  ;;  %v6983_v14 = vpop.f32.mrf.mxu0 }
 0x8f0   :  { %6434 = vpow2.f32 %v5625_v21 }
 0x8f1   :  { %6436 = vpow2.f32 %v5624_v23  ;;  %v6985_v15 = vpop.f32.mrf.mxu0 }
 0x8f3   :  { %v6987_v16 = vpop.f32.mrf.mxu0 }
 0x8fa   :  { %v6431_v19 = vpop.eup %6430 }
 0x8fb   :  { %745 = vrot.lane.b32.xlu1 %v6431_v19, %s6661_s5  ;;  %v201_v19 = vadd.f32 %v6766_v9, %v200_v3 }
 0x8fc   :  { %v6433_v20 = vpop.eup %6432 }
 0x8fd   :  { %743 = vrot.lane.b32.xlu0 %v6433_v20, %s6661_s5  ;;  %v6435_v27 = vpop.eup %6434 }
 0x8fe   :  { %v6437_v28 = vpop.eup %6436  ;;  %v732_v29 = vadd.f32 1.0, %v6435_v27 }
 0x8ff   :  { %v731_v30 = vadd.f32 1.0, %v6437_v28 }
 0x900   :  { %6438 = vrcp.f32 %v732_v29 }
 0x901   :  { %6440 = vrcp.f32 %v731_v30 }
 0x90d   :  { %v6439_v31 = vpop.eup %6438 }
 0x90e   :  { %v6441_v34 = vpop.eup %6440  ;;  %v740_v37 = vmul.f32 %v6439_v31, %v6865_v55 }
 0x90f   :  { %v739_v40 = vmul.f32 %v6441_v34, %v6869_v58 }
 0x96d   :  { %v746_v32 = vpop.permute.xlu1 %745 }
 0x96e   :  { %v750_v33 = vmul.f32 %v6439_v31, %v746_v32 }
 0x96f   :  { %v744_v35 = vpop.permute.xlu0 %743 }
 0x970   :  { %755 = vrot.lane.b32.xlu1 %v750_v33, %s6661_s5  ;;  %v749_v36 = vmul.f32 %v6441_v34, %v744_v35 }
 0x972   :  { %753 = vrot.lane.b32.xlu0 %v749_v36, %s6661_s5 }
 0x9e2   :  { %v756_v38 = vpop.permute.xlu1 %755 }
 0x9e3   :  { %v6913_v39 = vadd.f32 %v756_v38, %v740_v37 }
 0x9e4   :  { %v754_v41 = vpop.permute.xlu0 %753 }
 0x9e5   :  { %6442 = vtanh.f32 %v6913_v39  ;;  %v6917_v43 = vadd.f32 %v754_v41, %v739_v40 }
 0x9e7   :  { %6444 = vtanh.f32 %v6917_v43 }
 0x9f2   :  { %v6443_v52 = vpop.eup %6442 }
 0x9f3   :  { %767 = vrot.lane.b32.xlu1 %v6443_v52, %s6661_s5 }
 0x9f4   :  { %v6445_v55 = vpop.eup %6444 }
 0x9f5   :  { %765 = vrot.lane.b32.xlu0 %v6445_v55, %s6661_s5 }
 0xa65   :  { %v768_v57 = vpop.permute.xlu1 %767 }
 0xa66   :  { %v6954_v58 = vmul.f32 %v6439_v31, %v768_v57 }
 0xa67   :  { %v766_v59 = vpop.permute.xlu0 %765 }
 0xa68   :  { %777 = vrot.lane.b32.xlu1 %v6954_v58, %s6662_s10  ;;  %v6958_v60 = vmul.f32 %v6441_v34, %v766_v59 }
 0xa6a   :  { %775 = vrot.lane.b32.xlu0 %v6958_v60, %s6662_s10 }
 0xada   :  { %v6964_v62 = vpop.permute.xlu1 %777 }
 0xadc   :  { %v6962_v61 = vpop.permute.xlu0 %775 }
 0xadd   :  { %6035 = vmatprep.mubr.msk.f32.mxu0 %vm239_vm2, %v6962_v61 }
 0xade   :  { %6036 = vmatmul.mubr.msk.f32.vlgmr.msra.gmra.mxu0 %vm239_vm2, %v6964_v62 }
 0xadf   :  { %6050 = vmatpush3.msra.mxu0 %v6705_v0 }
 0xae0   :  { %6051 = vmatprep.subr.mxu0 %v6713_v2 }
 0xae1   :  { %6052 = vmatpush3.msra.mxu0 %v6713_v2 }
 0xae2   :  { %6053 = vmatprep.subr.mxu0 %v6728_v5 }
 0xae3   :  { %6054 = vmatpush3.msra.mxu0 %v6728_v5 }
 0xae4   :  { %6055 = vmatprep.subr.mxu0 %v6737_v6 }
 0xae5   :  { %6056 = vmatpush3.msra.mxu0 %v6737_v6 }
 0xb9e   :  { %v6037_v18 = vpop.f32.mrf.mxu0 }
 0xb9f   :  { %v859_v20 = vadd.f32 %v6037_v18, %v206_v17  ;;  %v211_v17 = vadd.f32 %v6766_v9, %v6979_v12 }
 0xba0   :  { %v849_v21 = vpop.f32.mrf.mxu0 }
 0xba1   :  { %6446 = vtanh.f32 %v859_v20  ;;  %v858_v23 = vadd.f32 %v849_v21, %v201_v19  ;;  %v5629_v29 = vmul.f32 -1.442695, %v859_v20 }
 0xba3   :  { %6448 = vtanh.f32 %v858_v23  ;;  %v5628_v30 = vmul.f32 -1.442695, %v858_v23 }
 0xba4   :  { %6450 = vpow2.f32 %v5629_v29 }
 0xba5   :  { %6452 = vpow2.f32 %v5628_v30 }
 0xbae   :  { %v6447_v27 = vpop.eup %6446 }
 0xbaf   :  { %880 = vrot.lane.b32.xlu1 %v6447_v27, %s6661_s5 }
 0xbb0   :  { %v6449_v28 = vpop.eup %6448 }
 0xbb1   :  { %878 = vrot.lane.b32.xlu0 %v6449_v28, %s6661_s5  ;;  %v6451_v31 = vpop.eup %6450 }
 0xbb2   :  { %v6453_v32 = vpop.eup %6452  ;;  %v867_v33 = vadd.f32 1.0, %v6451_v31 }
 0xbb3   :  { %v866_v34 = vadd.f32 1.0, %v6453_v32 }
 0xbb4   :  { %6454 = vrcp.f32 %v867_v33 }
 0xbb5   :  { %6456 = vrcp.f32 %v866_v34 }
 0xbc1   :  { %v6455_v35 = vpop.eup %6454 }
 0xbc2   :  { %v6457_v38 = vpop.eup %6456  ;;  %v875_v47 = vmul.f32 %v6455_v35, %v6913_v39 }
 0xbc3   :  { %v874_v50 = vmul.f32 %v6457_v38, %v6917_v43 }
 0xc21   :  { %v881_v36 = vpop.permute.xlu1 %880 }
 0xc22   :  { %v885_v37 = vmul.f32 %v6455_v35, %v881_v36 }
 0xc23   :  { %v879_v40 = vpop.permute.xlu0 %878 }
 0xc24   :  { %890 = vrot.lane.b32.xlu1 %v885_v37, %s6661_s5  ;;  %v884_v41 = vmul.f32 %v6457_v38, %v879_v40 }
 0xc26   :  { %888 = vrot.lane.b32.xlu0 %v884_v41, %s6661_s5 }
 0xc96   :  { %v891_v48 = vpop.permute.xlu1 %890 }
 0xc97   :  { %v895_v49 = vadd.f32 %v891_v48, %v875_v47 }
 0xc98   :  { %v889_v51 = vpop.permute.xlu0 %888 }
 0xc99   :  { %6458 = vtanh.f32 %v895_v49  ;;  %v894_v52 = vadd.f32 %v889_v51, %v874_v50 }
 0xc9b   :  { %6460 = vtanh.f32 %v894_v52 }
 0xca6   :  { %v6459_v53 = vpop.eup %6458 }
 0xca7   :  { %902 = vrot.lane.b32.xlu1 %v6459_v53, %s6661_s5  ;;  %v226_v53 = vadd.f32 %v6981_v13, %v6766_v9 }
 0xca8   :  { %v6461_v54 = vpop.eup %6460 }
 0xca9   :  { %900 = vrot.lane.b32.xlu0 %v6461_v54, %s6661_s5 }
 0xd19   :  { %v903_v55 = vpop.permute.xlu1 %902 }
 0xd1a   :  { %v6999_v56 = vmul.f32 %v6455_v35, %v903_v55  ;;  %v221_v55 = vadd.f32 %v6766_v9, %v6983_v14 }
 0xd1b   :  { %v901_v57 = vpop.permute.xlu0 %900 }
 0xd1c   :  { %912 = vrot.lane.b32.xlu1 %v6999_v56, %s6662_s10  ;;  %v7003_v39 = vmul.f32 %v6457_v38, %v901_v57 }
 0xd1e   :  { %910 = vrot.lane.b32.xlu0 %v7003_v39, %s6662_s10 }
 0xd8e   :  { %v7009_v59 = vpop.permute.xlu1 %912 }
 0xd90   :  { %v7007_v43 = vpop.permute.xlu0 %910 }
 0xd91   :  { %6046 = vmatprep.mubr.msk.f32.mxu1 %vm239_vm2, %v7007_v43 }
 0xd92   :  { %6047 = vmatmul.mubr.msk.f32.vlgmr.msra.gmra.mxu1 %vm239_vm2, %v7009_v59 }
 0xd93   :  { %6061 = vmatpush3.msra.mxu1 %v6705_v0 }
 0xd94   :  { %6062 = vmatprep.subr.mxu1 %v6713_v2 }
 0xd95   :  { %6063 = vmatpush3.msra.mxu1 %v6713_v2 }
 0xd96   :  { %6064 = vmatprep.subr.mxu1 %v6728_v5 }
 0xd97   :  { %6065 = vmatpush3.msra.mxu1 %v6728_v5 }
 0xd98   :  { %6066 = vmatprep.subr.mxu1 %v6737_v6 }
 0xd99   :  { %6067 = vmatpush3.msra.mxu1 %v6737_v6 }
 0xe52   :  { %v6048_v3 = vpop.f32.mrf.mxu1 }
 0xe53   :  { %v994_v0 = vadd.f32 %v6048_v3, %v216_v63 }
 0xe54   :  { %v984_v18 = vpop.f32.mrf.mxu1 }
 0xe55   :  { %6462 = vtanh.f32 %v994_v0  ;;  %v993_v19 = vadd.f32 %v984_v18, %v211_v17  ;;  %v5633_v20 = vmul.f32 -1.442695, %v994_v0 }
 0xe57   :  { %6464 = vtanh.f32 %v993_v19  ;;  %v5632_v6 = vmul.f32 -1.442695, %v993_v19 }
 0xe58   :  { %6466 = vpow2.f32 %v5633_v20 }
 0xe59   :  { %6468 = vpow2.f32 %v5632_v6 }
 0xe62   :  { %v6463_v2 = vpop.eup %6462 }
 0xe63   :  { %1015 = vrot.lane.b32.xlu1 %v6463_v2, %s6661_s5 }
 0xe64   :  { %v6465_v5 = vpop.eup %6464 }
 0xe65   :  { %1013 = vrot.lane.b32.xlu0 %v6465_v5, %s6661_s5  ;;  %v6467_v11 = vpop.eup %6466 }
 0xe66   :  { %v6469_v21 = vpop.eup %6468  ;;  %v1002_v23 = vadd.f32 1.0, %v6467_v11 }
 0xe67   :  { %v1001_v27 = vadd.f32 1.0, %v6469_v21 }
 0xe68   :  { %6470 = vrcp.f32 %v1002_v23 }
 0xe69   :  { %6472 = vrcp.f32 %v1001_v27 }
 0xe75   :  { %v6471_v12 = vpop.eup %6470 }
 0xe76   :  { %v6473_v30 = vpop.eup %6472  ;;  %v1010_v33 = vmul.f32 %v6471_v12, %v895_v49 }
 0xe77   :  { %v1009_v36 = vmul.f32 %v6473_v30, %v894_v52 }
 0xed5   :  { %v1016_v28 = vpop.permute.xlu1 %1015 }
 0xed6   :  { %v1020_v29 = vmul.f32 %v6471_v12, %v1016_v28 }
 0xed7   :  { %v1014_v31 = vpop.permute.xlu0 %1013 }
 0xed8   :  { %1025 = vrot.lane.b32.xlu1 %v1020_v29, %s6661_s5  ;;  %v1019_v32 = vmul.f32 %v6473_v30, %v1014_v31 }
 0xeda   :  { %1023 = vrot.lane.b32.xlu0 %v1019_v32, %s6661_s5 }
 0xf4a   :  { %v1026_v34 = vpop.permute.xlu1 %1025 }
 0xf4b   :  { %v1030_v35 = vadd.f32 %v1026_v34, %v1010_v33 }
 0xf4c   :  { %v1024_v37 = vpop.permute.xlu0 %1023 }
 0xf4d   :  { %6474 = vtanh.f32 %v1030_v35  ;;  %v1029_v38 = vadd.f32 %v1024_v37, %v1009_v36 }
 0xf4f   :  { %6476 = vtanh.f32 %v1029_v38 }
 0xf5a   :  { %v6475_v40 = vpop.eup %6474 }
 0xf5b   :  { %1037 = vrot.lane.b32.xlu1 %v6475_v40, %s6661_s5 }
 0xf5c   :  { %v6477_v41 = vpop.eup %6476 }
 0xf5d   :  { %1035 = vrot.lane.b32.xlu0 %v6477_v41, %s6661_s5 }
 0xfcd   :  { %v1038_v47 = vpop.permute.xlu1 %1037 }
 0xfce   :  { %v7032_v48 = vmul.f32 %v6471_v12, %v1038_v47 }
 0xfcf   :  { %v1036_v50 = vpop.permute.xlu0 %1035 }
 0xfd0   :  { %1047 = vrot.lane.b32.xlu1 %v7032_v48, %s6662_s10  ;;  %v7036_v49 = vmul.f32 %v6473_v30, %v1036_v50  ;;  %v1313_v50 = vld [vmem:[%s8134_s1 + $0x30] sm:$0xff] }
 0xfd2   :  { %1045 = vrot.lane.b32.xlu0 %v7036_v49, %s6662_s10 }
0x1042   :  { %v7042_v52 = vpop.permute.xlu1 %1047 }
0x1044   :  { %v7040_v51 = vpop.permute.xlu0 %1045 }
0x1045   :  { %6057 = vmatprep.mubr.msk.f32.mxu0 %vm239_vm2, %v7040_v51 }
0x1046   :  { %6058 = vmatmul.mubr.msk.f32.vlgmr.msra.gmra.mxu0 %vm239_vm2, %v7042_v52 }
0x1106   :  { %v6059_v54 = vpop.f32.mrf.mxu0 }
0x1107   :  { %v1129_v57 = vadd.f32 %v6059_v54, %v226_v53 }
0x1108   :  { %v1119_v63 = vpop.f32.mrf.mxu0 }
0x1109   :  { %6478 = vtanh.f32 %v1129_v57  ;;  %v1128_v3 = vadd.f32 %v1119_v63, %v221_v55  ;;  %v5637_v18 = vmul.f32 -1.442695, %v1129_v57 }
0x110b   :  { %6480 = vtanh.f32 %v1128_v3  ;;  %v5636_v19 = vmul.f32 -1.442695, %v1128_v3 }
0x110c   :  { %6482 = vpow2.f32 %v5637_v18 }
0x110d   :  { %6484 = vpow2.f32 %v5636_v19 }
0x1116   :  { %v6479_v17 = vpop.eup %6478 }
0x1117   :  { %1150 = vrot.lane.b32.xlu1 %v6479_v17, %s6661_s5 }
0x1118   :  { %v6481_v0 = vpop.eup %6480 }
0x1119   :  { %1148 = vrot.lane.b32.xlu0 %v6481_v0, %s6661_s5  ;;  %v6483_v13 = vpop.eup %6482 }
0x111a   :  { %v6485_v2 = vpop.eup %6484  ;;  %v1137_v5 = vadd.f32 1.0, %v6483_v13 }
0x111b   :  { %v1136_v20 = vadd.f32 1.0, %v6485_v2 }
0x111c   :  { %6486 = vrcp.f32 %v1137_v5 }
0x111d   :  { %6488 = vrcp.f32 %v1136_v20  ;;  %v1316_v20 = vld [vmem:[%s8134_s1 + $0x48] sm:$0xff] }
0x111e   :  { %6071 = vmatprep.subr.mxu0 %v1316_v20 }
0x111f   :  { %6072 = vmatpush3.msra.mxu0 %v1316_v20 }
0x1129   :  { %v6487_v14 = vpop.eup %6486 }
0x112a   :  { %v6489_v21 = vpop.eup %6488  ;;  %v1145_v12 = vmul.f32 %v6487_v14, %v1030_v35  ;;  %v1314_v35 = vld [vmem:[%s8134_s1 + $0x38] sm:$0xff] }
0x112b   :  { %v1144_v30 = vmul.f32 %v6489_v21, %v1029_v38  ;;  %6099 = vmatprep.subr.mxu1 %v1314_v35 }
0x1189   :  { %v1151_v6 = vpop.permute.xlu1 %1150 }
0x118a   :  { %v1155_v11 = vmul.f32 %v6487_v14, %v1151_v6 }
0x118b   :  { %v1149_v23 = vpop.permute.xlu0 %1148 }
0x118c   :  { %1160 = vrot.lane.b32.xlu1 %v1155_v11, %s6661_s5  ;;  %v1154_v27 = vmul.f32 %v6489_v21, %v1149_v23 }
0x118e   :  { %1158 = vrot.lane.b32.xlu0 %v1154_v27, %s6661_s5 }
0x11fe   :  { %v1161_v28 = vpop.permute.xlu1 %1160 }
0x11ff   :  { %v7056_v29 = vadd.f32 %v1161_v28, %v1145_v12 }
0x1200   :  { %v1159_v31 = vpop.permute.xlu0 %1158 }
0x1201   :  { %6490 = vtanh.f32 %v7056_v29  ;;  %v7059_v32 = vadd.f32 %v1159_v31, %v1144_v30 }
0x1203   :  { %6492 = vtanh.f32 %v7059_v32 }
0x120e   :  { %v6491_v33 = vpop.eup %6490 }
0x120f   :  { %1172 = vrot.lane.b32.xlu1 %v6491_v33, %s6661_s5  ;;  %v7183_v33 = vld [vmem:[%s8134_s1 + $0x50] ss:$0 sm:$0xff] }
0x1210   :  { %v6493_v34 = vpop.eup %6492 }
0x1211   :  { %1170 = vrot.lane.b32.xlu0 %v6493_v34, %s6661_s5 }
0x1281   :  { %v1173_v36 = vpop.permute.xlu1 %1172 }
0x1282   :  { %v7067_v37 = vmul.f32 %v6487_v14, %v1173_v36  ;;  %v1315_v14 = vld [vmem:[%s8134_s1 + $0x40] sm:$0xff] }
0x1283   :  { %v1171_v38 = vpop.permute.xlu0 %1170  ;;  %6073 = vmatprep.subr.mxu0 %v1315_v14 }
0x1284   :  { %1182 = vrot.lane.b32.xlu1 %v7067_v37, %s6662_s10  ;;  %v7071_v40 = vmul.f32 %v6489_v21, %v1171_v38  ;;  %6074 = vmatpush3.msra.mxu0 %v1315_v14 }
0x1285   :  { %6127 = vmatprep.subr.mxu0 %v6660_v7 }
0x1286   :  { %1180 = vrot.lane.b32.xlu0 %v7071_v40, %s6662_s10 }
0x12f6   :  { %v1183_v47 = vpop.permute.xlu1 %1182 }
0x12f8   :  { %v1181_v41 = vpop.permute.xlu0 %1180 }
0x12f9   :  { %6068 = vmatprep.mubr.msk.f32.mxu1 %vm239_vm2, %v1181_v41 }
0x12fa   :  { %6069 = vmatmul.mubr.msk.f32.vlgmr.msra.gmra.mxu1 %vm239_vm2, %v1183_v47 }
0x12fb   :  { %6100 = vmatpush3.msra.mxu1 %v1314_v35  ;;  %6103 = vmatprep.mubr.msk.f32.mxu1 %vm1352_vm3, %v6795_v45  ;;  %v236_v45 = vadd.f32 %v6985_v15, %v6766_v9 }
0x12fc   :  { %6101 = vmatprep.subr.mxu1 %v1313_v50 }
0x12fd   :  { %6102 = vmatpush3.msra.mxu1 %v1313_v50 }
0x12fe   :  { %6104 = vmatmul.mubr.msk.f32.vlgmr.msra.gmra.mxu1 %vm1352_vm3, %v6799_v46  ;;  %6137 = vmatprep.subr.mxu1 %v6660_v7 }
0x12ff   :  { %6106 = vmatprep.mubr.msk.f32.mxu1 %vm1352_vm3, %v6842_v25  ;;  %v231_v25 = vadd.f32 %v6766_v9, %v6987_v16 }
0x1302   :  { %6107 = vmatmul.mubr.msk.f32.gmra.mxu1 %vm1352_vm3, %v6844_v26 }
0x1303   :  { %6109 = vmatprep.mubr.msk.f32.mxu1 %vm1352_vm3, %v6890_v8 }
0x1306   :  { %6110 = vmatmul.mubr.msk.f32.gmra.mxu1 %vm1352_vm3, %v6892_v10 }
0x1307   :  { %6112 = vmatprep.mubr.msk.f32.mxu1 %vm1352_vm3, %v6962_v61 }
0x130a   :  { %6113 = vmatmul.mubr.msk.f32.gmra.mxu1 %vm1352_vm3, %v6964_v62 }
0x130b   :  { %6115 = vmatprep.mubr.msk.f32.mxu1 %vm1352_vm3, %v7007_v43 }
0x130e   :  { %6116 = vmatmul.mubr.msk.f32.gmra.mxu1 %vm1352_vm3, %v7009_v59 }
0x130f   :  { %6118 = vmatprep.mubr.msk.f32.mxu1 %vm1352_vm3, %v7040_v51 }
0x1312   :  { %6119 = vmatmul.mubr.msk.f32.gmra.mxu1 %vm1352_vm3, %v7042_v52 }
0x1313   :  { %6121 = vmatprep.mubr.msk.f32.mxu1 %vm1352_vm3, %v1181_v41 }
0x1316   :  { %6122 = vmatmul.mubr.msk.f32.gmra.mxu1 %vm1352_vm3, %v1183_v47 }
0x13ba   :  { %v6070_v46 = vpop.f32.mrf.mxu1 }
0x13bb   :  { %v1264_v26 = vadd.f32 %v6070_v46, %v236_v45 }
0x13bc   :  { %v1254_v8 = vpop.f32.mrf.mxu1 }
0x13bd   :  { %6494 = vtanh.f32 %v1264_v26  ;;  %v1263_v10 = vadd.f32 %v1254_v8, %v231_v25  ;;  %v5641_v43 = vmul.f32 -1.442695, %v1264_v26 }
0x13bf   :  { %6496 = vtanh.f32 %v1263_v10  ;;  %v5640_v59 = vmul.f32 -1.442695, %v1263_v10 }
0x13c0   :  { %6498 = vpow2.f32 %v5641_v43 }
0x13c1   :  { %6500 = vpow2.f32 %v5640_v59 }
0x13ca   :  { %v6495_v61 = vpop.eup %6494 }
0x13cb   :  { %1285 = vrot.lane.b32.xlu1 %v6495_v61, %s6661_s5 }
0x13cc   :  { %v6497_v62 = vpop.eup %6496 }
0x13cd   :  { %1283 = vrot.lane.b32.xlu0 %v6497_v62, %s6661_s5  ;;  %v6499_v15 = vpop.eup %6498 }
0x13ce   :  { %v6501_v51 = vpop.eup %6500  ;;  %v1272_v52 = vadd.f32 1.0, %v6499_v15 }
0x13cf   :  { %v1271_v53 = vadd.f32 1.0, %v6501_v51 }
0x13d0   :  { %6502 = vrcp.f32 %v1272_v52 }
0x13d1   :  { %6504 = vrcp.f32 %v1271_v53 }
0x13dd   :  { %v6503_v9 = vpop.eup %6502 }
0x13de   :  { %v6505_v55 = vpop.eup %6504  ;;  %v1280_v3 = vmul.f32 %v6503_v9, %v7056_v29 }
0x13df   :  { %v1279_v18 = vmul.f32 %v6505_v55, %v7059_v32  ;;  %v6105_v32 = vpop.f32.mrf.mxu1 }
0x13e1   :  { %v1632_v36 = vpop.f32.mrf.mxu1 }
0x13e3   :  { %v6108_v50 = vpop.f32.mrf.mxu1 }
0x13e5   :  { %v1642_v46 = vpop.f32.mrf.mxu1 }
0x13e7   :  { %v6111_v10 = vpop.f32.mrf.mxu1 }
0x13e9   :  { %v1652_v59 = vpop.f32.mrf.mxu1 }
0x13eb   :  { %v6114_v51 = vpop.f32.mrf.mxu1 }
0x143d   :  { %v1286_v16 = vpop.permute.xlu1 %1285 }
0x143e   :  { %v1290_v54 = vmul.f32 %v6503_v9, %v1286_v16  ;;  %v1662_v16 = vpop.f32.mrf.mxu1 }
0x143f   :  { %v1284_v57 = vpop.permute.xlu0 %1283 }
0x1440   :  { %1295 = vrot.lane.b32.xlu1 %v1290_v54, %s6661_s5  ;;  %v1289_v63 = vmul.f32 %v6505_v55, %v1284_v57 }
0x1442   :  { %1293 = vrot.lane.b32.xlu0 %v1289_v63, %s6661_s5  ;;  %v6117_v63 = vpop.f32.mrf.mxu1 }
0x14b2   :  { %v1296_v17 = vpop.permute.xlu1 %1295 }
0x14b3   :  { %v1300_v0 = vadd.f32 %v1296_v17, %v1280_v3  ;;  %v1672_v17 = vpop.f32.mrf.mxu1 }
0x14b4   :  { %v1294_v19 = vpop.permute.xlu0 %1293 }
0x14b5   :  { %6506 = vtanh.f32 %v1300_v0  ;;  %v1299_v13 = vadd.f32 %v1294_v19, %v1279_v18 }
0x14b7   :  { %6508 = vtanh.f32 %v1299_v13  ;;  %v6120_v13 = vpop.f32.mrf.mxu1 }
0x14b9   :  { %v1682_v14 = vpop.f32.mrf.mxu1 }
0x14c2   :  { %v6507_v2 = vpop.eup %6506 }
0x14c3   :  { %1307 = vrot.lane.b32.xlu1 %v6507_v2, %s6661_s5 }
0x14c4   :  { %v6509_v5 = vpop.eup %6508 }
0x14c5   :  { %1305 = vrot.lane.b32.xlu0 %v6509_v5, %s6661_s5 }
0x1535   :  { %v1308_v6 = vpop.permute.xlu1 %1307 }
0x1536   :  { %v1312_v11 = vmul.f32 %v6503_v9, %v1308_v6 }
0x1537   :  { %v1306_v21 = vpop.permute.xlu0 %1305 }
0x1538   :  { %1322 = vrot.lane.b32.xlu1 %v1312_v11, %s6663_s18  ;;  %v1311_v23 = vmul.f32 %v6505_v55, %v1306_v21 }
0x153a   :  { %1320 = vrot.lane.b32.xlu0 %v1311_v23, %s6663_s18 }
0x153c   :  { %1326 = vrot.lane.b32.xlu1 %v7067_v37, %s6663_s18 }
0x153e   :  { %1324 = vrot.lane.b32.xlu0 %v7071_v40, %s6663_s18 }
0x1540   :  { %1330 = vrot.lane.b32.xlu1 %v7032_v48, %s6663_s18 }
0x1542   :  { %1328 = vrot.lane.b32.xlu0 %v7036_v49, %s6663_s18 }
0x1544   :  { %1334 = vrot.lane.b32.xlu1 %v6999_v56, %s6663_s18 }
0x1546   :  { %1332 = vrot.lane.b32.xlu0 %v7003_v39, %s6663_s18 }
0x1548   :  { %1338 = vrot.lane.b32.xlu1 %v6954_v58, %s6663_s18 }
0x154a   :  { %1336 = vrot.lane.b32.xlu0 %v6958_v60, %s6663_s18 }
0x154c   :  { %1342 = vrot.lane.b32.xlu1 %v6882_v1, %s6663_s18 }
0x154e   :  { %1340 = vrot.lane.b32.xlu0 %v6886_v4, %s6663_s18 }
0x1550   :  { %1346 = vrot.lane.b32.xlu1 %v6834_v22, %s6663_s18 }
0x1552   :  { %1344 = vrot.lane.b32.xlu0 %v6838_v24, %s6663_s18 }
0x1554   :  { %1530 = vrot.lane.b32.xlu1 %v1311_v23, %s6662_s10  ;;  %v6123_v23 = vpop.f32.mrf.mxu1 }
0x1556   :  { %1348 = vrot.lane.b32.xlu0 %v6787_v42, %s6663_s18 }
0x1558   :  { %1532 = vrot.lane.b32.xlu1 %v1312_v11, %s6662_s10 }
0x155a   :  { %1350 = vrot.lane.b32.xlu0 %v6791_v44, %s6663_s18 }
0x15aa   :  { %v1323_v1 = vpop.permute.xlu1 %1322 }
0x15ac   :  { %v1321_v58 = vpop.permute.xlu0 %1320 }
0x15ad   :  { %6075 = vmatprep.mubr.msk.f32.mxu0 %vm1352_vm3, %v1321_v58 }
0x15ae   :  { %v1327_v4 = vpop.permute.xlu1 %1326  ;;  %6076 = vmatmul.mubr.msk.f32.vlgmr.msra.gmra.mxu0 %vm1352_vm3, %v1323_v1 }
0x15b0   :  { %v1325_v22 = vpop.permute.xlu0 %1324 }
0x15b1   :  { %6078 = vmatprep.mubr.msk.f32.mxu0 %vm1352_vm3, %v1325_v22 }
0x15b2   :  { %v1331_v24 = vpop.permute.xlu1 %1330  ;;  %6079 = vmatmul.mubr.msk.f32.gmra.mxu0 %vm1352_vm3, %v1327_v4 }
0x15b4   :  { %v1329_v60 = vpop.permute.xlu0 %1328 }
0x15b5   :  { %6081 = vmatprep.mubr.msk.f32.mxu0 %vm1352_vm3, %v1329_v60  ;;  %v1692_v60 = vpop.f32.mrf.mxu1 }
0x15b6   :  { %v1335_v42 = vpop.permute.xlu1 %1334  ;;  %6082 = vmatmul.mubr.msk.f32.gmra.mxu0 %vm1352_vm3, %v1331_v24 }
0x15b8   :  { %v1333_v44 = vpop.permute.xlu0 %1332 }
0x15b9   :  { %6084 = vmatprep.mubr.msk.f32.mxu0 %vm1352_vm3, %v1333_v44 }
0x15ba   :  { %v1339_v56 = vpop.permute.xlu1 %1338  ;;  %6085 = vmatmul.mubr.msk.f32.gmra.mxu0 %vm1352_vm3, %v1335_v42 }
0x15bc   :  { %v1337_v39 = vpop.permute.xlu0 %1336 }
0x15bd   :  { %6087 = vmatprep.mubr.msk.f32.mxu0 %vm1352_vm3, %v1337_v39 }
0x15be   :  { %v1343_v48 = vpop.permute.xlu1 %1342  ;;  %6088 = vmatmul.mubr.msk.f32.gmra.mxu0 %vm1352_vm3, %v1339_v56 }
0x15c0   :  { %v1341_v49 = vpop.permute.xlu0 %1340 }
0x15c1   :  { %6090 = vmatprep.mubr.msk.f32.mxu0 %vm1352_vm3, %v1341_v49 }
0x15c2   :  { %v1347_v27 = vpop.permute.xlu1 %1346  ;;  %6091 = vmatmul.mubr.msk.f32.gmra.mxu0 %vm1352_vm3, %v1343_v48 }
0x15c4   :  { %v1345_v12 = vpop.permute.xlu0 %1344 }
0x15c5   :  { %6093 = vmatprep.mubr.msk.f32.mxu0 %vm1352_vm3, %v1345_v12 }
0x15c6   :  { %v1531_v28 = vpop.permute.xlu1 %1530  ;;  %6094 = vmatmul.mubr.msk.f32.gmra.mxu0 %vm1352_vm3, %v1347_v27 }
0x15c7   :  { %6124 = vmatprep.mubr.msk.f32.mxu1 %vm1352_vm3, %v1531_v28 }
0x15c8   :  { %v1349_v29 = vpop.permute.xlu0 %1348 }
0x15c9   :  { %6096 = vmatprep.mubr.msk.f32.mxu0 %vm1352_vm3, %v1349_v29 }
0x15ca   :  { %v1533_v30 = vpop.permute.xlu1 %1532 }
0x15cb   :  { %6125 = vmatmul.mubr.msk.f32.gmra.mxu1 %vm1352_vm3, %v1533_v30 }
0x15cc   :  { %v1351_v31 = vpop.permute.xlu0 %1350  ;;  %6139 = vmatprep.mubr.msk.f32.mxu1 %vm6664_vm4, %v6660_v7 }
0x15cd   :  { %6097 = vmatmul.mubr.msk.f32.gmra.mxu0 %vm1352_vm3, %v1351_v31 }
0x15ce   :  { %6129 = vmatprep.mubr.msk.f32.mxu0 %vm6664_vm4, %v6660_v7 }
0x166e   :  { %v6077_v34 = vpop.f32.mrf.mxu0 }
0x166f   :  { %v1638_v35 = vadd.f32 %v6105_v32, %v6077_v34 }
0x1670   :  { %v1451_v37 = vpop.f32.mrf.mxu0 }
0x1671   :  { %v7186_v38 = vadd.f32 %v7183_v33, %v1638_v35  ;;  %v1633_v40 = vadd.f32 %v1632_v36, %v1451_v37 }
0x1672   :  { %v6080_v41 = vpop.f32.mrf.mxu0 }
0x1673   :  { %v7189_v47 = vadd.f32 %v7183_v33, %v1633_v40  ;;  %1809 = vrot.lane.b32.xlu1 %v7186_v38, %s6665_s20  ;;  %v1648_v25 = vadd.f32 %v6108_v50, %v6080_v41 }
0x1674   :  { %v1461_v45 = vpop.f32.mrf.mxu0 }
0x1675   :  { %1732 = vrot.lane.b32.xlu0 %v7189_v47, %s6665_s20  ;;  %v1643_v8 = vadd.f32 %v1642_v46, %v1461_v45  ;;  %v7202_v61 = vadd.f32 %v7183_v33, %v1648_v25 }
0x1676   :  { %v6083_v26 = vpop.f32.mrf.mxu0 }
0x1677   :  { %3236 = vrot.lane.b32.xlu1 %v7186_v38, %s6666_s21  ;;  %v7207_v43 = vadd.f32 %v7183_v33, %v1643_v8  ;;  %v1658_v52 = vadd.f32 %v6111_v10, %v6083_v26 }
0x1678   :  { %v1471_v62 = vpop.f32.mrf.mxu0 }
0x1679   :  { %3158 = vrot.lane.b32.xlu0 %v7189_v47, %s6666_s21  ;;  %v1653_v9 = vadd.f32 %v1652_v59, %v1471_v62  ;;  %v7220_v54 = vadd.f32 %v7183_v33, %v1658_v52 }
0x167a   :  { %v6086_v15 = vpop.f32.mrf.mxu0 }
0x167b   :  { %3234 = vrot.lane.b32.xlu1 %v7186_v38, %s6667_s22  ;;  %v7225_v57 = vadd.f32 %v7183_v33, %v1653_v9  ;;  %v1668_v0 = vadd.f32 %v6114_v51, %v6086_v15 }
0x167c   :  { %v1481_v53 = vpop.f32.mrf.mxu0 }
0x167d   :  { %3156 = vrot.lane.b32.xlu0 %v7189_v47, %s6667_s22  ;;  %v1663_v19 = vadd.f32 %v1662_v16, %v1481_v53  ;;  %v7238_v2 = vadd.f32 %v7183_v33, %v1668_v0 }
0x167e   :  { %v6089_v55 = vpop.f32.mrf.mxu0 }
0x167f   :  { %1963 = vrot.lane.b32.xlu1 %v7202_v61, %s6665_s20  ;;  %v7243_v20 = vadd.f32 %v7183_v33, %v1663_v19  ;;  %v1678_v6 = vadd.f32 %v6117_v63, %v6089_v55 }
0x1680   :  { %v1491_v3 = vpop.f32.mrf.mxu0 }
0x1681   :  { %1886 = vrot.lane.b32.xlu0 %v7207_v43, %s6665_s20  ;;  %v1673_v21 = vadd.f32 %v1672_v17, %v1491_v3  ;;  %v7252_v1 = vadd.f32 %v7183_v33, %v1678_v6 }
0x1682   :  { %v6092_v18 = vpop.f32.mrf.mxu0 }
0x1683   :  { %3392 = vrot.lane.b32.xlu1 %v7202_v61, %s6666_s21  ;;  %v1688_v58 = vadd.f32 %v6120_v13, %v6092_v18  ;;  %v7257_v22 = vadd.f32 %v7183_v33, %v1673_v21 }
0x1684   :  { %v1501_v5 = vpop.f32.mrf.mxu0 }
0x1685   :  { %3314 = vrot.lane.b32.xlu0 %v7207_v43, %s6666_s21  ;;  %v1683_v24 = vadd.f32 %v1682_v14, %v1501_v5  ;;  %v7262_v44 = vadd.f32 %v7183_v33, %v1688_v58 }
0x1686   :  { %v6095_v11 = vpop.f32.mrf.mxu0 }
0x1687   :  { %3390 = vrot.lane.b32.xlu1 %v7202_v61, %s6667_s22  ;;  %v1698_v56 = vadd.f32 %v6123_v23, %v6095_v11  ;;  %v7267_v48 = vadd.f32 %v7183_v33, %v1683_v24 }
0x1688   :  { %v1511_v4 = vpop.f32.mrf.mxu0 }
0x1689   :  { %3312 = vrot.lane.b32.xlu0 %v7207_v43, %s6667_s22  ;;  %v1693_v49 = vadd.f32 %v1692_v60, %v1511_v4  ;;  %v7272_v12 = vadd.f32 %v7183_v33, %v1698_v56 }
0x168b   :  { %2117 = vrot.lane.b32.xlu1 %v7220_v54, %s6665_s20  ;;  %v6126_v39 = vpop.f32.mrf.mxu1  ;;  %v7277_v30 = vadd.f32 %v7183_v33, %v1693_v49 }
0x168d   :  { %2040 = vrot.lane.b32.xlu0 %v7225_v57, %s6665_s20  ;;  %v6098_v42 = vpop.f32.mrf.mxu0  ;;  %v1702_v29 = vpop.f32.mrf.mxu1 }
0x168e   :  { %v1708_v28 = vadd.f32 %v6126_v39, %v6098_v42 }
0x168f   :  { %3548 = vrot.lane.b32.xlu1 %v7220_v54, %s6666_s21  ;;  %v1521_v27 = vpop.f32.mrf.mxu0 }
0x1690   :  { %v1703_v31 = vadd.f32 %v1702_v29, %v1521_v27  ;;  %v7282_v32 = vadd.f32 %v7183_v33, %v1708_v28 }
0x1691   :  { %3470 = vrot.lane.b32.xlu0 %v7225_v57, %s6666_s21 }
0x1692   :  { %v7287_v34 = vadd.f32 %v7183_v33, %v1703_v31 }
0x1693   :  { %3546 = vrot.lane.b32.xlu1 %v7220_v54, %s6667_s22 }
0x1695   :  { %3468 = vrot.lane.b32.xlu0 %v7225_v57, %s6667_s22 }
0x1697   :  { %2271 = vrot.lane.b32.xlu1 %v7238_v2, %s6665_s20 }
0x1699   :  { %2194 = vrot.lane.b32.xlu0 %v7243_v20, %s6665_s20 }
0x169b   :  { %3704 = vrot.lane.b32.xlu1 %v7238_v2, %s6666_s21 }
0x169d   :  { %3626 = vrot.lane.b32.xlu0 %v7243_v20, %s6666_s21 }
0x169f   :  { %2425 = vrot.lane.b32.xlu1 %v7252_v1, %s6665_s20 }
0x16a1   :  { %2348 = vrot.lane.b32.xlu0 %v7257_v22, %s6665_s20 }
0x16a3   :  { %2579 = vrot.lane.b32.xlu1 %v7262_v44, %s6665_s20 }
0x16a5   :  { %2502 = vrot.lane.b32.xlu0 %v7267_v48, %s6665_s20 }
0x16a7   :  { %2733 = vrot.lane.b32.xlu1 %v7272_v12, %s6665_s20 }
0x16a9   :  { %2656 = vrot.lane.b32.xlu0 %v7277_v30, %s6665_s20 }
0x16ab   :  { %2887 = vrot.lane.b32.xlu1 %v7282_v32, %s6665_s20 }
0x16ad   :  { %2810 = vrot.lane.b32.xlu0 %v7287_v34, %s6665_s20  ;;  %s6676_s20 = smov [#allocation2]  }
0x16af   :  { %3702 = vrot.lane.b32.xlu1 %v7238_v2, %s6667_s22 }
0x16b1   :  { %3624 = vrot.lane.b32.xlu0 %v7243_v20, %s6667_s22 }
0x16b3   :  { %3860 = vrot.lane.b32.xlu1 %v7252_v1, %s6666_s21 }
0x16b5   :  { %3782 = vrot.lane.b32.xlu0 %v7257_v22, %s6666_s21 }
0x16b7   :  { %3858 = vrot.lane.b32.xlu1 %v7252_v1, %s6667_s22 }
0x16b9   :  { %3780 = vrot.lane.b32.xlu0 %v7257_v22, %s6667_s22 }
0x16bb   :  { %4016 = vrot.lane.b32.xlu1 %v7262_v44, %s6666_s21 }
0x16bd   :  { %3938 = vrot.lane.b32.xlu0 %v7267_v48, %s6666_s21 }
0x16bf   :  { %4014 = vrot.lane.b32.xlu1 %v7262_v44, %s6667_s22 }
0x16c1   :  { %3936 = vrot.lane.b32.xlu0 %v7267_v48, %s6667_s22 }
0x16c3   :  { %4172 = vrot.lane.b32.xlu1 %v7272_v12, %s6666_s21 }
0x16c5   :  { %4094 = vrot.lane.b32.xlu0 %v7277_v30, %s6666_s21 }
0x16c7   :  { %4170 = vrot.lane.b32.xlu1 %v7272_v12, %s6667_s22 }
0x16c9   :  { %4092 = vrot.lane.b32.xlu0 %v7277_v30, %s6667_s22 }
0x16cb   :  { %4328 = vrot.lane.b32.xlu1 %v7282_v32, %s6666_s21 }
0x16cd   :  { %4250 = vrot.lane.b32.xlu0 %v7287_v34, %s6666_s21 }
0x16cf   :  { %4326 = vrot.lane.b32.xlu1 %v7282_v32, %s6667_s22 }
0x16d1   :  { %4248 = vrot.lane.b32.xlu0 %v7287_v34, %s6667_s22 }
0x16e5   :  { %v1810_v33 = vpop.permute.xlu1 %1809 }
0x16e7   :  { %v1733_v35 = vpop.permute.xlu0 %1732 }
0x16e8   :  { %6128 = vmatpush3.xpose.msk.msra.mxu0 %vm1352_vm3, %v1733_v35 }
0x16e9   :  { %v7330_v36 = vpop.permute.xlu1 %3236  ;;  %6132 = vmatprep.subr.mxu0 %v6660_v7 }
0x16eb   :  { %6130 = vmatmul.mubr.msk.f32.vlgmr.msra.gmra.mxu0 %vm1352_vm3, %v7189_v47  ;;  %v7335_v37 = vpop.permute.xlu0 %3158 }
0x16ec   :  { %6133 = vmatpush3.xpose.msk.msra.mxu0 %vm1352_vm3, %v1810_v33  ;;  %6134 = vmatprep.mubr.msk.f32.mxu0 %vm6664_vm4, %v6660_v7 }
0x16ed   :  { %v7340_v40 = vpop.permute.xlu1 %3234  ;;  %6142 = vmatprep.subr.mxu0 %v6660_v7 }
0x16ef   :  { %6135 = vmatmul.mubr.msk.f32.vlgmr.msra.gmra.mxu0 %vm1352_vm3, %v7186_v38  ;;  %v7345_v41 = vpop.permute.xlu0 %3156 }
0x16f0   :  { %6144 = vmatprep.mubr.msk.f32.mxu0 %vm6664_vm4, %v6660_v7 }
0x16f1   :  { %v1964_v47 = vpop.permute.xlu1 %1963 }
0x16f2   :  { %6143 = vmatpush3.xpose.msk.msra.mxu0 %vm1352_vm3, %v1964_v47 }
0x16f3   :  { %v1887_v50 = vpop.permute.xlu0 %1886  ;;  %6152 = vmatprep.subr.mxu0 %v6660_v7 }
0x16f4   :  { %6138 = vmatpush3.xpose.msk.msra.mxu1 %vm1352_vm3, %v1887_v50 }
0x16f5   :  { %v7352_v45 = vpop.permute.xlu1 %3392  ;;  %6145 = vmatmul.mubr.msk.f32.vlgmr.msra.gmra.mxu0 %vm1352_vm3, %v7202_v61  ;;  %6147 = vmatprep.subr.mxu1 %v6660_v7 }
0x16f6   :  { %6154 = vmatprep.mubr.msk.f32.mxu0 %vm6664_vm4, %v6660_v7 }
0x16f7   :  { %6140 = vmatmul.mubr.msk.f32.vlgmr.msra.gmra.mxu1 %vm1352_vm3, %v7207_v43  ;;  %v7361_v38 = vpop.permute.xlu0 %3314 }
0x16f8   :  { %6149 = vmatprep.mubr.msk.f32.mxu1 %vm6664_vm4, %v6660_v7 }
0x16f9   :  { %v7365_v46 = vpop.permute.xlu1 %3390 }
0x16fb   :  { %v7367_v25 = vpop.permute.xlu0 %3312 }
0x16fd   :  { %v2118_v26 = vpop.permute.xlu1 %2117 }
0x16fe   :  { %6153 = vmatpush3.xpose.msk.msra.mxu0 %vm1352_vm3, %v2118_v26 }
0x16ff   :  { %v2041_v8 = vpop.permute.xlu0 %2040  ;;  %6162 = vmatprep.subr.mxu0 %v6660_v7 }
0x1700   :  { %6148 = vmatpush3.xpose.msk.msra.mxu1 %vm1352_vm3, %v2041_v8 }
0x1701   :  { %v7372_v10 = vpop.permute.xlu1 %3548  ;;  %6155 = vmatmul.mubr.msk.f32.vlgmr.msra.gmra.mxu0 %vm1352_vm3, %v7220_v54  ;;  %6157 = vmatprep.subr.mxu1 %v6660_v7 }
0x1702   :  { %6164 = vmatprep.mubr.msk.f32.mxu0 %vm6664_vm4, %v6660_v7 }
0x1703   :  { %6150 = vmatmul.mubr.msk.f32.vlgmr.msra.gmra.mxu1 %vm1352_vm3, %v7225_v57  ;;  %v7381_v61 = vpop.permute.xlu0 %3470 }
0x1704   :  { %6159 = vmatprep.mubr.msk.f32.mxu1 %vm6664_vm4, %v6660_v7 }
0x1705   :  { %v7385_v62 = vpop.permute.xlu1 %3546 }
0x1707   :  { %v7387_v43 = vpop.permute.xlu0 %3468 }
0x1709   :  { %v2272_v59 = vpop.permute.xlu1 %2271 }
0x170a   :  { %6163 = vmatpush3.xpose.msk.msra.mxu0 %vm1352_vm3, %v2272_v59 }
0x170b   :  { %v2195_v15 = vpop.permute.xlu0 %2194  ;;  %6172 = vmatprep.subr.mxu0 %v6660_v7 }
0x170c   :  { %6158 = vmatpush3.xpose.msk.msra.mxu1 %vm1352_vm3, %v2195_v15 }
0x170d   :  { %v7392_v51 = vpop.permute.xlu1 %3704  ;;  %6165 = vmatmul.mubr.msk.f32.vlgmr.msra.gmra.mxu0 %vm1352_vm3, %v7238_v2  ;;  %6167 = vmatprep.subr.mxu1 %v6660_v7 }
0x170e   :  { %6174 = vmatprep.mubr.msk.f32.mxu0 %vm6664_vm4, %v6660_v7 }
0x170f   :  { %6160 = vmatmul.mubr.msk.f32.vlgmr.msra.gmra.mxu1 %vm1352_vm3, %v7243_v20  ;;  %v7401_v52 = vpop.permute.xlu0 %3626 }
0x1710   :  { %6169 = vmatprep.mubr.msk.f32.mxu1 %vm6664_vm4, %v6660_v7 }
0x1711   :  { %v2426_v53 = vpop.permute.xlu1 %2425 }
0x1712   :  { %6173 = vmatpush3.xpose.msk.msra.mxu0 %vm1352_vm3, %v2426_v53 }
0x1713   :  { %v2349_v9 = vpop.permute.xlu0 %2348  ;;  %6182 = vmatprep.subr.mxu0 %v6660_v7 }
0x1714   :  { %6168 = vmatpush3.xpose.msk.msra.mxu1 %vm1352_vm3, %v2349_v9 }
0x1715   :  { %v2580_v16 = vpop.permute.xlu1 %2579  ;;  %6175 = vmatmul.mubr.msk.f32.vlgmr.msra.gmra.mxu0 %vm1352_vm3, %v7252_v1  ;;  %6177 = vmatprep.subr.mxu1 %v6660_v7 }
0x1716   :  { %6183 = vmatpush3.xpose.msk.msra.mxu0 %vm1352_vm3, %v2580_v16  ;;  %6184 = vmatprep.mubr.msk.f32.mxu0 %vm6664_vm4, %v6660_v7 }
0x1717   :  { %6170 = vmatmul.mubr.msk.f32.vlgmr.msra.gmra.mxu1 %vm1352_vm3, %v7257_v22  ;;  %v2503_v54 = vpop.permute.xlu0 %2502  ;;  %6192 = vmatprep.subr.mxu0 %v6660_v7 }
0x1718   :  { %6178 = vmatpush3.xpose.msk.msra.mxu1 %vm1352_vm3, %v2503_v54  ;;  %6179 = vmatprep.mubr.msk.f32.mxu1 %vm6664_vm4, %v6660_v7 }
0x1719   :  { %v2734_v55 = vpop.permute.xlu1 %2733  ;;  %6185 = vmatmul.mubr.msk.f32.vlgmr.msra.gmra.mxu0 %vm1352_vm3, %v7262_v44  ;;  %6187 = vmatprep.subr.mxu1 %v6660_v7 }
0x171a   :  { %6193 = vmatpush3.xpose.msk.msra.mxu0 %vm1352_vm3, %v2734_v55  ;;  %6194 = vmatprep.mubr.msk.f32.mxu0 %vm6664_vm4, %v6660_v7 }
0x171b   :  { %6180 = vmatmul.mubr.msk.f32.vlgmr.msra.gmra.mxu1 %vm1352_vm3, %v7267_v48  ;;  %v2657_v57 = vpop.permute.xlu0 %2656  ;;  %6202 = vmatprep.subr.mxu0 %v6660_v7 }
0x171c   :  { %6188 = vmatpush3.xpose.msk.msra.mxu1 %vm1352_vm3, %v2657_v57  ;;  %6189 = vmatprep.mubr.msk.f32.mxu1 %vm6664_vm4, %v6660_v7 }
0x171d   :  { %v2888_v63 = vpop.permute.xlu1 %2887  ;;  %6195 = vmatmul.mubr.msk.f32.vlgmr.msra.gmra.mxu0 %vm1352_vm3, %v7272_v12  ;;  %6197 = vmatprep.subr.mxu1 %v6660_v7 }
0x171e   :  { %6203 = vmatpush3.xpose.msk.msra.mxu0 %vm1352_vm3, %v2888_v63  ;;  %6204 = vmatprep.mubr.msk.f32.mxu0 %vm6664_vm4, %v6660_v7 }
0x171f   :  { %6190 = vmatmul.mubr.msk.f32.vlgmr.msra.gmra.mxu1 %vm1352_vm3, %v7277_v30  ;;  %v2811_v3 = vpop.permute.xlu0 %2810  ;;  %6212 = vmatprep.subr.mxu0 %v6660_v7 }
0x1720   :  { %6198 = vmatpush3.xpose.msk.msra.mxu1 %vm1352_vm3, %v2811_v3  ;;  %6199 = vmatprep.mubr.msk.f32.mxu1 %vm6664_vm4, %v6660_v7 }
0x1721   :  { %v3703_v17 = vpop.permute.xlu1 %3702  ;;  %6205 = vmatmul.mubr.msk.f32.vlgmr.msra.gmra.mxu0 %vm1352_vm3, %v7282_v32  ;;  %6207 = vmatprep.subr.mxu1 %v6660_v7 }
0x1722   :  { %6213 = vmatpush3.xpose.msk.msra.mxu0 %vm1352_vm3, %v7330_v36  ;;  %6214 = vmatprep.mubr.msk.f32.mxu0 %vm6664_vm4, %v6660_v7 }
0x1723   :  { %6200 = vmatmul.mubr.msk.f32.vlgmr.msra.gmra.mxu1 %vm1352_vm3, %v7287_v34  ;;  %v3625_v0 = vpop.permute.xlu0 %3624  ;;  %6222 = vmatprep.subr.mxu0 %v6660_v7 }
0x1724   :  { %6208 = vmatpush3.xpose.msk.msra.mxu1 %vm1352_vm3, %v7335_v37  ;;  %6209 = vmatprep.mubr.msk.f32.mxu1 %vm6664_vm4, %v6660_v7 }
0x1725   :  { %v3861_v18 = vpop.permute.xlu1 %3860  ;;  %6215 = vmatmul.mubr.msk.f32.vlgmr.msra.gmra.mxu0 %vm1352_vm3, %v7340_v40  ;;  %6217 = vmatprep.subr.mxu1 %v6660_v7 }
0x1726   :  { %6223 = vmatpush3.xpose.msk.msra.mxu0 %vm1352_vm3, %v7352_v45  ;;  %6224 = vmatprep.mubr.msk.f32.mxu0 %vm6664_vm4, %v6660_v7 }
0x1727   :  { %6210 = vmatmul.mubr.msk.f32.vlgmr.msra.gmra.mxu1 %vm1352_vm3, %v7345_v41  ;;  %v3783_v19 = vpop.permute.xlu0 %3782  ;;  %6232 = vmatprep.subr.mxu0 %v6660_v7 }
0x1728   :  { %6218 = vmatpush3.xpose.msk.msra.mxu1 %vm1352_vm3, %v7361_v38  ;;  %6219 = vmatprep.mubr.msk.f32.mxu1 %vm6664_vm4, %v6660_v7 }
0x1729   :  { %v3859_v13 = vpop.permute.xlu1 %3858  ;;  %6225 = vmatmul.mubr.msk.f32.vlgmr.msra.gmra.mxu0 %vm1352_vm3, %v7365_v46  ;;  %6227 = vmatprep.subr.mxu1 %v6660_v7 }
0x172a   :  { %6233 = vmatpush3.xpose.msk.msra.mxu0 %vm1352_vm3, %v7372_v10  ;;  %6234 = vmatprep.mubr.msk.f32.mxu0 %vm6664_vm4, %v6660_v7 }
0x172b   :  { %6220 = vmatmul.mubr.msk.f32.vlgmr.msra.gmra.mxu1 %vm1352_vm3, %v7367_v25  ;;  %v3781_v2 = vpop.permute.xlu0 %3780  ;;  %6242 = vmatprep.subr.mxu0 %v6660_v7 }
0x172c   :  { %6228 = vmatpush3.xpose.msk.msra.mxu1 %vm1352_vm3, %v7381_v61  ;;  %6229 = vmatprep.mubr.msk.f32.mxu1 %vm6664_vm4, %v6660_v7 }
0x172d   :  { %v4017_v5 = vpop.permute.xlu1 %4016  ;;  %6235 = vmatmul.mubr.msk.f32.vlgmr.msra.gmra.mxu0 %vm1352_vm3, %v7385_v62  ;;  %6237 = vmatprep.subr.mxu1 %v6660_v7 }
0x172e   :  { %6243 = vmatpush3.xpose.msk.msra.mxu0 %vm1352_vm3, %v7392_v51  ;;  %6244 = vmatprep.mubr.msk.f32.mxu0 %vm6664_vm4, %v6660_v7 }
0x172f   :  { %6230 = vmatmul.mubr.msk.f32.vlgmr.msra.gmra.mxu1 %vm1352_vm3, %v7387_v43  ;;  %v3939_v20 = vpop.permute.xlu0 %3938  ;;  %6252 = vmatprep.subr.mxu0 %v6660_v7 }
0x1730   :  { %6238 = vmatpush3.xpose.msk.msra.mxu1 %vm1352_vm3, %v7401_v52  ;;  %6239 = vmatprep.mubr.msk.f32.mxu1 %vm6664_vm4, %v6660_v7 }
0x1731   :  { %v4015_v14 = vpop.permute.xlu1 %4014  ;;  %6245 = vmatmul.mubr.msk.f32.vlgmr.msra.gmra.mxu0 %vm1352_vm3, %v3703_v17  ;;  %6247 = vmatprep.subr.mxu1 %v6660_v7 }
0x1732   :  { %6253 = vmatpush3.xpose.msk.msra.mxu0 %vm1352_vm3, %v3861_v18  ;;  %6254 = vmatprep.mubr.msk.f32.mxu0 %vm6664_vm4, %v6660_v7 }
0x1733   :  { %6240 = vmatmul.mubr.msk.f32.vlgmr.msra.gmra.mxu1 %vm1352_vm3, %v3625_v0  ;;  %v3937_v6 = vpop.permute.xlu0 %3936  ;;  %6262 = vmatprep.subr.mxu0 %v6660_v7 }
0x1734   :  { %6248 = vmatpush3.xpose.msk.msra.mxu1 %vm1352_vm3, %v3783_v19  ;;  %6249 = vmatprep.mubr.msk.f32.mxu1 %vm6664_vm4, %v6660_v7 }
0x1735   :  { %v4173_v11 = vpop.permute.xlu1 %4172  ;;  %6255 = vmatmul.mubr.msk.f32.vlgmr.msra.gmra.mxu0 %vm1352_vm3, %v3859_v13  ;;  %6257 = vmatprep.subr.mxu1 %v6660_v7 }
0x1736   :  { %6263 = vmatpush3.xpose.msk.msra.mxu0 %vm1352_vm3, %v4017_v5  ;;  %6264 = vmatprep.mubr.msk.f32.mxu0 %vm6664_vm4, %v6660_v7 }
0x1737   :  { %6250 = vmatmul.mubr.msk.f32.vlgmr.msra.gmra.mxu1 %vm1352_vm3, %v3781_v2  ;;  %v4095_v21 = vpop.permute.xlu0 %4094  ;;  %6272 = vmatprep.subr.mxu0 %v6660_v7 }
0x1738   :  { %6258 = vmatpush3.xpose.msk.msra.mxu1 %vm1352_vm3, %v3939_v20  ;;  %6259 = vmatprep.mubr.msk.f32.mxu1 %vm6664_vm4, %v6660_v7 }
0x1739   :  { %v4171_v23 = vpop.permute.xlu1 %4170  ;;  %6265 = vmatmul.mubr.msk.f32.vlgmr.msra.gmra.mxu0 %vm1352_vm3, %v4015_v14  ;;  %6267 = vmatprep.subr.mxu1 %v6660_v7 }
0x173a   :  { %6273 = vmatpush3.xpose.msk.msra.mxu0 %vm1352_vm3, %v4173_v11  ;;  %6274 = vmatprep.mubr.msk.f32.mxu0 %vm6664_vm4, %v6660_v7 }
0x173b   :  { %6260 = vmatmul.mubr.msk.f32.vlgmr.msra.gmra.mxu1 %vm1352_vm3, %v3937_v6  ;;  %v4093_v1 = vpop.permute.xlu0 %4092  ;;  %6282 = vmatprep.subr.mxu0 %v6660_v7 }
0x173c   :  { %6268 = vmatpush3.xpose.msk.msra.mxu1 %vm1352_vm3, %v4095_v21  ;;  %6269 = vmatprep.mubr.msk.f32.mxu1 %vm6664_vm4, %v6660_v7 }
0x173d   :  { %v4329_v58 = vpop.permute.xlu1 %4328  ;;  %6275 = vmatmul.mubr.msk.f32.vlgmr.msra.gmra.mxu0 %vm1352_vm3, %v4171_v23  ;;  %6277 = vmatprep.subr.mxu1 %v6660_v7 }
0x173e   :  { %6283 = vmatpush3.xpose.msk.msra.mxu0 %vm1352_vm3, %v4329_v58  ;;  %6284 = vmatprep.mubr.msk.f32.mxu0 %vm6664_vm4, %v6660_v7 }
0x173f   :  { %6270 = vmatmul.mubr.msk.f32.vlgmr.msra.gmra.mxu1 %vm1352_vm3, %v4093_v1  ;;  %v4251_v4 = vpop.permute.xlu0 %4250 }
0x1740   :  { %6278 = vmatpush3.xpose.msk.msra.mxu1 %vm1352_vm3, %v4251_v4  ;;  %6279 = vmatprep.mubr.msk.f32.mxu1 %vm6664_vm4, %v6660_v7 }
0x1741   :  { %v4327_v22 = vpop.permute.xlu1 %4326 }
0x1742   :  { %6285 = vmatmul.mubr.msk.f32.vlgmr.msra.gmra.mxu0 %vm1352_vm3, %v4327_v22 }
0x1743   :  { %v4249_v24 = vpop.permute.xlu0 %4248 }
0x1744   :  { %6280 = vmatmul.mubr.msk.f32.vlgmr.msra.gmra.mxu1 %vm1352_vm3, %v4249_v24 }
0x17ab   :  { %v7541_v60 = vpop.f32.mrf.mxu0 }
0x17ac   :  { %v2964_v42 = vsel %vm2963_vm5, %v7541_v60, -inf }
0x17ad   :  { %2965 = vmax.xlane.f32.xlu0 %v2964_v42  ;;  %v6131_v44 = vpop.f32.mrf.mxu0 }
0x17af   :  { %v7545_v56 = vpop.f32.mrf.mxu0 }
0x17b0   :  { %v2967_v39 = vsel %vm2963_vm5, %v7545_v56, -inf }
0x17b1   :  { %2968 = vmax.xlane.f32.xlu1 %v2967_v39  ;;  %v6136_v48 = vpop.f32.mrf.mxu0 }
0x17b5   :  { %v7549_v49 = vpop.f32.mrf.mxu0 }
0x17b6   :  { %v2973_v30 = vsel %vm2963_vm5, %v7549_v49, -inf }
0x17b7   :  { %v7551_v27 = vpop.f32.mrf.mxu1  ;;  %v6146_v12 = vpop.f32.mrf.mxu0 }
0x17b8   :  { %v2970_v28 = vsel %vm2963_vm5, %v7551_v27, -inf }
0x17b9   :  { %2971 = vmax.xlane.f32.xlu0 %v2970_v28  ;;  %v6141_v29 = vpop.f32.mrf.mxu1 }
0x17bd   :  { %2974 = vmax.xlane.f32.xlu0 %v2973_v30 }
0x17c1   :  { %v7557_v31 = vpop.f32.mrf.mxu0 }
0x17c2   :  { %v2979_v32 = vsel %vm2963_vm5, %v7557_v31, -inf }
0x17c3   :  { %v6156_v34 = vpop.f32.mrf.mxu0  ;;  %2980 = vmax.xlane.f32.xlu0 %v2979_v32  ;;  %v7561_v33 = vpop.f32.mrf.mxu1 }
0x17c4   :  { %v2976_v35 = vsel %vm2963_vm5, %v7561_v33, -inf }
0x17c5   :  { %2977 = vmax.xlane.f32.xlu1 %v2976_v35  ;;  %v6151_v36 = vpop.f32.mrf.mxu1 }
0x17cd   :  { %v7565_v37 = vpop.f32.mrf.mxu0 }
0x17ce   :  { %v2985_v40 = vsel %vm2963_vm5, %v7565_v37, -inf }
0x17cf   :  { %v6166_v41 = vpop.f32.mrf.mxu0  ;;  %2986 = vmax.xlane.f32.xlu0 %v2985_v40  ;;  %v7569_v47 = vpop.f32.mrf.mxu1 }
0x17d0   :  { %v2982_v50 = vsel %vm2963_vm5, %v7569_v47, -inf }
0x17d1   :  { %2983 = vmax.xlane.f32.xlu1 %v2982_v50  ;;  %v6161_v45 = vpop.f32.mrf.mxu1 }
0x17d5   :  { %v7573_v38 = vpop.f32.mrf.mxu0 }
0x17d6   :  { %v2991_v46 = vsel %vm2963_vm5, %v7573_v38, -inf }
0x17d7   :  { %v6176_v25 = vpop.f32.mrf.mxu0  ;;  %2992 = vmax.xlane.f32.xlu0 %v2991_v46  ;;  %v7577_v26 = vpop.f32.mrf.mxu1 }
0x17d8   :  { %v2988_v8 = vsel %vm2963_vm5, %v7577_v26, -inf }
0x17d9   :  { %v7581_v10 = vpop.f32.mrf.mxu0  ;;  %2989 = vmax.xlane.f32.xlu1 %v2988_v8  ;;  %v6171_v61 = vpop.f32.mrf.mxu1 }
0x17da   :  { %v2997_v62 = vsel %vm2963_vm5, %v7581_v10, -inf }
0x17db   :  { %v6186_v43 = vpop.f32.mrf.mxu0  ;;  %2998 = vmax.xlane.f32.xlu0 %v2997_v62  ;;  %v7585_v59 = vpop.f32.mrf.mxu1 }
0x17dc   :  { %v2994_v15 = vsel %vm2963_vm5, %v7585_v59, -inf }
0x17dd   :  { %v7589_v51 = vpop.f32.mrf.mxu0  ;;  %2995 = vmax.xlane.f32.xlu1 %v2994_v15  ;;  %v6181_v52 = vpop.f32.mrf.mxu1 }
0x17de   :  { %v3003_v53 = vsel %vm2963_vm5, %v7589_v51, -inf }
0x17df   :  { %v6196_v9 = vpop.f32.mrf.mxu0  ;;  %3004 = vmax.xlane.f32.xlu0 %v3003_v53  ;;  %v7593_v16 = vpop.f32.mrf.mxu1 }
0x17e0   :  { %v3000_v54 = vsel %vm2963_vm5, %v7593_v16, -inf }
0x17e1   :  { %v7597_v55 = vpop.f32.mrf.mxu0  ;;  %3001 = vmax.xlane.f32.xlu1 %v3000_v54  ;;  %v6191_v57 = vpop.f32.mrf.mxu1 }
0x17e2   :  { %v3009_v63 = vsel %vm2963_vm5, %v7597_v55, -inf }
0x17e3   :  { %v6206_v3 = vpop.f32.mrf.mxu0  ;;  %3010 = vmax.xlane.f32.xlu0 %v3009_v63  ;;  %v7601_v17 = vpop.f32.mrf.mxu1 }
0x17e4   :  { %v3006_v0 = vsel %vm2963_vm5, %v7601_v17, -inf }
0x17e5   :  { %v7605_v18 = vpop.f32.mrf.mxu0  ;;  %3007 = vmax.xlane.f32.xlu1 %v3006_v0  ;;  %v6201_v19 = vpop.f32.mrf.mxu1 }
0x17e6   :  { %v4407_v13 = vsel %vm2963_vm5, %v7605_v18, -inf }
0x17e7   :  { %v6216_v2 = vpop.f32.mrf.mxu0  ;;  %4408 = vmax.xlane.f32.xlu0 %v4407_v13  ;;  %v7609_v5 = vpop.f32.mrf.mxu1 }
0x17e8   :  { %v4404_v20 = vsel %vm2963_vm5, %v7609_v5, -inf }
0x17e9   :  { %v7613_v14 = vpop.f32.mrf.mxu0  ;;  %4405 = vmax.xlane.f32.xlu1 %v4404_v20  ;;  %v6211_v6 = vpop.f32.mrf.mxu1 }
0x17ea   :  { %v4413_v11 = vsel %vm2963_vm5, %v7613_v14, -inf }
0x17eb   :  { %v6226_v21 = vpop.f32.mrf.mxu0  ;;  %4414 = vmax.xlane.f32.xlu0 %v4413_v11  ;;  %v7617_v23 = vpop.f32.mrf.mxu1 }
0x17ec   :  { %v4410_v1 = vsel %vm2963_vm5, %v7617_v23, -inf }
0x17ed   :  { %v7621_v58 = vpop.f32.mrf.mxu0  ;;  %4411 = vmax.xlane.f32.xlu1 %v4410_v1  ;;  %v6221_v4 = vpop.f32.mrf.mxu1 }
0x17ee   :  { %v4419_v22 = vsel %vm2963_vm5, %v7621_v58, -inf }
0x17ef   :  { %v6236_v24 = vpop.f32.mrf.mxu0  ;;  %4420 = vmax.xlane.f32.xlu0 %v4419_v22  ;;  %v7625_v42 = vpop.f32.mrf.mxu1 }
0x17f0   :  { %v4416_v44 = vsel %vm2963_vm5, %v7625_v42, -inf }
0x17f1   :  { %v7629_v39 = vpop.f32.mrf.mxu0  ;;  %4417 = vmax.xlane.f32.xlu1 %v4416_v44  ;;  %v6231_v48 = vpop.f32.mrf.mxu1 }
0x17f2   :  { %v4425_v12 = vsel %vm2963_vm5, %v7629_v39, -inf }
0x17f3   :  { %v6246_v28 = vpop.f32.mrf.mxu0  ;;  %4426 = vmax.xlane.f32.xlu0 %v4425_v12  ;;  %v7633_v29 = vpop.f32.mrf.mxu1 }
0x17f4   :  { %v4422_v30 = vsel %vm2963_vm5, %v7633_v29, -inf }
0x17f5   :  { %v7637_v32 = vpop.f32.mrf.mxu0  ;;  %4423 = vmax.xlane.f32.xlu1 %v4422_v30  ;;  %v6241_v34 = vpop.f32.mrf.mxu1 }
0x17f6   :  { %v4431_v35 = vsel %vm2963_vm5, %v7637_v32, -inf }
0x17f7   :  { %v6256_v36 = vpop.f32.mrf.mxu0  ;;  %4432 = vmax.xlane.f32.xlu0 %v4431_v35  ;;  %v7641_v40 = vpop.f32.mrf.mxu1 }
0x17f8   :  { %v4428_v41 = vsel %vm2963_vm5, %v7641_v40, -inf }
0x17f9   :  { %v7645_v50 = vpop.f32.mrf.mxu0  ;;  %4429 = vmax.xlane.f32.xlu1 %v4428_v41  ;;  %v6251_v45 = vpop.f32.mrf.mxu1 }
0x17fa   :  { %v4437_v46 = vsel %vm2963_vm5, %v7645_v50, -inf }
0x17fb   :  { %v6266_v25 = vpop.f32.mrf.mxu0  ;;  %4438 = vmax.xlane.f32.xlu0 %v4437_v46  ;;  %v7649_v8 = vpop.f32.mrf.mxu1 }
0x17fc   :  { %v4434_v61 = vsel %vm2963_vm5, %v7649_v8, -inf }
0x17fd   :  { %v7653_v62 = vpop.f32.mrf.mxu0  ;;  %4435 = vmax.xlane.f32.xlu1 %v4434_v61  ;;  %v6261_v43 = vpop.f32.mrf.mxu1 }
0x17fe   :  { %v4443_v15 = vsel %vm2963_vm5, %v7653_v62, -inf }
0x17ff   :  { %v6276_v52 = vpop.f32.mrf.mxu0  ;;  %4444 = vmax.xlane.f32.xlu0 %v4443_v15  ;;  %v7657_v53 = vpop.f32.mrf.mxu1 }
0x1800   :  { %v4440_v9 = vsel %vm2963_vm5, %v7657_v53, -inf }
0x1801   :  { %4441 = vmax.xlane.f32.xlu1 %v4440_v9  ;;  %v6271_v54 = vpop.f32.mrf.mxu1 }
0x1802   :  { %v7661_v57 = vpop.f32.mrf.mxu0 }
0x1803   :  { %v4449_v63 = vsel %vm2963_vm5, %v7661_v57, -inf }
0x1804   :  { %v6286_v3 = vpop.f32.mrf.mxu0  ;;  %4450 = vmax.xlane.f32.xlu0 %v4449_v63  ;;  %v7665_v0 = vpop.f32.mrf.mxu1 }
0x1805   :  { %v4446_v19 = vsel %vm2963_vm5, %v7665_v0, -inf }
0x1806   :  { %4447 = vmax.xlane.f32.xlu1 %v4446_v19  ;;  %v6281_v13 = vpop.f32.mrf.mxu1 }
0x1836   :  { %v2966_v2 = vpop.xlane.xlu0 %2965 }
0x1837   :  { %v3012_v20 = vsub.f32 %v7541_v60, %v2966_v2 }
0x1839   :  { %v3028_v6 = vmul.f32 1.442695, %v3012_v20 }
0x183a   :  { %v2969_v11 = vpop.xlane.xlu1 %2968 }
0x183b   :  { %6510 = vpow2.f32 %v3028_v6  ;;  %v3013_v21 = vsub.f32 %v7545_v56, %v2969_v11 }
0x183d   :  { %v3030_v1 = vmul.f32 1.442695, %v3013_v21 }
0x183f   :  { %6512 = vpow2.f32 %v3030_v1 }
0x1842   :  { %v2972_v4 = vpop.xlane.xlu0 %2971 }
0x1843   :  { %v3014_v22 = vsub.f32 %v7551_v27, %v2972_v4 }
0x1845   :  { %v3032_v24 = vmul.f32 1.442695, %v3014_v22 }
0x1846   :  { %v2975_v44 = vpop.xlane.xlu0 %2974 }
0x1847   :  { %6514 = vpow2.f32 %v3032_v24  ;;  %v3015_v48 = vsub.f32 %v7549_v49, %v2975_v44 }
0x1848   :  { %v7673_v12 = vpop.eup %6510 }
0x1849   :  { %v3034_v28 = vmul.f32 1.442695, %v3015_v48  ;;  %v3060_v60 = vsel %vm2963_vm5, %v7673_v12, 0.0 }
0x184a   :  { %3061 = vadd.xlane.f32.xlu1 %v3060_v60 }
0x184b   :  { %6516 = vpow2.f32 %v3034_v28 }
0x184c   :  { %v7677_v30 = vpop.eup %6512  ;;  %v2981_v56 = vpop.xlane.xlu0 %2980 }
0x184d   :  { %v3017_v34 = vsub.f32 %v7557_v31, %v2981_v56  ;;  %v3063_v27 = vsel %vm2963_vm5, %v7677_v30, 0.0 }
0x184e   :  { %3064 = vadd.xlane.f32.xlu0 %v3063_v27  ;;  %v2978_v35 = vpop.xlane.xlu1 %2977 }
0x184f   :  { %v3038_v36 = vmul.f32 1.442695, %v3017_v34  ;;  %v3016_v49 = vsub.f32 %v7561_v33, %v2978_v35 }
0x1851   :  { %6518 = vpow2.f32 %v3038_v36  ;;  %v3036_v41 = vmul.f32 1.442695, %v3016_v49 }
0x1853   :  { %6520 = vpow2.f32 %v3036_v41 }
0x1854   :  { %v7683_v45 = vpop.eup %6514 }
0x1855   :  { %v3066_v46 = vsel %vm2963_vm5, %v7683_v45, 0.0 }
0x1856   :  { %3067 = vadd.xlane.f32.xlu1 %v3066_v46 }
0x1858   :  { %v7687_v25 = vpop.eup %6516  ;;  %v2987_v31 = vpop.xlane.xlu0 %2986 }
0x1859   :  { %v3019_v61 = vsub.f32 %v7565_v37, %v2987_v31  ;;  %v3069_v43 = vsel %vm2963_vm5, %v7687_v25, 0.0 }
0x185a   :  { %v2984_v15 = vpop.xlane.xlu1 %2983  ;;  %3070 = vadd.xlane.f32.xlu0 %v3069_v43 }
0x185b   :  { %v3042_v33 = vmul.f32 1.442695, %v3019_v61  ;;  %v3018_v52 = vsub.f32 %v7569_v47, %v2984_v15 }
0x185d   :  { %6522 = vpow2.f32 %v3042_v33  ;;  %v3040_v9 = vmul.f32 1.442695, %v3018_v52 }
0x185e   :  { %v7693_v54 = vpop.eup %6518 }
0x185f   :  { %6524 = vpow2.f32 %v3040_v9  ;;  %v3075_v63 = vsel %vm2963_vm5, %v7693_v54, 0.0 }
0x1860   :  { %v7697_v3 = vpop.eup %6520  ;;  %3076 = vadd.xlane.f32.xlu0 %v3075_v63  ;;  %v2993_v37 = vpop.xlane.xlu0 %2992 }
0x1861   :  { %v3021_v19 = vsub.f32 %v7573_v38, %v2993_v37  ;;  %v3072_v13 = vsel %vm2963_vm5, %v7697_v3, 0.0 }
0x1862   :  { %v2990_v2 = vpop.xlane.xlu1 %2989  ;;  %3073 = vadd.xlane.f32.xlu1 %v3072_v13 }
0x1863   :  { %v3046_v47 = vmul.f32 1.442695, %v3021_v19  ;;  %v3020_v20 = vsub.f32 %v7577_v26, %v2990_v2 }
0x1864   :  { %v2999_v6 = vpop.xlane.xlu0 %2998 }
0x1865   :  { %6526 = vpow2.f32 %v3046_v47  ;;  %v3044_v11 = vmul.f32 1.442695, %v3020_v20  ;;  %v3023_v21 = vsub.f32 %v7581_v10, %v2999_v6 }
0x1866   :  { %v2996_v1 = vpop.xlane.xlu1 %2995 }
0x1867   :  { %6528 = vpow2.f32 %v3044_v11  ;;  %v3050_v4 = vmul.f32 1.442695, %v3023_v21  ;;  %v3022_v22 = vsub.f32 %v7585_v59, %v2996_v1 }
0x1868   :  { %v3005_v24 = vpop.xlane.xlu0 %3004 }
0x1869   :  { %6530 = vpow2.f32 %v3050_v4  ;;  %v3048_v38 = vmul.f32 1.442695, %v3022_v22  ;;  %v3025_v44 = vsub.f32 %v7589_v51, %v3005_v24 }
0x186a   :  { %v7706_v48 = vpop.eup %6522  ;;  %v3002_v28 = vpop.xlane.xlu1 %3001 }
0x186b   :  { %6532 = vpow2.f32 %v3048_v38  ;;  %v3054_v26 = vmul.f32 1.442695, %v3025_v44  ;;  %v3024_v60 = vsub.f32 %v7593_v16, %v3002_v28  ;;  %v3081_v10 = vsel %vm2963_vm5, %v7706_v48, 0.0 }
0x186c   :  { %v7711_v56 = vpop.eup %6524  ;;  %3082 = vadd.xlane.f32.xlu0 %v3081_v10  ;;  %v3011_v34 = vpop.xlane.xlu0 %3010 }
0x186d   :  { %6534 = vpow2.f32 %v3054_v26  ;;  %v3052_v59 = vmul.f32 1.442695, %v3024_v60  ;;  %v3027_v27 = vsub.f32 %v7597_v55, %v3011_v34  ;;  %v3078_v51 = vsel %vm2963_vm5, %v7711_v56, 0.0 }
0x186e   :  { %v3008_v35 = vpop.xlane.xlu1 %3007  ;;  %3079 = vadd.xlane.f32.xlu1 %v3078_v51 }
0x186f   :  { %6536 = vpow2.f32 %v3052_v59  ;;  %v3058_v36 = vmul.f32 1.442695, %v3027_v27  ;;  %v3026_v16 = vsub.f32 %v7601_v17, %v3008_v35 }
0x1870   :  { %v4409_v49 = vpop.xlane.xlu0 %4408 }
0x1871   :  { %6538 = vpow2.f32 %v3058_v36  ;;  %v3056_v41 = vmul.f32 1.442695, %v3026_v16  ;;  %v4453_v46 = vsub.f32 %v7605_v18, %v4409_v49 }
0x1872   :  { %v7718_v31 = vpop.eup %6526  ;;  %v4406_v61 = vpop.xlane.xlu1 %4405 }
0x1873   :  { %6540 = vpow2.f32 %v3056_v41  ;;  %v4470_v43 = vmul.f32 1.442695, %v4453_v46  ;;  %v4452_v55 = vsub.f32 %v7609_v5, %v4406_v61  ;;  %v3087_v15 = vsel %vm2963_vm5, %v7718_v31, 0.0 }
0x1874   :  { %v7723_v33 = vpop.eup %6528  ;;  %3088 = vadd.xlane.f32.xlu0 %v3087_v15  ;;  %v4415_v52 = vpop.xlane.xlu0 %4414 }
0x1875   :  { %6542 = vpow2.f32 %v4470_v43  ;;  %v4468_v17 = vmul.f32 1.442695, %v4452_v55  ;;  %v4455_v9 = vsub.f32 %v7613_v14, %v4415_v52  ;;  %v3084_v18 = vsel %vm2963_vm5, %v7723_v33, 0.0 }
0x1876   :  { %v7728_v63 = vpop.eup %6530  ;;  %v4412_v37 = vpop.xlane.xlu1 %4411  ;;  %3085 = vadd.xlane.f32.xlu1 %v3084_v18 }
0x1877   :  { %6544 = vpow2.f32 %v4468_v17  ;;  %v4474_v5 = vmul.f32 1.442695, %v4455_v9  ;;  %v4454_v19 = vsub.f32 %v7617_v23, %v4412_v37  ;;  %v3093_v13 = vsel %vm2963_vm5, %v7728_v63, 0.0 }
0x1878   :  { %v7733_v2 = vpop.eup %6532  ;;  %3094 = vadd.xlane.f32.xlu0 %v3093_v13  ;;  %v4421_v47 = vpop.xlane.xlu0 %4420 }
0x1879   :  { %6546 = vpow2.f32 %v4474_v5  ;;  %v4472_v14 = vmul.f32 1.442695, %v4454_v19  ;;  %v4457_v20 = vsub.f32 %v7621_v58, %v4421_v47  ;;  %v3090_v6 = vsel %vm2963_vm5, %v7733_v2, 0.0 }
0x187a   :  { %v7738_v11 = vpop.eup %6534  ;;  %v4418_v21 = vpop.xlane.xlu1 %4417  ;;  %3091 = vadd.xlane.f32.xlu1 %v3090_v6 }
0x187b   :  { %6548 = vpow2.f32 %v4472_v14  ;;  %v4478_v23 = vmul.f32 1.442695, %v4457_v20  ;;  %v4456_v1 = vsub.f32 %v7625_v42, %v4418_v21  ;;  %v3099_v4 = vsel %vm2963_vm5, %v7738_v11, 0.0 }
0x187c   :  { %v7743_v22 = vpop.eup %6536  ;;  %3100 = vadd.xlane.f32.xlu0 %v3099_v4  ;;  %v4427_v24 = vpop.xlane.xlu0 %4426 }
0x187d   :  { %6550 = vpow2.f32 %v4478_v23  ;;  %v4476_v58 = vmul.f32 1.442695, %v4456_v1  ;;  %v4459_v38 = vsub.f32 %v7629_v39, %v4427_v24  ;;  %v3096_v44 = vsel %vm2963_vm5, %v7743_v22, 0.0 }
0x187e   :  { %v7748_v28 = vpop.eup %6538  ;;  %v4424_v26 = vpop.xlane.xlu1 %4423  ;;  %3097 = vadd.xlane.f32.xlu1 %v3096_v44 }
0x187f   :  { %6552 = vpow2.f32 %v4476_v58  ;;  %v4482_v42 = vmul.f32 1.442695, %v4459_v38  ;;  %v4458_v60 = vsub.f32 %v7633_v29, %v4424_v26  ;;  %v3105_v10 = vsel %vm2963_vm5, %v7748_v28, 0.0 }
0x1880   :  { %v7753_v34 = vpop.eup %6540  ;;  %3106 = vadd.xlane.f32.xlu0 %v3105_v10  ;;  %v4433_v59 = vpop.xlane.xlu0 %4432 }
0x1881   :  { %6554 = vpow2.f32 %v4482_v42  ;;  %v4480_v39 = vmul.f32 1.442695, %v4458_v60  ;;  %v4461_v27 = vsub.f32 %v7637_v32, %v4433_v59  ;;  %v3102_v51 = vsel %vm2963_vm5, %v7753_v34, 0.0 }
0x1882   :  { %v7758_v35 = vpop.eup %6542  ;;  %v4430_v36 = vpop.xlane.xlu1 %4429  ;;  %3103 = vadd.xlane.f32.xlu1 %v3102_v51 }
0x1883   :  { %6556 = vpow2.f32 %v4480_v39  ;;  %v4486_v29 = vmul.f32 1.442695, %v4461_v27  ;;  %v4460_v16 = vsub.f32 %v7641_v40, %v4430_v36  ;;  %v4503_v49 = vsel %vm2963_vm5, %v7758_v35, 0.0 }
0x1884   :  { %v7763_v41 = vpop.eup %6544  ;;  %4504 = vadd.xlane.f32.xlu0 %v4503_v49  ;;  %v4439_v46 = vpop.xlane.xlu0 %4438 }
0x1885   :  { %6558 = vpow2.f32 %v4486_v29  ;;  %v4484_v32 = vmul.f32 1.442695, %v4460_v16  ;;  %v4463_v61 = vsub.f32 %v7645_v50, %v4439_v46  ;;  %v4500_v43 = vsel %vm2963_vm5, %v7763_v41, 0.0 }
0x1886   :  { %v7768_v55 = vpop.eup %6546  ;;  %v4436_v15 = vpop.xlane.xlu1 %4435  ;;  %4501 = vadd.xlane.f32.xlu1 %v4500_v43 }
0x1887   :  { %6560 = vpow2.f32 %v4484_v32  ;;  %v4490_v40 = vmul.f32 1.442695, %v4463_v61  ;;  %v4462_v52 = vsub.f32 %v7649_v8, %v4436_v15  ;;  %v4509_v17 = vsel %vm2963_vm5, %v7768_v55, 0.0 }
0x1888   :  { %v7773_v9 = vpop.eup %6548  ;;  %4510 = vadd.xlane.f32.xlu0 %v4509_v17  ;;  %v4445_v18 = vpop.xlane.xlu0 %4444 }
0x1889   :  { %6562 = vpow2.f32 %v4490_v40  ;;  %v4488_v50 = vmul.f32 1.442695, %v4462_v52  ;;  %v4465_v37 = vsub.f32 %v7653_v62, %v4445_v18  ;;  %v4506_v5 = vsel %vm2963_vm5, %v7773_v9, 0.0 }
0x188a   :  { %v7778_v19 = vpop.eup %6550  ;;  %v4442_v13 = vpop.xlane.xlu1 %4441  ;;  %4507 = vadd.xlane.f32.xlu1 %v4506_v5 }
0x188b   :  { %6564 = vpow2.f32 %v4488_v50  ;;  %v4494_v8 = vmul.f32 1.442695, %v4465_v37  ;;  %v4464_v47 = vsub.f32 %v7657_v53, %v4442_v13  ;;  %v4515_v14 = vsel %vm2963_vm5, %v7778_v19, 0.0 }
0x188c   :  { %v7783_v20 = vpop.eup %6552  ;;  %4516 = vadd.xlane.f32.xlu0 %v4515_v14 }
0x188d   :  { %6566 = vpow2.f32 %v4494_v8  ;;  %v4492_v6 = vmul.f32 1.442695, %v4464_v47  ;;  %v4451_v62 = vpop.xlane.xlu0 %4450  ;;  %v4512_v21 = vsel %vm2963_vm5, %v7783_v20, 0.0 }
0x188e   :  { %v7787_v23 = vpop.eup %6554  ;;  %v4467_v1 = vsub.f32 %v7661_v57, %v4451_v62  ;;  %4513 = vadd.xlane.f32.xlu1 %v4512_v21 }
0x188f   :  { %6568 = vpow2.f32 %v4492_v6  ;;  %v4448_v4 = vpop.xlane.xlu1 %4447  ;;  %v4521_v53 = vsel %vm2963_vm5, %v7787_v23, 0.0 }
0x1890   :  { %v7792_v24 = vpop.eup %6556  ;;  %v4498_v58 = vmul.f32 1.442695, %v4467_v1  ;;  %v4466_v38 = vsub.f32 %v7665_v0, %v4448_v4  ;;  %4522 = vadd.xlane.f32.xlu0 %v4521_v53 }
0x1891   :  { %v4518_v44 = vsel %vm2963_vm5, %v7792_v24, 0.0 }
0x1892   :  { %v7797_v26 = vpop.eup %6558  ;;  %6570 = vpow2.f32 %v4498_v58  ;;  %v4496_v42 = vmul.f32 1.442695, %v4466_v38  ;;  %4519 = vadd.xlane.f32.xlu1 %v4518_v44 }
0x1893   :  { %v4527_v57 = vsel %vm2963_vm5, %v7797_v26, 0.0 }
0x1894   :  { %v7801_v60 = vpop.eup %6560  ;;  %6572 = vpow2.f32 %v4496_v42  ;;  %4528 = vadd.xlane.f32.xlu0 %v4527_v57 }
0x1895   :  { %v4524_v10 = vsel %vm2963_vm5, %v7801_v60, 0.0 }
0x1896   :  { %v7805_v0 = vpop.eup %6562  ;;  %4525 = vadd.xlane.f32.xlu1 %v4524_v10 }
0x1897   :  { %v4533_v59 = vsel %vm2963_vm5, %v7805_v0, 0.0 }
0x1898   :  { %v7809_v39 = vpop.eup %6564  ;;  %4534 = vadd.xlane.f32.xlu0 %v4533_v59 }
0x1899   :  { %v4530_v27 = vsel %vm2963_vm5, %v7809_v39, 0.0 }
0x189a   :  { %v7813_v51 = vpop.eup %6566  ;;  %4531 = vadd.xlane.f32.xlu1 %v4530_v27 }
0x189b   :  { %v4539_v36 = vsel %vm2963_vm5, %v7813_v51, 0.0 }
0x189c   :  { %v7817_v29 = vpop.eup %6568  ;;  %4540 = vadd.xlane.f32.xlu0 %v4539_v36 }
0x189d   :  { %v4536_v16 = vsel %vm2963_vm5, %v7817_v29, 0.0 }
0x189e   :  { %4537 = vadd.xlane.f32.xlu1 %v4536_v16 }
0x189f   :  { %v7821_v49 = vpop.eup %6570 }
0x18a0   :  { %v4545_v46 = vsel %vm2963_vm5, %v7821_v49, 0.0 }
0x18a1   :  { %v7825_v32 = vpop.eup %6572  ;;  %4546 = vadd.xlane.f32.xlu0 %v4545_v46 }
0x18a2   :  { %v4542_v61 = vsel %vm2963_vm5, %v7825_v32, 0.0 }
0x18a3   :  { %4543 = vadd.xlane.f32.xlu1 %v4542_v61 }
0x18d3   :  { %v3062_v15 = vpop.xlane.xlu1 %3061 }
0x18d4   :  { %6574 = vrcp.f32 %v3062_v15 }
0x18d7   :  { %v3065_v43 = vpop.xlane.xlu0 %3064 }
0x18d8   :  { %6576 = vrcp.f32 %v3065_v43 }
0x18df   :  { %v3068_v52 = vpop.xlane.xlu1 %3067 }
0x18e0   :  { %6578 = vrcp.f32 %v3068_v52 }
0x18e1   :  { %v6575_v42 = vpop.eup %6574 }
0x18e3   :  { %v3071_v40 = vpop.xlane.xlu0 %3070 }
0x18e4   :  { %6580 = vrcp.f32 %v3071_v40 }
0x18e5   :  { %v6577_v57 = vpop.eup %6576 }
0x18e9   :  { %v3077_v17 = vpop.xlane.xlu0 %3076 }
0x18ea   :  { %6582 = vrcp.f32 %v3077_v17 }
0x18eb   :  { %v3074_v18 = vpop.xlane.xlu1 %3073 }
0x18ed   :  { %v6579_v59 = vpop.eup %6578 }
0x18f1   :  { %v6581_v27 = vpop.eup %6580 }
0x18f5   :  { %v3083_v50 = vpop.xlane.xlu0 %3082 }
0x18f7   :  { %v3080_v37 = vpop.xlane.xlu1 %3079  ;;  %v6583_v16 = vpop.eup %6582 }
0x18fd   :  { %v3089_v5 = vpop.xlane.xlu0 %3088 }
0x18ff   :  { %v3086_v13 = vpop.xlane.xlu1 %3085 }
0x1901   :  { %v3095_v8 = vpop.xlane.xlu0 %3094 }
0x1903   :  { %v3092_v47 = vpop.xlane.xlu1 %3091 }
0x1905   :  { %v3101_v14 = vpop.xlane.xlu0 %3100 }
0x1907   :  { %v7829_v6 = vpop.xlane.xlu1 %3097 }
0x1909   :  { %v7831_v62 = vpop.xlane.xlu0 %3106 }
0x190b   :  { %v7833_v21 = vpop.xlane.xlu1 %3103 }
0x190d   :  { %v4505_v1 = vpop.xlane.xlu0 %4504 }
0x190f   :  { %v4502_v4 = vpop.xlane.xlu1 %4501 }
0x1910   :  { %6584 = vrcp.f32 %v4502_v4 }
0x1911   :  { %6586 = vrcp.f32 %v4505_v1  ;;  %v4511_v53 = vpop.xlane.xlu0 %4510  ;;  %v3109_v1 = vmul.f32 %v6575_v42, %v7673_v12 }
0x1912   :  { %6588 = vrcp.f32 %v4511_v53 }
0x1913   :  { %6590 = vrcp.f32 %v3074_v18  ;;  %v4508_v58 = vpop.xlane.xlu1 %4507 }
0x1914   :  { %6592 = vrcp.f32 %v4508_v58  ;;  %v3115_v58 = vmul.f32 %v6581_v27, %v7687_v25 }
0x1915   :  { %6594 = vrcp.f32 %v3083_v50  ;;  %v4517_v38 = vpop.xlane.xlu0 %4516  ;;  %v6668_v50 = vmov 1983009808  }
0x1916   :  { %6596 = vrcp.f32 %v4517_v38 }
0x1917   :  { %6598 = vrcp.f32 %v3080_v37  ;;  %v4514_v44 = vpop.xlane.xlu1 %4513  ;;  %v4615_v37 = vunpack.c.l.s4 %v6668_v50 }
0x1918   :  { %6600 = vrcp.f32 %v4514_v44  ;;  %v3111_v44 = vmul.f32 %v6577_v57, %v7677_v30 }
0x1919   :  { %6602 = vrcp.f32 %v3089_v5  ;;  %v4523_v10 = vpop.xlane.xlu0 %4522  ;;  %v4617_v5 = vlaneseq  ;;  %v4616_v25 = vunpack.c.0.s8 %v4615_v37 }
0x191a   :  { %6604 = vrcp.f32 %v4523_v10 }
0x191b   :  { %6606 = vrcp.f32 %v3086_v13  ;;  %v4520_v36 = vpop.xlane.xlu1 %4519  ;;  %v4618_v27 = vshrl.u32 %v4617_v5, 7 }
0x191c   :  { %6608 = vrcp.f32 %v4520_v36 }
0x191d   :  { %v6585_v46 = vpop.eup %6584  ;;  %6610 = vrcp.f32 %v3095_v8  ;;  %v4529_v61 = vpop.xlane.xlu0 %4528 }
0x191e   :  { %v6587_v43 = vpop.eup %6586  ;;  %6612 = vrcp.f32 %v3092_v47  ;;  %v4549_v40 = vmul.f32 %v6585_v46, %v7763_v41  ;;  %v6669_v47 = vmov 1934713408   ;;  %v3113_v41 = vmul.f32 %v6579_v59, %v7683_v45 }
0x191f   :  { %v6589_v15 = vpop.eup %6588  ;;  %6614 = vrcp.f32 %v3101_v14  ;;  %v4526_v52 = vpop.xlane.xlu1 %4525  ;;  %v4551_v8 = vmul.f32 %v6587_v43, %v7758_v35  ;;  %v4679_v53 = vunpack.c.l.s4 %v6669_v47 }
0x1920   :  { %v6591_v17 = vpop.eup %6590  ;;  %v4555_v18 = vmul.f32 %v6589_v15, %v7768_v55  ;;  %6616 = vrcp.f32 %v4526_v52  ;;  %v4580_v12 = vadd.f32 %v4549_v40, %v3109_v1  ;;  %v3119_v15 = vmul.f32 %v6583_v16, %v7693_v54 }
0x1921   :  { %v6593_v13 = vpop.eup %6592  ;;  %6618 = vrcp.f32 %v4529_v61  ;;  %v4535_v4 = vpop.xlane.xlu0 %4534  ;;  %v4581_v45 = vadd.f32 %v4551_v8, %v3111_v44  ;;  %v3117_v40 = vmul.f32 %v6591_v17, %v7697_v3 }
0x1922   :  { %v6595_v14 = vpop.eup %6594  ;;  %v4553_v55 = vmul.f32 %v6593_v13, %v7773_v9  ;;  %6620 = vrcp.f32 %v4535_v4  ;;  %v4583_v10 = vadd.f32 %v4555_v18, %v3115_v58  ;;  %v4680_v9 = vunpack.c.0.s8 %v4679_v53 }
0x1923   :  { %v6597_v38 = vpop.eup %6596  ;;  %6622 = vrcp.f32 %v7829_v6  ;;  %v4532_v42 = vpop.xlane.xlu1 %4531  ;;  %v3123_v52 = vmul.f32 %v6595_v14, %v7706_v48  ;;  %v7855_v53 = vsub.s32 %v4616_v25, %v4618_v27 }
0x1924   :  { %v6599_v35 = vpop.eup %6598  ;;  %v4582_v36 = vadd.f32 %v4553_v55, %v3113_v41  ;;  %v4559_v46 = vmul.f32 %v6597_v38, %v7778_v19  ;;  %6624 = vrcp.f32 %v4532_v42  ;;  %v4596_v19 = vmul.f32 0.5, %v4580_v12 }
0x1925   :  { %v6601_v61 = vpop.eup %6600  ;;  %v4541_v59 = vpop.xlane.xlu0 %4540  ;;  %v4599_v37 = vmul.f32 0.5, %v4583_v10  ;;  %v3121_v16 = vmul.f32 %v6599_v35, %v7711_v56 }
0x1926   :  { %v6603_v43 = vpop.eup %6602  ;;  %v4598_v30 = vmul.f32 0.5, %v4582_v36  ;;  %v4557_v6 = vmul.f32 %v6601_v61, %v7783_v20  ;;  %6626 = vrcp.f32 %v4541_v59  ;;  %v4585_v5 = vadd.f32 %v4559_v46, %v3119_v15 }
0x1927   :  { %v6605_v57 = vpop.eup %6604  ;;  %6628 = vrcp.f32 %v7831_v62  ;;  %v4538_v18 = vpop.xlane.xlu1 %4537  ;;  %v4597_v20 = vmul.f32 0.5, %v4581_v45  ;;  %v3127_v47 = vmul.f32 %v6603_v43, %v7718_v31 }
0x1928   :  { %v6607_v50 = vpop.eup %6606  ;;  %v4563_v13 = vmul.f32 %v6605_v57, %v7787_v23  ;;  %6630 = vrcp.f32 %v4538_v18  ;;  %v4584_v3 = vadd.f32 %v4557_v6, %v3117_v40  ;;  %v4612_v8 = vcombine.low %v4596_v19, %v4598_v30 }
0x1929   :  { %v6609_v54 = vpop.eup %6608  ;;  %6632 = vrcp.f32 %v7833_v21  ;;  %v7857_v23 = vsub.s32 %v4680_v9, %v4618_v27  ;;  %v4601_v56 = vmul.f32 0.5, %v4585_v5  ;;  %v4628_v55 = vcombine.low %v4597_v20, %v4599_v37 }
0x192a   :  { %v6611_v1 = vpop.eup %6610  ;;  %v4587_v17 = vadd.f32 %v4563_v13, %v3123_v52  ;;  %v4561_v48 = vmul.f32 %v6609_v54, %v7792_v24  ;;  %v4547_v62 = vpop.xlane.xlu0 %4546  ;;  %v3125_v44 = vmul.f32 %v6607_v50, %v7723_v33  ;;  %v4613_v24 = vcombine.high %v4596_v19, %v4598_v30 }
0x192b   :  { %v6613_v4 = vpop.eup %6612  ;;  %6634 = vrcp.f32 %v4547_v62  ;;  %v4629_v12 = vcombine.high %v4597_v20, %v4599_v37  ;;  %v4600_v35 = vmul.f32 0.5, %v4584_v3  ;;  %v4620_v10 = vrot.slane %v4612_v8, %v7855_v53 }
0x192c   :  { %v6615_v14 = vpop.eup %6614  ;;  %v4603_v41 = vmul.f32 0.5, %v4587_v17  ;;  %v4586_v21 = vadd.f32 %v4561_v48, %v3121_v16  ;;  %v4544_v58 = vpop.xlane.xlu1 %4543  ;;  %v3131_v61 = vmul.f32 %v6611_v1, %v7728_v63  ;;  %v3129_v45 = vmul.f32 %v6613_v4, %v7733_v2 }
0x192d   :  { %v6617_v38 = vpop.eup %6616  ;;  %6636 = vrcp.f32 %v4544_v58  ;;  %v3135_v33 = vmul.f32 %v6615_v14, %v7738_v11  ;;  %v4636_v43 = vrot.slane %v4628_v55, %v7855_v53  ;;  %v7869_v57 = vrot.slane %v4613_v24, %v7855_v53 }
0x192e   :  { %v6619_v42 = vpop.eup %6618  ;;  %v4602_v31 = vmul.f32 0.5, %v4586_v21  ;;  %v4660_v36 = vcombine.low %v4601_v56, %v4603_v41  ;;  %v4565_v59 = vmul.f32 %v6617_v38, %v7801_v60  ;;  %v4661_v25 = vcombine.high %v4601_v56, %v4603_v41 }
0x192f   :  { %v6621_v46 = vpop.eup %6620  ;;  %v4567_v6 = vmul.f32 %v6619_v42, %v7797_v26  ;;  %v7872_v63 = vrot.slane %v4629_v12, %v7855_v53  ;;  %v4676_v18 = vcombine.low %v4620_v10, %v4636_v43 }
0x1930   :  { %v6623_v27 = vpop.eup %6622  ;;  %v4571_v9 = vmul.f32 %v6621_v46, %v7805_v0  ;;  %v4644_v15 = vcombine.low %v4600_v35, %v4602_v31  ;;  %v4645_v2 = vcombine.high %v4600_v35, %v4602_v31  ;;  %v4668_v11 = vrot.slane %v4660_v36, %v7855_v53 }
0x1931   :  { %v6625_v30 = vpop.eup %6624  ;;  %v4677_v0 = vcombine.high %v4620_v10, %v4636_v43  ;;  %v4588_v19 = vadd.f32 %v4565_v59, %v3125_v44  ;;  %v4675_v26 = vrot.slane %v4661_v25, %v7855_v53  ;;  %v3133_v5 = vmul.f32 %v6623_v27, %v7743_v22 }
0x1932   :  { %v4569_v60 = vmul.f32 %v6625_v30, %v7809_v39  ;;  %v4652_v40 = vrot.slane %v4644_v15, %v7855_v53  ;;  %v4659_v50 = vrot.slane %v4645_v2, %v7855_v53  ;;  %v4591_v13 = vadd.f32 %v4571_v9, %v3131_v61 }
0x1933   :  { %v6627_v52 = vpop.eup %6626  ;;  %v4692_v3 = vcombine.low %v7869_v57, %v7872_v63  ;;  %v4589_v62 = vadd.f32 %v4567_v6, %v3127_v47  ;;  %v4691_v4 = vrot.slane %v4677_v0, %v7857_v23  ;;  %v4604_v56 = vmul.f32 0.5, %v4588_v19 }
0x1934   :  { %v6629_v37 = vpop.eup %6628  ;;  %v4590_v54 = vadd.f32 %v4569_v60, %v3129_v45  ;;  %v4709_v16 = vcombine.high %v4652_v40, %v4668_v11  ;;  %v4575_v39 = vmul.f32 %v6627_v52, %v7813_v51  ;;  %v4708_v1 = vcombine.low %v4652_v40, %v4668_v11 }
0x1935   :  { %v6631_v20 = vpop.eup %6630  ;;  %v4724_v17 = vcombine.low %v4659_v50, %v4675_v26  ;;  %v7887_v41 = vrot.slane %v4676_v18, %v7857_v23  ;;  %v4607_v58 = vmul.f32 0.5, %v4591_v13  ;;  %v4725_v47 = vcombine.high %v4659_v50, %v4675_v26 }
0x1936   :  { %v6633_v48 = vpop.eup %6632  ;;  %v4606_v8 = vmul.f32 0.5, %v4590_v54  ;;  %v4723_v14 = vrot.slane %v4709_v16, %v7857_v23  ;;  %v4573_v22 = vmul.f32 %v6631_v20, %v7817_v29  ;;  %v7890_v51 = vrot.slane %v4708_v1, %v7857_v23 }
0x1937   :  { %v4732_v38 = vrot.slane %v4724_v17, %v7857_v23  ;;  %v3139_v44 = vmul.f32 %v6629_v37, %v7748_v28  ;;  %v4593_v24 = vadd.f32 %v4575_v39, %v3135_v33  ;;  %v4605_v35 = vmul.f32 0.5, %v4589_v62 }
0x1938   :  { %v6635_v21 = vpop.eup %6634  ;;  %v4742_v55 = vcombine.low %v4691_v4, %v4723_v14  ;;  %v4741_v29 = vcombine.high %v7887_v41, %v7890_v51  ;;  %v4700_v31 = vrot.slane %v4692_v3, %v7857_v23  ;;  %v4693_v10 = vcombine.high %v7869_v57, %v7872_v63 }
0x1939   :  { %v4579_v12 = vmul.f32 %v6635_v21, %v7821_v49  ;;  %v4748_v36 = vcombine.low %v4604_v56, %v4606_v8  ;;  %v3137_v46 = vmul.f32 %v6633_v48, %v7753_v34  ;;  %v4592_v28 = vadd.f32 %v4573_v22, %v3133_v5 }
0x193a   :  { %v6637_v42 = vpop.eup %6636  ;;  %4894 = vrot.lane.b32.xlu0 %v4742_v55, %s6670_s23  ;;  %4886 = vrot.lane.b32.xlu1 %v4741_v29, %s6671_s24  ;;  %v4745_v45 = vcombine.high %v4700_v31, %v4732_v38  ;;  %v4739_v59 = vrot.slane %v4725_v47, %v7857_v23  ;;  %v4764_v25 = vcombine.low %v4605_v35, %v4607_v58  ;;  %v4609_v33 = vmul.f32 0.5, %v4593_v24 }
0x193b   :  { %v4595_v61 = vadd.f32 %v4579_v12, %v3139_v44  ;;  %v4577_v49 = vmul.f32 %v6637_v42, %v7825_v32  ;;  %v4740_v27 = vcombine.low %v7887_v41, %v7890_v51  ;;  %v4743_v15 = vcombine.high %v4691_v4, %v4723_v14  ;;  %v5004_v42 = vld [vmem:[%s8134_s1 + $0x90] sm:$0xff] }
0x193c   :  { %v4707_v34 = vrot.slane %v4693_v10, %v7857_v23  ;;  %v4756_v32 = vrot.slane %v4748_v36, %v7855_v53  ;;  %v4749_v30 = vcombine.high %v4604_v56, %v4606_v8  ;;  %v4608_v6 = vmul.f32 0.5, %v4592_v28  ;;  %6287 = vmatprep.subr.mxu1 %v5004_v42  ;;  %v5001_v10 = vld [vmem:[%s8134_s1 + $0x78] sm:$0xff]  ;;  %v5000_v36 = vld [vmem:[%s8134_s1 + $0x70] sm:$0xff]  ;;  %v4998_v28 = vld [vmem:[%s8134_s1 + $0x60] sm:$0xff] }
0x193d   :  { %v4611_v9 = vmul.f32 0.5, %v4595_v61  ;;  %v4594_v43 = vadd.f32 %v4577_v49, %v3137_v46  ;;  %v4772_v40 = vrot.slane %v4764_v25, %v7855_v53  ;;  %v4744_v11 = vcombine.low %v4700_v31, %v4732_v38  ;;  %6288 = vmatpush3.msra.mxu1 %v5004_v42  ;;  %v4999_v46 = vld [vmem:[%s8134_s1 + $0x68] sm:$0xff]  ;;  %v4997_v61 = vld [vmem:[%s8134_s1 + $0x58] sm:$0xff] }
0x193e   :  { %4918 = vrot.lane.b32.xlu0 %v4745_v45, %s6672_s25  ;;  %4902 = vrot.lane.b32.xlu1 %v4743_v15, %s6673_s26  ;;  %v4747_v60 = vcombine.high %v4707_v34, %v4739_v59  ;;  %v4765_v52 = vcombine.high %v4605_v35, %v4607_v58  ;;  %v4763_v26 = vrot.slane %v4749_v30, %v7855_v53  ;;  %v5003_v35 = vld [vmem:[%s8134_s1 + $0x88] sm:$0xff] }
0x193f   :  { %v4610_v57 = vmul.f32 0.5, %v4594_v43  ;;  %v4796_v63 = vcombine.low %v4609_v33, %v4611_v9  ;;  %v4797_v2 = vcombine.high %v4609_v33, %v4611_v9  ;;  %v4813_v18 = vcombine.high %v4756_v32, %v4772_v40  ;;  %6289 = vmatprep.subr.mxu1 %v5003_v35 }
0x1940   :  { %v4812_v50 = vcombine.low %v4756_v32, %v4772_v40  ;;  %v4746_v16 = vcombine.low %v4707_v34, %v4739_v59  ;;  %v4779_v1 = vrot.slane %v4765_v52, %v7855_v53  ;;  %6290 = vmatpush3.msra.mxu1 %v5003_v35 }
0x1941   :  { %v4780_v0 = vcombine.low %v4608_v6, %v4610_v57  ;;  %v4781_v19 = vcombine.high %v4608_v6, %v4610_v57  ;;  %v4804_v5 = vrot.slane %v4796_v63, %v7855_v53  ;;  %v4811_v54 = vrot.slane %v4797_v2, %v7855_v53 }
0x1942   :  { %4934 = vrot.lane.b32.xlu0 %v4747_v60, %s6674_s27  ;;  %4910 = vrot.lane.b32.xlu1 %v4744_v11, %s6661_s5  ;;  %v4827_v17 = vrot.slane %v4813_v18, %v7857_v23  ;;  %v7924_v62 = vrot.slane %v4812_v50, %v7857_v23  ;;  %v4828_v4 = vcombine.low %v4763_v26, %v4779_v1 }
0x1943   :  { %v4788_v37 = vrot.slane %v4780_v0, %v7855_v53  ;;  %v4795_v13 = vrot.slane %v4781_v19, %v7855_v53  ;;  %v4829_v55 = vcombine.high %v4763_v26, %v4779_v1 }
0x1944   :  { %v4836_v58 = vrot.slane %v4828_v4, %v7857_v23 }
0x1945   :  { %v4845_v20 = vcombine.high %v4788_v37, %v4804_v5  ;;  %v4844_v39 = vcombine.low %v4788_v37, %v4804_v5  ;;  %v4860_v3 = vcombine.low %v4795_v13, %v4811_v54  ;;  %v4861_v22 = vcombine.high %v4795_v13, %v4811_v54 }
0x1946   :  { %4926 = vrot.lane.b32.xlu1 %v4746_v16, %s6663_s18  ;;  %v4843_v24 = vrot.slane %v4829_v55, %v7857_v23 }
0x1947   :  { %v4859_v48 = vrot.slane %v4845_v20, %v7857_v23  ;;  %v7927_v8 = vrot.slane %v4844_v39, %v7857_v23  ;;  %v4868_v53 = vrot.slane %v4860_v3, %v7857_v23  ;;  %v4875_v44 = vrot.slane %v4861_v22, %v7857_v23  ;;  %v5002_v23 = vld [vmem:[%s8134_s1 + $0x80] sm:$0xff] }
0x1948   :  { %6291 = vmatprep.subr.mxu1 %v5002_v23 }
0x1949   :  { %v4878_v14 = vcombine.low %v4827_v17, %v4859_v48  ;;  %v4877_v56 = vcombine.high %v7924_v62, %v7927_v8  ;;  %v4876_v21 = vcombine.low %v7924_v62, %v7927_v8  ;;  %v4880_v38 = vcombine.low %v4836_v58, %v4868_v53  ;;  %6292 = vmatpush3.msra.mxu1 %v5002_v23 }
0x194a   :  { %v4879_v47 = vcombine.high %v4827_v17, %v4859_v48  ;;  %v4882_v12 = vcombine.low %v4843_v24, %v4875_v44  ;;  %v4881_v29 = vcombine.high %v4836_v58, %v4868_v53  ;;  %v4883_v31 = vcombine.high %v4843_v24, %v4875_v44  ;;  %6293 = vmatprep.subr.mxu1 %v5001_v10  ;;  %v5093_v44 = vld [vmem:[%s8134_s1 + $0xa0] sm:$0xff]  ;;  %v5739_v24 = vld [vmem:[%s8134_s1 + $0x98] ss:$0 sm:$0xff] }
0x194b   :  { %4896 = vrot.lane.b32.xlu0 %v4878_v14, %s6670_s23  ;;  %4888 = vrot.lane.b32.xlu1 %v4877_v56, %s6671_s24 }
0x194c   :  { %6294 = vmatpush3.msra.mxu1 %v5001_v10  ;;  %6306 = vmatprep.subr.mxu0 %v5093_v44  ;;  %v5185_v10 = vld [vmem:[%s8134_s1 + $0xc8] sm:$0xff] }
0x194d   :  { %6295 = vmatprep.subr.mxu1 %v5000_v36  ;;  %6307 = vmatpush3.msra.mxu0 %v5093_v44 }
0x194e   :  { %6296 = vmatpush3.msra.mxu1 %v5000_v36  ;;  %6311 = vmatprep.subr.mxu0 %v5185_v10  ;;  %v5184_v36 = vld [vmem:[%s8134_s1 + $0xc0] sm:$0xff] }
0x194f   :  { %4912 = vrot.lane.b32.xlu0 %v4880_v38, %s6661_s5  ;;  %4904 = vrot.lane.b32.xlu1 %v4879_v47, %s6673_s26 }
0x1950   :  { %6297 = vmatprep.subr.mxu1 %v4999_v46 }
0x1951   :  { %6298 = vmatpush3.msra.mxu1 %v4999_v46  ;;  %v5183_v46 = vld [vmem:[%s8134_s1 + $0xb8] sm:$0xff] }
0x1952   :  { %6299 = vmatprep.subr.mxu1 %v4998_v28 }
0x1953   :  { %4928 = vrot.lane.b32.xlu0 %v4882_v12, %s6663_s18  ;;  %4920 = vrot.lane.b32.xlu1 %v4881_v29, %s6672_s25 }
0x1954   :  { %6300 = vmatpush3.msra.mxu1 %v4998_v28  ;;  %v5182_v28 = vld [vmem:[%s8134_s1 + $0xb0] sm:$0xff] }
0x1955   :  { %6301 = vmatprep.subr.mxu1 %v4997_v61 }
0x1956   :  { %6302 = vmatpush3.msra.mxu1 %v4997_v61  ;;  %v5742_v61 = vld [vmem:[%s8134_s1 + $0xa8] ss:$0 sm:$0xff] }
0x1957   :  { %4936 = vrot.lane.b32.xlu1 %v4883_v31, %s6674_s27  ;;  %6341 = vmatprep.subr.mxu1 %v6660_v7 }
0x19ac   :  { %v4887_v49 = vpop.permute.xlu1 %4886  ;;  %v4895_v45 = vpop.permute.xlu0 %4894 }
0x19ad   :  { %v4940_v59 = vsel %vm2963_vm5, %v4740_v27, %v4887_v49 }
0x19ae   :  { %v4942_v9 = vsel %vm1352_vm3, %v4940_v59, %v4895_v45 }
0x19b0   :  { %v4903_v25 = vpop.permute.xlu1 %4902  ;;  %v4919_v33 = vpop.permute.xlu0 %4918 }
0x19b1   :  { %v4945_v43 = vsel %vm4944_vm6, %v4942_v9, %v4903_v25 }
0x19b4   :  { %v4911_v15 = vpop.permute.xlu1 %4910  ;;  %v4935_v32 = vpop.permute.xlu0 %4934 }
0x19b5   :  { %v4947_v34 = vsel %vm239_vm2, %v4945_v43, %v4911_v15  ;;  %v6675_v43 = vmov 0   ;;  %v5745_v15 = vld [vmem:[%s8134_s1 + $0xd0] ss:$0 sm:$0xff] }
0x19b6   :  { %v4950_v6 = vsel %vm4949_vm7, %v4947_v34, %v4919_v33  ;;  %6381 = vset.pattern.permute.xlu1 %v6675_v43  ;;  %6380 = vset.pattern.permute.xlu0 %v6675_v43 }
0x19b8   :  { %v4927_v30 = vpop.permute.xlu1 %4926 }
0x19b9   :  { %v4953_v41 = vsel %vm4952_vm8, %v4950_v6, %v4927_v30 }
0x19ba   :  { %v7979_v51 = vsel %vm4955_vm9, %v4953_v41, %v4935_v32 }
0x19bb   :  { %4959 = vst.msk [vmem:[%s8137_s4] sm:$0xff] %vm4958_vm10, %v7979_v51  ;;  %v4962_v27 = vrot.slane %v7979_v51, 2  ;;  %v4965_v19 = vrot.slane %v7979_v51, 4  ;;  %v4968_v13 = vrot.slane %v7979_v51, 6 }
0x19bd   :  { %v4889_v57 = vpop.permute.xlu1 %4888  ;;  %v4897_v63 = vpop.permute.xlu0 %4896  ;;  %v4964_v60 = vadd.f32 %v4962_v27, %v7979_v51 }
0x19be   :  { %v4941_v2 = vsel %vm2963_vm5, %v4876_v21, %v4889_v57 }
0x19bf   :  { %v4943_v40 = vsel %vm1352_vm3, %v4941_v2, %v4897_v63  ;;  %v4967_v26 = vadd.f32 %v4965_v19, %v4964_v60  ;;  %v5325_v19 = vld [vmem:[%s8134_s1 + $0x110] sm:$0xff] }
0x19c1   :  { %v4905_v11 = vpop.permute.xlu1 %4904  ;;  %v4913_v0 = vpop.permute.xlu0 %4912  ;;  %v4970_v20 = vadd.f32 %v4968_v13, %v4967_v26  ;;  %v5322_v26 = vld [vmem:[%s8134_s1 + $0xf8] sm:$0xff]  ;;  %v5319_v13 = vld [vmem:[%s8134_s1 + $0xe0] sm:$0xff] }
0x19c2   :  { %v4946_v52 = vsel %vm4944_vm6, %v4943_v40, %v4905_v11 }
0x19c3   :  { %v4948_v18 = vsel %vm239_vm2, %v4946_v52, %v4913_v0 }
0x19c5   :  { %v4921_v50 = vpop.permute.xlu1 %4920  ;;  %v4929_v5 = vpop.permute.xlu0 %4928 }
0x19c6   :  { %v4951_v37 = vsel %vm4949_vm7, %v4948_v18, %v4921_v50  ;;  %v5324_v18 = vld [vmem:[%s8134_s1 + $0x108] sm:$0xff]  ;;  %v5323_v50 = vld [vmem:[%s8134_s1 + $0x100] sm:$0xff] }
0x19c7   :  { %v4954_v54 = vsel %vm4952_vm8, %v4951_v37, %v4929_v5  ;;  %v5321_v37 = vld [vmem:[%s8134_s1 + $0xf0] sm:$0xff]  ;;  %v5320_v5 = vld [vmem:[%s8134_s1 + $0xe8] sm:$0xff] }
0x19c9   :  { %v4937_v16 = vpop.permute.xlu1 %4936 }
0x19ca   :  { %v8000_v39 = vsel %vm4955_vm9, %v4954_v54, %v4937_v16  ;;  %v5408_v54 = vld [vmem:[%s8134_s1 + $0x138] sm:$0xff] }
0x19cb   :  { %v4971_v1 = vadd.f32 %v4970_v20, %v8000_v39  ;;  %v4973_v3 = vrot.slane %v8000_v39, 2  ;;  %4960 = vst.msk [vmem:[%s8137_s4 + $0x8] sm:$0xff] %vm4958_vm10, %v8000_v39  ;;  %v4976_v48 = vrot.slane %v8000_v39, 4  ;;  %v4979_v8 = vrot.slane %v8000_v39, 6  ;;  %v5318_v16 = vld [vmem:[%s8134_s1 + $0xd8] sm:$0xff]  ;;  %s5578_s4 = sshll.u32 %s6676_s20, 4  ;;  %s5579_s4 = int_to_ptr.vmem [resolvable:$true] %s5578_s4 }
0x19cc   :  { %s6638_s21 = scalar_lea.vmem %s5579_s4, 32  ;;  %p6643_p1 = scmp.lt.s32.totalorder %s5579_s4, %s5579_s4 }
0x19cd   :  { %v4975_v17 = vadd.f32 %v4973_v3, %v4971_v1  ;;  %p6639_p0 = scmp.ne.s32.totalorder %s5579_s4, %s6638_s21  ;;  %p6644_p2 = scmp.lt.s32.totalorder %s6638_s21, %s6638_s21 }
0x19cf   :  { %v4978_v62 = vadd.f32 %v4976_v48, %v4975_v17  ;;  %p6645_p3 = por %p6644_p2, %p6643_p1 }
0x19d1   :  { %v4981_v4 = vadd.f32 %v4979_v8, %v4978_v62  ;;  %p6646_p4 = pnand %p6645_p3, %p6639_p0 }
0x19d3   :  { %v4982_v14 = vmul.f32 0.125, %v4981_v4 }
0x19d5   :  { %v4984_v56 = vrot.slane %v4982_v14, 6  ;;  %v4986_v53 = vrot.slane %v4982_v14, 4  ;;  %v4988_v22 = vrot.slane %v4982_v14, 2 }
0x19d7   :  { %v4990_v21 = vsel %vm90_vm0, %v4982_v14, %v4984_v56 }
0x19d8   :  { %v4992_v58 = vsel %vm4991_vm11, %v4990_v21, %v4986_v53 }
0x19d9   :  { %v4994_v55 = vsel %vm4993_vm12, %v4992_v58, %v4988_v22 }
0x19da   :  { %v4995_v38 = vmul.f32 %v4994_v55, %v7979_v51  ;;  %v4996_v47 = vmul.f32 %v4994_v55, %v8000_v39 }
0x19dc   :  { %6303 = vmatprep.mubr.msk.f32.mxu1 %vm4958_vm10, %v4995_v38 }
0x19dd   :  { %6304 = vmatmul.mubr.msk.f32.vlgmr.msra.gmra.mxu1 %vm4958_vm10, %v4996_v47 }
0x19de   :  { %6349 = vmatprep.mubr.msk.f32.mxu1 %vm6664_vm4, %v6660_v7  ;;  %6342 = vmatpush3.msra.mxu1 %v5408_v54 }
0x19df   :  { %6343 = vmatprep.subr.mxu1 %v6660_v7 }
0x1a9d   :  { %v6305_v12 = vpop.f32.mrf.mxu1 }
0x1a9e   :  { %v5088_v29 = vadd.f32 %v6305_v12, %v5739_v24  ;;  %v5748_v12 = vld [vmem:[%s8134_s1 + $0x118] ss:$0 sm:$0xff] }
0x1a9f   :  { %v5082_v42 = vpop.f32.mrf.mxu1 }
0x1aa0   :  { %v5083_v35 = vadd.f32 %v5739_v24, %v5082_v42  ;;  %v5092_v23 = vmax.f32 %v5088_v29, 0.0  ;;  %v5405_v24 = vld [vmem:[%s8134_s1 + $0x120] sm:$0xff] }
0x1aa2   :  { %v5091_v31 = vmax.f32 %v5083_v35, 0.0 }
0x1aa4   :  { %6308 = vmatprep.mubr.msk.f32.mxu0 %vm2963_vm5, %v5091_v31 }
0x1aa5   :  { %6309 = vmatmul.mubr.msk.f32.vlgmr.msra.gmra.mxu0 %vm2963_vm5, %v5092_v23  ;;  %v5491_v23 = vld [vmem:[%s8134_s1 + $0x160] sm:$0xff] }
0x1aa6   :  { %6312 = vmatpush3.msra.mxu0 %v5185_v10  ;;  %v5490_v10 = vld [vmem:[%s8134_s1 + $0x158] sm:$0xff] }
0x1aa7   :  { %6313 = vmatprep.subr.mxu0 %v5184_v36 }
0x1aa8   :  { %6314 = vmatpush3.msra.mxu0 %v5184_v36  ;;  %v5489_v36 = vld [vmem:[%s8134_s1 + $0x150] sm:$0xff] }
0x1aa9   :  { %6315 = vmatprep.subr.mxu0 %v5183_v46 }
0x1aaa   :  { %6316 = vmatpush3.msra.mxu0 %v5183_v46  ;;  %v5488_v46 = vld [vmem:[%s8134_s1 + $0x148] sm:$0xff] }
0x1aab   :  { %6317 = vmatprep.subr.mxu0 %v5182_v28 }
0x1aac   :  { %6318 = vmatpush3.msra.mxu0 %v5182_v28  ;;  %v5750_v28 = vld [vmem:[%s8134_s1 + $0x140] ss:$0 sm:$0xff] }
0x1aad   :  { %6322 = vmatprep.subr.mxu0 %v6660_v7 }
0x1b65   :  { %v6310_v49 = vpop.f32.mrf.mxu0 }
0x1b66   :  { %v5177_v45 = vadd.f32 %v6310_v49, %v5742_v61 }
0x1b67   :  { %v5171_v59 = vpop.f32.mrf.mxu0 }
0x1b68   :  { %v5172_v25 = vadd.f32 %v5742_v61, %v5171_v59  ;;  %v5181_v9 = vmax.f32 %v5177_v45, 0.0 }
0x1b6a   :  { %v5180_v33 = vmax.f32 %v5172_v25, 0.0  ;;  %v5752_v25 = vld [vmem:[%s8134_s1 + $0x168] ss:$0 sm:$0xff] }
0x1b6c   :  { %6319 = vmatprep.mubr.msk.f32.mxu0 %vm239_vm2, %v5180_v33 }
0x1b6d   :  { %6320 = vmatmul.mubr.msk.f32.vlgmr.msra.gmra.mxu0 %vm239_vm2, %v5181_v9 }
0x1b6e   :  { %6338 = vmatprep.mubr.msk.f32.mxu0 %vm6664_vm4, %v6660_v7  ;;  %6323 = vmatpush3.msra.mxu0 %v5325_v19 }
0x1b6f   :  { %6324 = vmatprep.subr.mxu0 %v6660_v7 }
0x1b70   :  { %6325 = vmatpush3.msra.mxu0 %v5324_v18 }
0x1b71   :  { %6326 = vmatprep.subr.mxu0 %v6660_v7 }
0x1b72   :  { %6327 = vmatpush3.msra.mxu0 %v5323_v50 }
0x1b73   :  { %6328 = vmatprep.subr.mxu0 %v6660_v7 }
0x1b74   :  { %6329 = vmatpush3.msra.mxu0 %v5322_v26 }
0x1b75   :  { %6330 = vmatprep.subr.mxu0 %v6660_v7 }
0x1b76   :  { %6331 = vmatpush3.msra.mxu0 %v5321_v37 }
0x1b77   :  { %6332 = vmatprep.subr.mxu0 %v6660_v7 }
0x1b78   :  { %6333 = vmatpush3.msra.mxu0 %v5320_v5 }
0x1b79   :  { %6334 = vmatprep.subr.mxu0 %v6660_v7 }
0x1b7a   :  { %6335 = vmatpush3.msra.mxu0 %v5319_v13 }
0x1b7b   :  { %6336 = vmatprep.subr.mxu0 %v6660_v7 }
0x1b7c   :  { %6337 = vmatpush3.msra.mxu0 %v5318_v16 }
0x1c2d   :  { %v6321_v34 = vpop.f32.mrf.mxu0 }
0x1c2e   :  { %v5269_v32 = vadd.f32 %v6321_v34, %v5745_v15 }
0x1c2f   :  { %v5263_v30 = vpop.f32.mrf.mxu0 }
0x1c30   :  { %v5273_v6 = vadd.f32 3.0, %v5269_v32  ;;  %v5264_v41 = vadd.f32 %v5745_v15, %v5263_v30 }
0x1c32   :  { %v5275_v27 = vmax.f32 %v5273_v6, 0.0  ;;  %v5272_v57 = vadd.f32 3.0, %v5264_v41 }
0x1c34   :  { %v5277_v63 = vmin.f32 %v5275_v27, 6.0  ;;  %v5274_v2 = vmax.f32 %v5272_v57, 0.0 }
0x1c36   :  { %v5279_v60 = vmul.f32 %v5277_v63, %v5269_v32  ;;  %v5276_v40 = vmin.f32 %v5274_v2, 6.0 }
0x1c38   :  { %v5281_v11 = vmul.f32 0.16666667, %v5279_v60  ;;  %v5278_v0 = vmul.f32 %v5276_v40, %v5264_v41 }
0x1c3a   :  { %v5280_v52 = vmul.f32 0.16666667, %v5278_v0  ;;  %5289 = vperm.xlu1 %6381, %v5281_v11  }
0x1c3c   :  { %5284 = vperm.xlu0 %6380, %v5280_v52  }
0x1cb5   :  { %v5290_v17 = vpop.permute.xlu1 %5289 }
0x1cb6   :  { %v5293_v8 = vmul.f32 %v5290_v17, %v8000_v39  ;;  %v5406_v39 = vld [vmem:[%s8134_s1 + $0x128] sm:$0xff] }
0x1cb7   :  { %v5285_v20 = vpop.permute.xlu0 %5284 }
0x1cb8   :  { %v5292_v1 = vmul.f32 %v5285_v20, %v7979_v51  ;;  %v5306_v53 = vrot.slane %v5293_v8, 2  ;;  %v5309_v21 = vrot.slane %v5293_v8, 4  ;;  %v5312_v55 = vrot.slane %v5293_v8, 6  ;;  %v5407_v51 = vld [vmem:[%s8134_s1 + $0x130] sm:$0xff] }
0x1cb9   :  { %6344 = vmatpush3.msra.mxu1 %v5407_v51 }
0x1cba   :  { %v5295_v3 = vrot.slane %v5292_v1, 2  ;;  %v5298_v62 = vrot.slane %v5292_v1, 4  ;;  %v5301_v14 = vrot.slane %v5292_v1, 6  ;;  %6345 = vmatprep.subr.mxu1 %v6660_v7 }
0x1cbb   :  { %6346 = vmatpush3.msra.mxu1 %v5406_v39 }
0x1cbc   :  { %v5297_v48 = vadd.f32 %v5295_v3, %v5292_v1  ;;  %6347 = vmatprep.subr.mxu1 %v6660_v7 }
0x1cbd   :  { %6348 = vmatpush3.msra.mxu1 %v5405_v24 }
0x1cbe   :  { %v5300_v4 = vadd.f32 %v5298_v62, %v5297_v48  ;;  %6352 = vmatprep.subr.mxu1 %v6660_v7 }
0x1cc0   :  { %v5303_v56 = vadd.f32 %v5301_v14, %v5300_v4 }
0x1cc2   :  { %v5304_v22 = vadd.f32 %v5303_v56, %v5293_v8 }
0x1cc4   :  { %v5308_v58 = vadd.f32 %v5306_v53, %v5304_v22 }
0x1cc6   :  { %v5311_v38 = vadd.f32 %v5309_v21, %v5308_v58 }
0x1cc8   :  { %v5314_v47 = vadd.f32 %v5312_v55, %v5311_v38 }
0x1cca   :  { %v5315_v44 = vmul.f32 0.125, %v5314_v47 }
0x1ccc   :  { %5317 = vst.msk [vmem:[%s8136_s3] sm:$0x3] %vm5316_vm13, %v5315_v44  ;;  %6339 = vmatmul.mubr.msk.f32.vlgmr.msra.gmra.mxu0 %vm4958_vm10, %v5315_v44 }
0x1d8c   :  { %v5400_v29 = vpop.f32.mrf.mxu0 }
0x1d8d   :  { %v5401_v42 = vadd.f32 %v5748_v12, %v5400_v29 }
0x1d8e   :  { %v6340_v35 = vpop.f32.mrf.mxu0 }
0x1d8f   :  { %v5404_v31 = vmax.f32 %v5401_v42, 0.0 }
0x1d91   :  { %6350 = vmatmul.mubr.msk.f32.vlgmr.msra.gmra.mxu1 %vm239_vm2, %v5404_v31 }
0x1d92   :  { %6353 = vmatpush3.msra.mxu1 %v5491_v23  ;;  %6360 = vmatprep.mubr.msk.f32.mxu1 %vm6664_vm4, %v6660_v7 }
0x1d93   :  { %6354 = vmatprep.subr.mxu1 %v6660_v7 }
0x1d94   :  { %6355 = vmatpush3.msra.mxu1 %v5490_v10 }
0x1d95   :  { %6356 = vmatprep.subr.mxu1 %v6660_v7 }
0x1d96   :  { %6357 = vmatpush3.msra.mxu1 %v5489_v36 }
0x1d97   :  { %6358 = vmatprep.subr.mxu1 %v6660_v7 }
0x1d98   :  { %6359 = vmatpush3.msra.mxu1 %v5488_v46 }
0x1e51   :  { %v5483_v61 = vpop.f32.mrf.mxu1 }
0x1e52   :  { %v5484_v49 = vadd.f32 %v5750_v28, %v5483_v61 }
0x1e53   :  { %v6351_v45 = vpop.f32.mrf.mxu1 }
0x1e54   :  { %v5487_v59 = vmax.f32 %v5484_v49, 0.0 }
0x1e56   :  { %6361 = vmatmul.mubr.msk.f32.vlgmr.msra.gmra.mxu1 %vm239_vm2, %v5487_v59 }
0x1f16   :  { %v5566_v33 = vpop.f32.mrf.mxu1 }
0x1f17   :  { %v5567_v7 = vadd.f32 %v5752_v25, %v5566_v33 }
0x1f18   :  { %v6362_v9 = vpop.f32.mrf.mxu1 }
0x1f19   :  { %5571 = vst.msk [vmem:[#allocation2] sm:$0x3] %vm5570_vm14, %v5567_v7 }
0x1f1a   :  { %6649 = shalt.err (!%p6646_p4)
}
0x1f1b   :  { %5581 = dma.vmem_to_hbm [thread:$0]  %s5579_s4, 32, %s8135_s2, [#allocation3]  }
0x1f1c   :  { %6658 = dma.done.wait [#allocation3], 32  }
0x1f1d   :  { %6659 = vsyncadd [#allocation3], 4294967264 }
0x1f1e   :  { %5593 = vsyncpa [#allocation3], 1 }

</bundles_post_ra>
